<compile_context>
chip_gen: v7x
topology: tpu7x:2x2x1
jax: 0.10.0
libtpu: 0.0.40
codegen_flags: <defaults>
</compile_context>

<pallas_src>
import jax
import jax.numpy as jnp
from jax.experimental import pallas as pl
from jax.experimental.pallas import tpu as pltpu

# SRCNN hyper-parameters (fixed by the PyTorch module).
C1 = 64          # conv1 out channels
C2 = 32          # conv2 out channels
K1 = 9           # conv1 kernel size
K3 = 5           # conv3 kernel size
PAD1 = K1 // 2   # 4
PAD3 = K3 // 2   # 2


def _make_srcnn_kernel(H, W, C_in):
    """Builds the fused SRCNN kernel for one image (grid iterates over batch)."""
    Hc, Wc = H + 2 * PAD1, W + 2 * PAD1   # zero-padded canvas (also holds conv3 halo)
    L = Hc * Wc                           # flattened canvas length (lane axis)
    M1 = PAD1 * Wc + PAD1                 # max |flat tap shift| of the 9x9 conv
    M3 = PAD3 * Wc + PAD3                 # max |flat tap shift| of the 5x5 conv
    Cp = ((C_in + 7) // 8) * 8            # sublane-aligned input channel rows
    L1 = L + 2 * PAD1                     # conv1 slab lanes (room for the dx shifts)
    L3 = L + 2 * PAD3                     # conv3 slab lanes

    def kernel(x_ref, w1_ref, b1_ref, w2_ref, b2_ref, w3_ref, b3_ref,
               o_ref, r1, a1, a2, xe3, r3):
        # ---- conv1 slab: only the K1 dy row-shifts are copied (bf16) ------------
        # The input canvas already carries the zero ring + +-M1 margin (wrapper).
        for dy in range(K1):
            s = M1 + (dy - PAD1) * Wc - PAD1
            r1[dy * Cp:(dy + 1) * Cp, :] = x_ref[0, :, s:s + L1]

        # ---- conv1: K1 accumulating MXU matmuls over lane-shifted windows -------
        acc = jnp.zeros((C1, L), jnp.float32)
        for dx in range(K1):
            acc = acc + jnp.dot(w1_ref[dx], r1[:, dx:dx + L],
                                preferred_element_type=jnp.float32)
        a1[...] = jnp.maximum(acc + b1_ref[...], 0.0).astype(jnp.bfloat16)

        # ---- conv2 (1x1): single matmul ------------------------------------------
        acc = jnp.dot(w2_ref[...], a1[...], preferred_element_type=jnp.float32)
        a2[...] = jnp.maximum(acc + b2_ref[...], 0.0).astype(jnp.bfloat16)

        # ---- conv3 input: re-embed only the valid HxW pixels into a zeroed canvas
        #      (this realizes conv3's zero padding; ring/garbage cells stay 0) -----
        xe3[...] = jnp.zeros_like(xe3)
        for y in range(H):
            src = (y + PAD1) * Wc + PAD1
            xe3[:, M3 + src:M3 + src + W] = a2[:, src:src + W]

        # ---- conv3: K3 dy-shift copies + K3 accumulating matmuls ------------------
        for dy in range(K3):
            s = M3 + (dy - PAD3) * Wc - PAD3
            r3[dy * C2:(dy + 1) * C2, :] = xe3[:, s:s + L3]
        acc = jnp.zeros((C_in, L), jnp.float32)
        for dx in range(K3):
            acc = acc + jnp.dot(w3_ref[dx], r3[:, dx:dx + L],
                                preferred_element_type=jnp.float32)
        out = acc + b3_ref[...]

        # ---- lane-dense output: in-kernel crop to the valid HxW pixels -----------
        for y in range(H):
            src = (y + PAD1) * Wc + PAD1
            o_ref[0, :, y * W:(y + 1) * W] = out[:, src:src + W].astype(o_ref.dtype)

    return kernel, (Hc, Wc, L, M1, M3, Cp, L1, L3)


@jax.jit
def srcnn_forward(x_nchw, params):
    """SRCNN forward.  Input/output layout: NCHW (matches the PyTorch module)."""
    N, C, H, W = x_nchw.shape
    kernel, (Hc, Wc, L, M1, M3, Cp, L1, L3) = _make_srcnn_kernel(H, W, C)

    # conv1 input canvas built in the wrapper: zero pad ring + +-M1 tap margin,
    # channels padded to Cp sublane rows, cast to bf16 (f32 accumulation in-kernel).
    canvas = jnp.zeros((N, Cp, Hc, Wc), jnp.float32)
    canvas = canvas.at[:, :C, PAD1:PAD1 + H, PAD1:PAD1 + W].set(x_nchw)
    x_ext = jnp.pad(canvas.reshape(N, Cp, L),
                    ((0, 0), (0, 0), (M1, M1))).astype(jnp.bfloat16)

    # Weights reshaped for the accumulating-matmul form (tiny one-time XLA ops):
    #   w*[dy, dx, ci, co]  ->  w*r[dx, co, dy*Cin + ci]   (one LHS block per dx).
    w1 = jnp.pad(params["w1"], ((0, 0), (0, 0), (0, Cp - C), (0, 0)))
    w1r = jnp.transpose(w1, (1, 3, 0, 2)).reshape(K1, C1, K1 * Cp).astype(jnp.bfloat16)
    w2r = params["w2"].reshape(C1, C2).T.astype(jnp.bfloat16)                 # (C2, C1)
    w3r = jnp.transpose(params["w3"], (1, 3, 0, 2)).reshape(K3, C, K3 * C2).astype(jnp.bfloat16)
    b1 = params["b1"].reshape(C1, 1).astype(jnp.float32)
    b2 = params["b2"].reshape(C2, 1).astype(jnp.float32)
    b3 = params["b3"].reshape(C, 1).astype(jnp.float32)

    out = pl.pallas_call(
        kernel,
        out_shape=jax.ShapeDtypeStruct((N, C, H * W), jnp.float32),
        grid_spec=pltpu.PrefetchScalarGridSpec(
            num_scalar_prefetch=0,
            grid=(N,),
            in_specs=[
                pl.BlockSpec((1, Cp, L + 2 * M1), lambda n: (n, 0, 0)),
                pl.BlockSpec((K1, C1, K1 * Cp), lambda n: (0, 0, 0)),
                pl.BlockSpec((C1, 1), lambda n: (0, 0)),
                pl.BlockSpec((C2, C1), lambda n: (0, 0)),
                pl.BlockSpec((C2, 1), lambda n: (0, 0)),
                pl.BlockSpec((K3, C, K3 * C2), lambda n: (0, 0, 0)),
                pl.BlockSpec((C, 1), lambda n: (0, 0)),
            ],
            out_specs=pl.BlockSpec((1, C, H * W), lambda n: (n, 0, 0)),
            scratch_shapes=[
                pltpu.VMEM((K1 * Cp, L1), jnp.bfloat16),      # conv1 dy-shift slab
                pltpu.VMEM((C1, L), jnp.bfloat16),            # staged a1
                pltpu.VMEM((C2, L), jnp.bfloat16),            # staged a2
                pltpu.VMEM((C2, L + 2 * M3), jnp.bfloat16),   # conv3 zero-padded canvas
                pltpu.VMEM((K3 * C2, L3), jnp.bfloat16),      # conv3 dy-shift slab
            ],
        ),
        compiler_params=pltpu.CompilerParams(
            dimension_semantics=("parallel",),
            vmem_limit_bytes=32 * 1024 * 1024,
        ),
    )(x_ext, w1r, b1, w2r, b2, w3r, b3)

    # Output was stored lane-dense per valid pixel; reshape back to NCHW is free.
    return out.reshape(N, C, H, W)


def init_srcnn_params(channels, key):
    """Deterministic synthetic parameters (shapes match nn.Conv2d in SRCNN), HWIO."""
    k1, k2, k3, k4, k5, k6 = jax.random.split(key, 6)

    def w(key, kh, kw, cin, cout):
        bound = 1.0 / jnp.sqrt(cin * kh * kw)
        return jax.random.uniform(key, (kh, kw, cin, cout), jnp.float32, -bound, bound)

    def b(key, cin, kh, kw, cout):
        bound = 1.0 / jnp.sqrt(cin * kh * kw)
        return jax.random.uniform(key, (cout,), jnp.float32, -bound, bound)

    return {
        "w1": w(k1, K1, K1, channels, C1), "b1": b(k2, channels, K1, K1, C1),
        "w2": w(k3, 1, 1, C1, C2),         "b2": b(k4, C1, 1, 1, C2),
        "w3": w(k5, K3, K3, C2, channels), "b3": b(k6, C2, K3, K3, channels),
    }


def _reference_forward(x_nchw, params):
    """Pure-JAX f32 reference using lax.conv_general_dilated (for validation)."""
    prec = jax.lax.Precision.HIGHEST

    def conv(x, w_hwio, b, pad, relu):
        y = jax.lax.conv_general_dilated(
            x, w_hwio, window_strides=(1, 1), padding=[(pad, pad), (pad, pad)],
            dimension_numbers=("NCHW", "HWIO", "NCHW"), precision=prec,
        ) + b.reshape(1, -1, 1, 1)
        return jnp.maximum(y, 0.0) if relu else y

    x = conv(x_nchw, params["w1"], params["b1"], PAD1, True)
    x = conv(x, params["w2"], params["b2"], 0, True)
    x = conv(x, params["w3"], params["b3"], PAD3, False)
    return x


if __name__ == "__main__":
    key = jax.random.PRNGKey(0)
    k_x, k_p = jax.random.split(key)

    channels = 4
    x = jax.random.normal(k_x, (2, channels, 16, 16), jnp.float32)  # NCHW
    params = init_srcnn_params(channels, k_p)

    out = jax.block_until_ready(srcnn_forward(x, params))
    assert out.shape == (2, channels, 16, 16), out.shape

    ref = _reference_forward(x, params)
    err = float(jnp.max(jnp.abs(out - ref)))
    # bf16 matmul operands with f32 accumulation: expect a few e-3 max-abs error
    # vs the pure-f32 reference; real indexing bugs would be O(1e-1) or larger.
    assert err < 5e-2, err

    print("KERNEL_OK")
</pallas_src>

<mosaic_0001>
module attributes {stable_mosaic.version = 11 : i64} {
  func.func @kernel(%arg0: i32, %arg1: memref<1x8x776xbf16, #tpu.memory_space<vmem>>, %arg2: memref<9x64x72xbf16, #tpu.memory_space<vmem>>, %arg3: memref<64x1xf32, #tpu.memory_space<vmem>>, %arg4: memref<32x64xbf16, #tpu.memory_space<vmem>>, %arg5: memref<32x1xf32, #tpu.memory_space<vmem>>, %arg6: memref<5x4x160xbf16, #tpu.memory_space<vmem>>, %arg7: memref<4x1xf32, #tpu.memory_space<vmem>>, %arg8: memref<1x4x256xf32, #tpu.memory_space<vmem>>, %arg9: memref<72x584xbf16, #tpu.memory_space<vmem>>, %arg10: memref<64x576xbf16, #tpu.memory_space<vmem>>, %arg11: memref<32x576xbf16, #tpu.memory_space<vmem>>, %arg12: memref<32x676xbf16, #tpu.memory_space<vmem>>, %arg13: memref<160x580xbf16, #tpu.memory_space<vmem>>) attributes {dimension_semantics = [#tpu.dimension_semantics<parallel>], iteration_bounds = array<i64: 2>, scalar_prefetch = 0 : i64, scratch_operands = 5 : i64, tpu.core_type = #tpu.core_type<tc>, window_params = [{transform_indices = @transform_0, window_bounds = array<i64: 1, 8, 776>}, {pipeline_mode = #tpu.pipeline_mode<synchronous>, transform_indices = @transform_1, window_bounds = array<i64: 9, 64, 72>}, {pipeline_mode = #tpu.pipeline_mode<synchronous>, transform_indices = @transform_2, window_bounds = array<i64: 64, 1>}, {pipeline_mode = #tpu.pipeline_mode<synchronous>, transform_indices = @transform_3, window_bounds = array<i64: 32, 64>}, {pipeline_mode = #tpu.pipeline_mode<synchronous>, transform_indices = @transform_4, window_bounds = array<i64: 32, 1>}, {pipeline_mode = #tpu.pipeline_mode<synchronous>, transform_indices = @transform_5, window_bounds = array<i64: 5, 4, 160>}, {pipeline_mode = #tpu.pipeline_mode<synchronous>, transform_indices = @transform_6, window_bounds = array<i64: 4, 1>}, {transform_indices = @transform_7, window_bounds = array<i64: 1, 4, 256>}]} {
    %c0 = arith.constant 0 : index
    %c0_0 = arith.constant 0 : index
    %c0_1 = arith.constant 0 : index
    %0 = vector.load %arg1[%c0, %c0_0, %c0_1] : memref<1x8x776xbf16, #tpu.memory_space<vmem>>, vector<1x8x584xbf16>
    %1 = vector.shape_cast %0 : vector<1x8x584xbf16> to vector<8x584xbf16>
    %c0_2 = arith.constant 0 : index
    %c0_3 = arith.constant 0 : index
    %2 = vector.load %arg9[%c0_2, %c0_3] : memref<72x584xbf16, #tpu.memory_space<vmem>>, vector<8x584xbf16>
    tpu.vector_store %arg9[%c0_2, %c0_3], %1 {strides = array<i32>} : memref<72x584xbf16, #tpu.memory_space<vmem>>, vector<8x584xbf16>,
    %c0_4 = arith.constant 0 : index
    %c0_5 = arith.constant 0 : index
    %c24 = arith.constant 24 : index
    %3 = vector.load %arg1[%c0_4, %c0_5, %c24] : memref<1x8x776xbf16, #tpu.memory_space<vmem>>, vector<1x8x584xbf16>
    %4 = vector.shape_cast %3 : vector<1x8x584xbf16> to vector<8x584xbf16>
    %c8 = arith.constant 8 : index
    %c0_6 = arith.constant 0 : index
    %5 = vector.load %arg9[%c8, %c0_6] : memref<72x584xbf16, #tpu.memory_space<vmem>>, vector<8x584xbf16>
    tpu.vector_store %arg9[%c8, %c0_6], %4 {strides = array<i32>} : memref<72x584xbf16, #tpu.memory_space<vmem>>, vector<8x584xbf16>,
    %c0_7 = arith.constant 0 : index
    %c0_8 = arith.constant 0 : index
    %c48 = arith.constant 48 : index
    %6 = vector.load %arg1[%c0_7, %c0_8, %c48] : memref<1x8x776xbf16, #tpu.memory_space<vmem>>, vector<1x8x584xbf16>
    %7 = vector.shape_cast %6 : vector<1x8x584xbf16> to vector<8x584xbf16>
    %c16 = arith.constant 16 : index
    %c0_9 = arith.constant 0 : index
    %8 = vector.load %arg9[%c16, %c0_9] : memref<72x584xbf16, #tpu.memory_space<vmem>>, vector<8x584xbf16>
    tpu.vector_store %arg9[%c16, %c0_9], %7 {strides = array<i32>} : memref<72x584xbf16, #tpu.memory_space<vmem>>, vector<8x584xbf16>,
    %c0_10 = arith.constant 0 : index
    %c0_11 = arith.constant 0 : index
    %c72 = arith.constant 72 : index
    %9 = vector.load %arg1[%c0_10, %c0_11, %c72] : memref<1x8x776xbf16, #tpu.memory_space<vmem>>, vector<1x8x584xbf16>
    %10 = vector.shape_cast %9 : vector<1x8x584xbf16> to vector<8x584xbf16>
    %c24_12 = arith.constant 24 : index
    %c0_13 = arith.constant 0 : index
    %11 = vector.load %arg9[%c24_12, %c0_13] : memref<72x584xbf16, #tpu.memory_space<vmem>>, vector<8x584xbf16>
    tpu.vector_store %arg9[%c24_12, %c0_13], %10 {strides = array<i32>} : memref<72x584xbf16, #tpu.memory_space<vmem>>, vector<8x584xbf16>,
    %c0_14 = arith.constant 0 : index
    %c0_15 = arith.constant 0 : index
    %c96 = arith.constant 96 : index
    %12 = vector.load %arg1[%c0_14, %c0_15, %c96] : memref<1x8x776xbf16, #tpu.memory_space<vmem>>, vector<1x8x584xbf16>
    %13 = vector.shape_cast %12 : vector<1x8x584xbf16> to vector<8x584xbf16>
    %c32 = arith.constant 32 : index
    %c0_16 = arith.constant 0 : index
    %14 = vector.load %arg9[%c32, %c0_16] : memref<72x584xbf16, #tpu.memory_space<vmem>>, vector<8x584xbf16>
    tpu.vector_store %arg9[%c32, %c0_16], %13 {strides = array<i32>} : memref<72x584xbf16, #tpu.memory_space<vmem>>, vector<8x584xbf16>,
    %c0_17 = arith.constant 0 : index
    %c0_18 = arith.constant 0 : index
    %c120 = arith.constant 120 : index
    %15 = vector.load %arg1[%c0_17, %c0_18, %c120] : memref<1x8x776xbf16, #tpu.memory_space<vmem>>, vector<1x8x584xbf16>
    %16 = vector.shape_cast %15 : vector<1x8x584xbf16> to vector<8x584xbf16>
    %c40 = arith.constant 40 : index
    %c0_19 = arith.constant 0 : index
    %17 = vector.load %arg9[%c40, %c0_19] : memref<72x584xbf16, #tpu.memory_space<vmem>>, vector<8x584xbf16>
    tpu.vector_store %arg9[%c40, %c0_19], %16 {strides = array<i32>} : memref<72x584xbf16, #tpu.memory_space<vmem>>, vector<8x584xbf16>,
    %c0_20 = arith.constant 0 : index
    %c0_21 = arith.constant 0 : index
    %c144 = arith.constant 144 : index
    %18 = vector.load %arg1[%c0_20, %c0_21, %c144] : memref<1x8x776xbf16, #tpu.memory_space<vmem>>, vector<1x8x584xbf16>
    %19 = vector.shape_cast %18 : vector<1x8x584xbf16> to vector<8x584xbf16>
    %c48_22 = arith.constant 48 : index
    %c0_23 = arith.constant 0 : index
    %20 = vector.load %arg9[%c48_22, %c0_23] : memref<72x584xbf16, #tpu.memory_space<vmem>>, vector<8x584xbf16>
    tpu.vector_store %arg9[%c48_22, %c0_23], %19 {strides = array<i32>} : memref<72x584xbf16, #tpu.memory_space<vmem>>, vector<8x584xbf16>,
    %c0_24 = arith.constant 0 : index
    %c0_25 = arith.constant 0 : index
    %c168 = arith.constant 168 : index
    %21 = vector.load %arg1[%c0_24, %c0_25, %c168] : memref<1x8x776xbf16, #tpu.memory_space<vmem>>, vector<1x8x584xbf16>
    %22 = vector.shape_cast %21 : vector<1x8x584xbf16> to vector<8x584xbf16>
    %c56 = arith.constant 56 : index
    %c0_26 = arith.constant 0 : index
    %23 = vector.load %arg9[%c56, %c0_26] : memref<72x584xbf16, #tpu.memory_space<vmem>>, vector<8x584xbf16>
    tpu.vector_store %arg9[%c56, %c0_26], %22 {strides = array<i32>} : memref<72x584xbf16, #tpu.memory_space<vmem>>, vector<8x584xbf16>,
    %c0_27 = arith.constant 0 : index
    %c0_28 = arith.constant 0 : index
    %c192 = arith.constant 192 : index
    %24 = vector.load %arg1[%c0_27, %c0_28, %c192] : memref<1x8x776xbf16, #tpu.memory_space<vmem>>, vector<1x8x584xbf16>
    %25 = vector.shape_cast %24 : vector<1x8x584xbf16> to vector<8x584xbf16>
    %c64 = arith.constant 64 : index
    %c0_29 = arith.constant 0 : index
    %26 = vector.load %arg9[%c64, %c0_29] : memref<72x584xbf16, #tpu.memory_space<vmem>>, vector<8x584xbf16>
    tpu.vector_store %arg9[%c64, %c0_29], %25 {strides = array<i32>} : memref<72x584xbf16, #tpu.memory_space<vmem>>, vector<8x584xbf16>,
    %cst = arith.constant 0.000000e+00 : f32
    %27 = vector.broadcast %cst : f32 to vector<64x576xf32>
    %c0_30 = arith.constant 0 : index
    %c0_31 = arith.constant 0 : index
    %c0_32 = arith.constant 0 : index
    %28 = vector.load %arg2[%c0_30, %c0_31, %c0_32] : memref<9x64x72xbf16, #tpu.memory_space<vmem>>, vector<1x64x72xbf16>
    %29 = vector.shape_cast %28 : vector<1x64x72xbf16> to vector<64x72xbf16>
    %c0_33 = arith.constant 0 : index
    %c0_34 = arith.constant 0 : index
    %30 = vector.load %arg9[%c0_33, %c0_34] : memref<72x584xbf16, #tpu.memory_space<vmem>>, vector<72x576xbf16>
    %cst_35 = arith.constant dense<0.000000e+00> : vector<64x576xf32>
    %31 = tpu.matmul %29, %30, %cst_35 {dimension_numbers = #tpu.dot_dimension_numbers<[1], [0], [0], [1], [0, 0, 1, 1], [], []>} : vector<64x72xbf16>, vector<72x576xbf16>, vector<64x576xf32> -> vector<64x576xf32>
    %32 = arith.addf %27, %31 : vector<64x576xf32>
    %c1 = arith.constant 1 : index
    %c0_36 = arith.constant 0 : index
    %c0_37 = arith.constant 0 : index
    %33 = vector.load %arg2[%c1, %c0_36, %c0_37] : memref<9x64x72xbf16, #tpu.memory_space<vmem>>, vector<1x64x72xbf16>
    %34 = vector.shape_cast %33 : vector<1x64x72xbf16> to vector<64x72xbf16>
    %c0_38 = arith.constant 0 : index
    %c1_39 = arith.constant 1 : index
    %35 = vector.load %arg9[%c0_38, %c1_39] : memref<72x584xbf16, #tpu.memory_space<vmem>>, vector<72x576xbf16>
    %cst_40 = arith.constant dense<0.000000e+00> : vector<64x576xf32>
    %36 = tpu.matmul %34, %35, %cst_40 {dimension_numbers = #tpu.dot_dimension_numbers<[1], [0], [0], [1], [0, 0, 1, 1], [], []>} : vector<64x72xbf16>, vector<72x576xbf16>, vector<64x576xf32> -> vector<64x576xf32>
    %37 = arith.addf %32, %36 : vector<64x576xf32>
    %c2 = arith.constant 2 : index
    %c0_41 = arith.constant 0 : index
    %c0_42 = arith.constant 0 : index
    %38 = vector.load %arg2[%c2, %c0_41, %c0_42] : memref<9x64x72xbf16, #tpu.memory_space<vmem>>, vector<1x64x72xbf16>
    %39 = vector.shape_cast %38 : vector<1x64x72xbf16> to vector<64x72xbf16>
    %c0_43 = arith.constant 0 : index
    %c2_44 = arith.constant 2 : index
    %40 = vector.load %arg9[%c0_43, %c2_44] : memref<72x584xbf16, #tpu.memory_space<vmem>>, vector<72x576xbf16>
    %cst_45 = arith.constant dense<0.000000e+00> : vector<64x576xf32>
    %41 = tpu.matmul %39, %40, %cst_45 {dimension_numbers = #tpu.dot_dimension_numbers<[1], [0], [0], [1], [0, 0, 1, 1], [], []>} : vector<64x72xbf16>, vector<72x576xbf16>, vector<64x576xf32> -> vector<64x576xf32>
    %42 = arith.addf %37, %41 : vector<64x576xf32>
    %c3 = arith.constant 3 : index
    %c0_46 = arith.constant 0 : index
    %c0_47 = arith.constant 0 : index
    %43 = vector.load %arg2[%c3, %c0_46, %c0_47] : memref<9x64x72xbf16, #tpu.memory_space<vmem>>, vector<1x64x72xbf16>
    %44 = vector.shape_cast %43 : vector<1x64x72xbf16> to vector<64x72xbf16>
    %c0_48 = arith.constant 0 : index
    %c3_49 = arith.constant 3 : index
    %45 = vector.load %arg9[%c0_48, %c3_49] : memref<72x584xbf16, #tpu.memory_space<vmem>>, vector<72x576xbf16>
    %cst_50 = arith.constant dense<0.000000e+00> : vector<64x576xf32>
    %46 = tpu.matmul %44, %45, %cst_50 {dimension_numbers = #tpu.dot_dimension_numbers<[1], [0], [0], [1], [0, 0, 1, 1], [], []>} : vector<64x72xbf16>, vector<72x576xbf16>, vector<64x576xf32> -> vector<64x576xf32>
    %47 = arith.addf %42, %46 : vector<64x576xf32>
    %c4 = arith.constant 4 : index
    %c0_51 = arith.constant 0 : index
    %c0_52 = arith.constant 0 : index
    %48 = vector.load %arg2[%c4, %c0_51, %c0_52] : memref<9x64x72xbf16, #tpu.memory_space<vmem>>, vector<1x64x72xbf16>
    %49 = vector.shape_cast %48 : vector<1x64x72xbf16> to vector<64x72xbf16>
    %c0_53 = arith.constant 0 : index
    %c4_54 = arith.constant 4 : index
    %50 = vector.load %arg9[%c0_53, %c4_54] : memref<72x584xbf16, #tpu.memory_space<vmem>>, vector<72x576xbf16>
    %cst_55 = arith.constant dense<0.000000e+00> : vector<64x576xf32>
    %51 = tpu.matmul %49, %50, %cst_55 {dimension_numbers = #tpu.dot_dimension_numbers<[1], [0], [0], [1], [0, 0, 1, 1], [], []>} : vector<64x72xbf16>, vector<72x576xbf16>, vector<64x576xf32> -> vector<64x576xf32>
    %52 = arith.addf %47, %51 : vector<64x576xf32>
    %c5 = arith.constant 5 : index
    %c0_56 = arith.constant 0 : index
    %c0_57 = arith.constant 0 : index
    %53 = vector.load %arg2[%c5, %c0_56, %c0_57] : memref<9x64x72xbf16, #tpu.memory_space<vmem>>, vector<1x64x72xbf16>
    %54 = vector.shape_cast %53 : vector<1x64x72xbf16> to vector<64x72xbf16>
    %c0_58 = arith.constant 0 : index
    %c5_59 = arith.constant 5 : index
    %55 = vector.load %arg9[%c0_58, %c5_59] : memref<72x584xbf16, #tpu.memory_space<vmem>>, vector<72x576xbf16>
    %cst_60 = arith.constant dense<0.000000e+00> : vector<64x576xf32>
    %56 = tpu.matmul %54, %55, %cst_60 {dimension_numbers = #tpu.dot_dimension_numbers<[1], [0], [0], [1], [0, 0, 1, 1], [], []>} : vector<64x72xbf16>, vector<72x576xbf16>, vector<64x576xf32> -> vector<64x576xf32>
    %57 = arith.addf %52, %56 : vector<64x576xf32>
    %c6 = arith.constant 6 : index
    %c0_61 = arith.constant 0 : index
    %c0_62 = arith.constant 0 : index
    %58 = vector.load %arg2[%c6, %c0_61, %c0_62] : memref<9x64x72xbf16, #tpu.memory_space<vmem>>, vector<1x64x72xbf16>
    %59 = vector.shape_cast %58 : vector<1x64x72xbf16> to vector<64x72xbf16>
    %c0_63 = arith.constant 0 : index
    %c6_64 = arith.constant 6 : index
    %60 = vector.load %arg9[%c0_63, %c6_64] : memref<72x584xbf16, #tpu.memory_space<vmem>>, vector<72x576xbf16>
    %cst_65 = arith.constant dense<0.000000e+00> : vector<64x576xf32>
    %61 = tpu.matmul %59, %60, %cst_65 {dimension_numbers = #tpu.dot_dimension_numbers<[1], [0], [0], [1], [0, 0, 1, 1], [], []>} : vector<64x72xbf16>, vector<72x576xbf16>, vector<64x576xf32> -> vector<64x576xf32>
    %62 = arith.addf %57, %61 : vector<64x576xf32>
    %c7 = arith.constant 7 : index
    %c0_66 = arith.constant 0 : index
    %c0_67 = arith.constant 0 : index
    %63 = vector.load %arg2[%c7, %c0_66, %c0_67] : memref<9x64x72xbf16, #tpu.memory_space<vmem>>, vector<1x64x72xbf16>
    %64 = vector.shape_cast %63 : vector<1x64x72xbf16> to vector<64x72xbf16>
    %c0_68 = arith.constant 0 : index
    %c7_69 = arith.constant 7 : index
    %65 = vector.load %arg9[%c0_68, %c7_69] : memref<72x584xbf16, #tpu.memory_space<vmem>>, vector<72x576xbf16>
    %cst_70 = arith.constant dense<0.000000e+00> : vector<64x576xf32>
    %66 = tpu.matmul %64, %65, %cst_70 {dimension_numbers = #tpu.dot_dimension_numbers<[1], [0], [0], [1], [0, 0, 1, 1], [], []>} : vector<64x72xbf16>, vector<72x576xbf16>, vector<64x576xf32> -> vector<64x576xf32>
    %67 = arith.addf %62, %66 : vector<64x576xf32>
    %c8_71 = arith.constant 8 : index
    %c0_72 = arith.constant 0 : index
    %c0_73 = arith.constant 0 : index
    %68 = vector.load %arg2[%c8_71, %c0_72, %c0_73] : memref<9x64x72xbf16, #tpu.memory_space<vmem>>, vector<1x64x72xbf16>
    %69 = vector.shape_cast %68 : vector<1x64x72xbf16> to vector<64x72xbf16>
    %c0_74 = arith.constant 0 : index
    %c8_75 = arith.constant 8 : index
    %70 = vector.load %arg9[%c0_74, %c8_75] : memref<72x584xbf16, #tpu.memory_space<vmem>>, vector<72x576xbf16>
    %cst_76 = arith.constant dense<0.000000e+00> : vector<64x576xf32>
    %71 = tpu.matmul %69, %70, %cst_76 {dimension_numbers = #tpu.dot_dimension_numbers<[1], [0], [0], [1], [0, 0, 1, 1], [], []>} : vector<64x72xbf16>, vector<72x576xbf16>, vector<64x576xf32> -> vector<64x576xf32>
    %72 = arith.addf %67, %71 : vector<64x576xf32>
    %c0_77 = arith.constant 0 : index
    %c0_78 = arith.constant 0 : index
    %73 = vector.load %arg3[%c0_77, %c0_78] : memref<64x1xf32, #tpu.memory_space<vmem>>, vector<64x1xf32>
    %74 = vector.broadcast %73 : vector<64x1xf32> to vector<64x576xf32>
    %75 = arith.addf %72, %74 : vector<64x576xf32>
    %cst_79 = arith.constant 0.000000e+00 : f32
    %76 = vector.broadcast %cst_79 : f32 to vector<64x576xf32>
    %77 = arith.maximumf %75, %76 : vector<64x576xf32>
    %78 = arith.truncf %77 : vector<64x576xf32> to vector<64x576xbf16>
    %c0_80 = arith.constant 0 : index
    %c0_81 = arith.constant 0 : index
    %79 = vector.load %arg10[%c0_80, %c0_81] : memref<64x576xbf16, #tpu.memory_space<vmem>>, vector<64x576xbf16>
    tpu.vector_store %arg10[%c0_80, %c0_81], %78 {strides = array<i32>} : memref<64x576xbf16, #tpu.memory_space<vmem>>, vector<64x576xbf16>,
    %c0_82 = arith.constant 0 : index
    %c0_83 = arith.constant 0 : index
    %80 = vector.load %arg4[%c0_82, %c0_83] : memref<32x64xbf16, #tpu.memory_space<vmem>>, vector<32x64xbf16>
    %c0_84 = arith.constant 0 : index
    %c0_85 = arith.constant 0 : index
    %81 = vector.load %arg10[%c0_84, %c0_85] : memref<64x576xbf16, #tpu.memory_space<vmem>>, vector<64x576xbf16>
    %cst_86 = arith.constant dense<0.000000e+00> : vector<32x576xf32>
    %82 = tpu.matmul %80, %81, %cst_86 {dimension_numbers = #tpu.dot_dimension_numbers<[1], [0], [0], [1], [0, 0, 1, 1], [], []>} : vector<32x64xbf16>, vector<64x576xbf16>, vector<32x576xf32> -> vector<32x576xf32>
    %c0_87 = arith.constant 0 : index
    %c0_88 = arith.constant 0 : index
    %83 = vector.load %arg5[%c0_87, %c0_88] : memref<32x1xf32, #tpu.memory_space<vmem>>, vector<32x1xf32>
    %84 = vector.broadcast %83 : vector<32x1xf32> to vector<32x576xf32>
    %85 = arith.addf %82, %84 : vector<32x576xf32>
    %cst_89 = arith.constant 0.000000e+00 : f32
    %86 = vector.broadcast %cst_89 : f32 to vector<32x576xf32>
    %87 = arith.maximumf %85, %86 : vector<32x576xf32>
    %88 = arith.truncf %87 : vector<32x576xf32> to vector<32x576xbf16>
    %c0_90 = arith.constant 0 : index
    %c0_91 = arith.constant 0 : index
    %89 = vector.load %arg11[%c0_90, %c0_91] : memref<32x576xbf16, #tpu.memory_space<vmem>>, vector<32x576xbf16>
    tpu.vector_store %arg11[%c0_90, %c0_91], %88 {strides = array<i32>} : memref<32x576xbf16, #tpu.memory_space<vmem>>, vector<32x576xbf16>,
    %cst_92 = arith.constant 0.000000e+00 : bf16
    %90 = vector.broadcast %cst_92 : bf16 to vector<32x676xbf16>
    %c0_93 = arith.constant 0 : index
    %c0_94 = arith.constant 0 : index
    %91 = vector.load %arg12[%c0_93, %c0_94] : memref<32x676xbf16, #tpu.memory_space<vmem>>, vector<32x676xbf16>
    tpu.vector_store %arg12[%c0_93, %c0_94], %90 {strides = array<i32>} : memref<32x676xbf16, #tpu.memory_space<vmem>>, vector<32x676xbf16>,
    %c0_95 = arith.constant 0 : index
    %c100 = arith.constant 100 : index
    %92 = vector.load %arg11[%c0_95, %c100] : memref<32x576xbf16, #tpu.memory_space<vmem>>, vector<32x16xbf16>
    %c0_96 = arith.constant 0 : index
    %c150 = arith.constant 150 : index
    %93 = vector.load %arg12[%c0_96, %c150] : memref<32x676xbf16, #tpu.memory_space<vmem>>, vector<32x16xbf16>
    tpu.vector_store %arg12[%c0_96, %c150], %92 {strides = array<i32>} : memref<32x676xbf16, #tpu.memory_space<vmem>>, vector<32x16xbf16>,
    %c0_97 = arith.constant 0 : index
    %c124 = arith.constant 124 : index
    %94 = vector.load %arg11[%c0_97, %c124] : memref<32x576xbf16, #tpu.memory_space<vmem>>, vector<32x16xbf16>
    %c0_98 = arith.constant 0 : index
    %c174 = arith.constant 174 : index
    %95 = vector.load %arg12[%c0_98, %c174] : memref<32x676xbf16, #tpu.memory_space<vmem>>, vector<32x16xbf16>
    tpu.vector_store %arg12[%c0_98, %c174], %94 {strides = array<i32>} : memref<32x676xbf16, #tpu.memory_space<vmem>>, vector<32x16xbf16>,
    %c0_99 = arith.constant 0 : index
    %c148 = arith.constant 148 : index
    %96 = vector.load %arg11[%c0_99, %c148] : memref<32x576xbf16, #tpu.memory_space<vmem>>, vector<32x16xbf16>
    %c0_100 = arith.constant 0 : index
    %c198 = arith.constant 198 : index
    %97 = vector.load %arg12[%c0_100, %c198] : memref<32x676xbf16, #tpu.memory_space<vmem>>, vector<32x16xbf16>
    tpu.vector_store %arg12[%c0_100, %c198], %96 {strides = array<i32>} : memref<32x676xbf16, #tpu.memory_space<vmem>>, vector<32x16xbf16>,
    %c0_101 = arith.constant 0 : index
    %c172 = arith.constant 172 : index
    %98 = vector.load %arg11[%c0_101, %c172] : memref<32x576xbf16, #tpu.memory_space<vmem>>, vector<32x16xbf16>
    %c0_102 = arith.constant 0 : index
    %c222 = arith.constant 222 : index
    %99 = vector.load %arg12[%c0_102, %c222] : memref<32x676xbf16, #tpu.memory_space<vmem>>, vector<32x16xbf16>
    tpu.vector_store %arg12[%c0_102, %c222], %98 {strides = array<i32>} : memref<32x676xbf16, #tpu.memory_space<vmem>>, vector<32x16xbf16>,
    %c0_103 = arith.constant 0 : index
    %c196 = arith.constant 196 : index
    %100 = vector.load %arg11[%c0_103, %c196] : memref<32x576xbf16, #tpu.memory_space<vmem>>, vector<32x16xbf16>
    %c0_104 = arith.constant 0 : index
    %c246 = arith.constant 246 : index
    %101 = vector.load %arg12[%c0_104, %c246] : memref<32x676xbf16, #tpu.memory_space<vmem>>, vector<32x16xbf16>
    tpu.vector_store %arg12[%c0_104, %c246], %100 {strides = array<i32>} : memref<32x676xbf16, #tpu.memory_space<vmem>>, vector<32x16xbf16>,
    %c0_105 = arith.constant 0 : index
    %c220 = arith.constant 220 : index
    %102 = vector.load %arg11[%c0_105, %c220] : memref<32x576xbf16, #tpu.memory_space<vmem>>, vector<32x16xbf16>
    %c0_106 = arith.constant 0 : index
    %c270 = arith.constant 270 : index
    %103 = vector.load %arg12[%c0_106, %c270] : memref<32x676xbf16, #tpu.memory_space<vmem>>, vector<32x16xbf16>
    tpu.vector_store %arg12[%c0_106, %c270], %102 {strides = array<i32>} : memref<32x676xbf16, #tpu.memory_space<vmem>>, vector<32x16xbf16>,
    %c0_107 = arith.constant 0 : index
    %c244 = arith.constant 244 : index
    %104 = vector.load %arg11[%c0_107, %c244] : memref<32x576xbf16, #tpu.memory_space<vmem>>, vector<32x16xbf16>
    %c0_108 = arith.constant 0 : index
    %c294 = arith.constant 294 : index
    %105 = vector.load %arg12[%c0_108, %c294] : memref<32x676xbf16, #tpu.memory_space<vmem>>, vector<32x16xbf16>
    tpu.vector_store %arg12[%c0_108, %c294], %104 {strides = array<i32>} : memref<32x676xbf16, #tpu.memory_space<vmem>>, vector<32x16xbf16>,
    %c0_109 = arith.constant 0 : index
    %c268 = arith.constant 268 : index
    %106 = vector.load %arg11[%c0_109, %c268] : memref<32x576xbf16, #tpu.memory_space<vmem>>, vector<32x16xbf16>
    %c0_110 = arith.constant 0 : index
    %c318 = arith.constant 318 : index
    %107 = vector.load %arg12[%c0_110, %c318] : memref<32x676xbf16, #tpu.memory_space<vmem>>, vector<32x16xbf16>
    tpu.vector_store %arg12[%c0_110, %c318], %106 {strides = array<i32>} : memref<32x676xbf16, #tpu.memory_space<vmem>>, vector<32x16xbf16>,
    %c0_111 = arith.constant 0 : index
    %c292 = arith.constant 292 : index
    %108 = vector.load %arg11[%c0_111, %c292] : memref<32x576xbf16, #tpu.memory_space<vmem>>, vector<32x16xbf16>
    %c0_112 = arith.constant 0 : index
    %c342 = arith.constant 342 : index
    %109 = vector.load %arg12[%c0_112, %c342] : memref<32x676xbf16, #tpu.memory_space<vmem>>, vector<32x16xbf16>
    tpu.vector_store %arg12[%c0_112, %c342], %108 {strides = array<i32>} : memref<32x676xbf16, #tpu.memory_space<vmem>>, vector<32x16xbf16>,
    %c0_113 = arith.constant 0 : index
    %c316 = arith.constant 316 : index
    %110 = vector.load %arg11[%c0_113, %c316] : memref<32x576xbf16, #tpu.memory_space<vmem>>, vector<32x16xbf16>
    %c0_114 = arith.constant 0 : index
    %c366 = arith.constant 366 : index
    %111 = vector.load %arg12[%c0_114, %c366] : memref<32x676xbf16, #tpu.memory_space<vmem>>, vector<32x16xbf16>
    tpu.vector_store %arg12[%c0_114, %c366], %110 {strides = array<i32>} : memref<32x676xbf16, #tpu.memory_space<vmem>>, vector<32x16xbf16>,
    %c0_115 = arith.constant 0 : index
    %c340 = arith.constant 340 : index
    %112 = vector.load %arg11[%c0_115, %c340] : memref<32x576xbf16, #tpu.memory_space<vmem>>, vector<32x16xbf16>
    %c0_116 = arith.constant 0 : index
    %c390 = arith.constant 390 : index
    %113 = vector.load %arg12[%c0_116, %c390] : memref<32x676xbf16, #tpu.memory_space<vmem>>, vector<32x16xbf16>
    tpu.vector_store %arg12[%c0_116, %c390], %112 {strides = array<i32>} : memref<32x676xbf16, #tpu.memory_space<vmem>>, vector<32x16xbf16>,
    %c0_117 = arith.constant 0 : index
    %c364 = arith.constant 364 : index
    %114 = vector.load %arg11[%c0_117, %c364] : memref<32x576xbf16, #tpu.memory_space<vmem>>, vector<32x16xbf16>
    %c0_118 = arith.constant 0 : index
    %c414 = arith.constant 414 : index
    %115 = vector.load %arg12[%c0_118, %c414] : memref<32x676xbf16, #tpu.memory_space<vmem>>, vector<32x16xbf16>
    tpu.vector_store %arg12[%c0_118, %c414], %114 {strides = array<i32>} : memref<32x676xbf16, #tpu.memory_space<vmem>>, vector<32x16xbf16>,
    %c0_119 = arith.constant 0 : index
    %c388 = arith.constant 388 : index
    %116 = vector.load %arg11[%c0_119, %c388] : memref<32x576xbf16, #tpu.memory_space<vmem>>, vector<32x16xbf16>
    %c0_120 = arith.constant 0 : index
    %c438 = arith.constant 438 : index
    %117 = vector.load %arg12[%c0_120, %c438] : memref<32x676xbf16, #tpu.memory_space<vmem>>, vector<32x16xbf16>
    tpu.vector_store %arg12[%c0_120, %c438], %116 {strides = array<i32>} : memref<32x676xbf16, #tpu.memory_space<vmem>>, vector<32x16xbf16>,
    %c0_121 = arith.constant 0 : index
    %c412 = arith.constant 412 : index
    %118 = vector.load %arg11[%c0_121, %c412] : memref<32x576xbf16, #tpu.memory_space<vmem>>, vector<32x16xbf16>
    %c0_122 = arith.constant 0 : index
    %c462 = arith.constant 462 : index
    %119 = vector.load %arg12[%c0_122, %c462] : memref<32x676xbf16, #tpu.memory_space<vmem>>, vector<32x16xbf16>
    tpu.vector_store %arg12[%c0_122, %c462], %118 {strides = array<i32>} : memref<32x676xbf16, #tpu.memory_space<vmem>>, vector<32x16xbf16>,
    %c0_123 = arith.constant 0 : index
    %c436 = arith.constant 436 : index
    %120 = vector.load %arg11[%c0_123, %c436] : memref<32x576xbf16, #tpu.memory_space<vmem>>, vector<32x16xbf16>
    %c0_124 = arith.constant 0 : index
    %c486 = arith.constant 486 : index
    %121 = vector.load %arg12[%c0_124, %c486] : memref<32x676xbf16, #tpu.memory_space<vmem>>, vector<32x16xbf16>
    tpu.vector_store %arg12[%c0_124, %c486], %120 {strides = array<i32>} : memref<32x676xbf16, #tpu.memory_space<vmem>>, vector<32x16xbf16>,
    %c0_125 = arith.constant 0 : index
    %c460 = arith.constant 460 : index
    %122 = vector.load %arg11[%c0_125, %c460] : memref<32x576xbf16, #tpu.memory_space<vmem>>, vector<32x16xbf16>
    %c0_126 = arith.constant 0 : index
    %c510 = arith.constant 510 : index
    %123 = vector.load %arg12[%c0_126, %c510] : memref<32x676xbf16, #tpu.memory_space<vmem>>, vector<32x16xbf16>
    tpu.vector_store %arg12[%c0_126, %c510], %122 {strides = array<i32>} : memref<32x676xbf16, #tpu.memory_space<vmem>>, vector<32x16xbf16>,
    %c0_127 = arith.constant 0 : index
    %c0_128 = arith.constant 0 : index
    %124 = vector.load %arg12[%c0_127, %c0_128] : memref<32x676xbf16, #tpu.memory_space<vmem>>, vector<32x580xbf16>
    %c0_129 = arith.constant 0 : index
    %c0_130 = arith.constant 0 : index
    %125 = vector.load %arg13[%c0_129, %c0_130] : memref<160x580xbf16, #tpu.memory_space<vmem>>, vector<32x580xbf16>
    tpu.vector_store %arg13[%c0_129, %c0_130], %124 {strides = array<i32>} : memref<160x580xbf16, #tpu.memory_space<vmem>>, vector<32x580xbf16>,
    %c0_131 = arith.constant 0 : index
    %c24_132 = arith.constant 24 : index
    %126 = vector.load %arg12[%c0_131, %c24_132] : memref<32x676xbf16, #tpu.memory_space<vmem>>, vector<32x580xbf16>
    %c32_133 = arith.constant 32 : index
    %c0_134 = arith.constant 0 : index
    %127 = vector.load %arg13[%c32_133, %c0_134] : memref<160x580xbf16, #tpu.memory_space<vmem>>, vector<32x580xbf16>
    tpu.vector_store %arg13[%c32_133, %c0_134], %126 {strides = array<i32>} : memref<160x580xbf16, #tpu.memory_space<vmem>>, vector<32x580xbf16>,
    %c0_135 = arith.constant 0 : index
    %c48_136 = arith.constant 48 : index
    %128 = vector.load %arg12[%c0_135, %c48_136] : memref<32x676xbf16, #tpu.memory_space<vmem>>, vector<32x580xbf16>
    %c64_137 = arith.constant 64 : index
    %c0_138 = arith.constant 0 : index
    %129 = vector.load %arg13[%c64_137, %c0_138] : memref<160x580xbf16, #tpu.memory_space<vmem>>, vector<32x580xbf16>
    tpu.vector_store %arg13[%c64_137, %c0_138], %128 {strides = array<i32>} : memref<160x580xbf16, #tpu.memory_space<vmem>>, vector<32x580xbf16>,
    %c0_139 = arith.constant 0 : index
    %c72_140 = arith.constant 72 : index
    %130 = vector.load %arg12[%c0_139, %c72_140] : memref<32x676xbf16, #tpu.memory_space<vmem>>, vector<32x580xbf16>
    %c96_141 = arith.constant 96 : index
    %c0_142 = arith.constant 0 : index
    %131 = vector.load %arg13[%c96_141, %c0_142] : memref<160x580xbf16, #tpu.memory_space<vmem>>, vector<32x580xbf16>
    tpu.vector_store %arg13[%c96_141, %c0_142], %130 {strides = array<i32>} : memref<160x580xbf16, #tpu.memory_space<vmem>>, vector<32x580xbf16>,
    %c0_143 = arith.constant 0 : index
    %c96_144 = arith.constant 96 : index
    %132 = vector.load %arg12[%c0_143, %c96_144] : memref<32x676xbf16, #tpu.memory_space<vmem>>, vector<32x580xbf16>
    %c128 = arith.constant 128 : index
    %c0_145 = arith.constant 0 : index
    %133 = vector.load %arg13[%c128, %c0_145] : memref<160x580xbf16, #tpu.memory_space<vmem>>, vector<32x580xbf16>
    tpu.vector_store %arg13[%c128, %c0_145], %132 {strides = array<i32>} : memref<160x580xbf16, #tpu.memory_space<vmem>>, vector<32x580xbf16>,
    %cst_146 = arith.constant 0.000000e+00 : f32
    %134 = vector.broadcast %cst_146 : f32 to vector<4x576xf32>
    %c0_147 = arith.constant 0 : index
    %c0_148 = arith.constant 0 : index
    %c0_149 = arith.constant 0 : index
    %135 = vector.load %arg6[%c0_147, %c0_148, %c0_149] : memref<5x4x160xbf16, #tpu.memory_space<vmem>>, vector<1x4x160xbf16>
    %136 = vector.shape_cast %135 : vector<1x4x160xbf16> to vector<4x160xbf16>
    %c0_150 = arith.constant 0 : index
    %c0_151 = arith.constant 0 : index
    %137 = vector.load %arg13[%c0_150, %c0_151] : memref<160x580xbf16, #tpu.memory_space<vmem>>, vector<160x576xbf16>
    %cst_152 = arith.constant dense<0.000000e+00> : vector<4x576xf32>
    %138 = tpu.matmul %136, %137, %cst_152 {dimension_numbers = #tpu.dot_dimension_numbers<[1], [0], [0], [1], [0, 0, 1, 1], [], []>} : vector<4x160xbf16>, vector<160x576xbf16>, vector<4x576xf32> -> vector<4x576xf32>
    %139 = arith.addf %134, %138 : vector<4x576xf32>
    %c1_153 = arith.constant 1 : index
    %c0_154 = arith.constant 0 : index
    %c0_155 = arith.constant 0 : index
    %140 = vector.load %arg6[%c1_153, %c0_154, %c0_155] : memref<5x4x160xbf16, #tpu.memory_space<vmem>>, vector<1x4x160xbf16>
    %141 = vector.shape_cast %140 : vector<1x4x160xbf16> to vector<4x160xbf16>
    %c0_156 = arith.constant 0 : index
    %c1_157 = arith.constant 1 : index
    %142 = vector.load %arg13[%c0_156, %c1_157] : memref<160x580xbf16, #tpu.memory_space<vmem>>, vector<160x576xbf16>
    %cst_158 = arith.constant dense<0.000000e+00> : vector<4x576xf32>
    %143 = tpu.matmul %141, %142, %cst_158 {dimension_numbers = #tpu.dot_dimension_numbers<[1], [0], [0], [1], [0, 0, 1, 1], [], []>} : vector<4x160xbf16>, vector<160x576xbf16>, vector<4x576xf32> -> vector<4x576xf32>
    %144 = arith.addf %139, %143 : vector<4x576xf32>
    %c2_159 = arith.constant 2 : index
    %c0_160 = arith.constant 0 : index
    %c0_161 = arith.constant 0 : index
    %145 = vector.load %arg6[%c2_159, %c0_160, %c0_161] : memref<5x4x160xbf16, #tpu.memory_space<vmem>>, vector<1x4x160xbf16>
    %146 = vector.shape_cast %145 : vector<1x4x160xbf16> to vector<4x160xbf16>
    %c0_162 = arith.constant 0 : index
    %c2_163 = arith.constant 2 : index
    %147 = vector.load %arg13[%c0_162, %c2_163] : memref<160x580xbf16, #tpu.memory_space<vmem>>, vector<160x576xbf16>
    %cst_164 = arith.constant dense<0.000000e+00> : vector<4x576xf32>
    %148 = tpu.matmul %146, %147, %cst_164 {dimension_numbers = #tpu.dot_dimension_numbers<[1], [0], [0], [1], [0, 0, 1, 1], [], []>} : vector<4x160xbf16>, vector<160x576xbf16>, vector<4x576xf32> -> vector<4x576xf32>
    %149 = arith.addf %144, %148 : vector<4x576xf32>
    %c3_165 = arith.constant 3 : index
    %c0_166 = arith.constant 0 : index
    %c0_167 = arith.constant 0 : index
    %150 = vector.load %arg6[%c3_165, %c0_166, %c0_167] : memref<5x4x160xbf16, #tpu.memory_space<vmem>>, vector<1x4x160xbf16>
    %151 = vector.shape_cast %150 : vector<1x4x160xbf16> to vector<4x160xbf16>
    %c0_168 = arith.constant 0 : index
    %c3_169 = arith.constant 3 : index
    %152 = vector.load %arg13[%c0_168, %c3_169] : memref<160x580xbf16, #tpu.memory_space<vmem>>, vector<160x576xbf16>
    %cst_170 = arith.constant dense<0.000000e+00> : vector<4x576xf32>
    %153 = tpu.matmul %151, %152, %cst_170 {dimension_numbers = #tpu.dot_dimension_numbers<[1], [0], [0], [1], [0, 0, 1, 1], [], []>} : vector<4x160xbf16>, vector<160x576xbf16>, vector<4x576xf32> -> vector<4x576xf32>
    %154 = arith.addf %149, %153 : vector<4x576xf32>
    %c4_171 = arith.constant 4 : index
    %c0_172 = arith.constant 0 : index
    %c0_173 = arith.constant 0 : index
    %155 = vector.load %arg6[%c4_171, %c0_172, %c0_173] : memref<5x4x160xbf16, #tpu.memory_space<vmem>>, vector<1x4x160xbf16>
    %156 = vector.shape_cast %155 : vector<1x4x160xbf16> to vector<4x160xbf16>
    %c0_174 = arith.constant 0 : index
    %c4_175 = arith.constant 4 : index
    %157 = vector.load %arg13[%c0_174, %c4_175] : memref<160x580xbf16, #tpu.memory_space<vmem>>, vector<160x576xbf16>
    %cst_176 = arith.constant dense<0.000000e+00> : vector<4x576xf32>
    %158 = tpu.matmul %156, %157, %cst_176 {dimension_numbers = #tpu.dot_dimension_numbers<[1], [0], [0], [1], [0, 0, 1, 1], [], []>} : vector<4x160xbf16>, vector<160x576xbf16>, vector<4x576xf32> -> vector<4x576xf32>
    %159 = arith.addf %154, %158 : vector<4x576xf32>
    %c0_177 = arith.constant 0 : index
    %c0_178 = arith.constant 0 : index
    %160 = vector.load %arg7[%c0_177, %c0_178] : memref<4x1xf32, #tpu.memory_space<vmem>>, vector<4x1xf32>
    %161 = vector.broadcast %160 : vector<4x1xf32> to vector<4x576xf32>
    %162 = arith.addf %159, %161 : vector<4x576xf32>
    %163 = vector.extract_strided_slice %162 {offsets = [0, 100], sizes = [4, 16], strides = [1, 1]} : vector<4x576xf32> to vector<4x16xf32>
    %c0_179 = arith.constant 0 : index
    %c0_180 = arith.constant 0 : index
    %c0_181 = arith.constant 0 : index
    %164 = vector.load %arg8[%c0_179, %c0_180, %c0_181] : memref<1x4x256xf32, #tpu.memory_space<vmem>>, vector<1x4x16xf32>
    %165 = vector.shape_cast %164 : vector<1x4x16xf32> to vector<4x16xf32>
    %166 = vector.shape_cast %163 : vector<4x16xf32> to vector<1x4x16xf32>
    tpu.vector_store %arg8[%c0_179, %c0_180, %c0_181], %166 {strides = array<i32>} : memref<1x4x256xf32, #tpu.memory_space<vmem>>, vector<1x4x16xf32>,
    %167 = vector.extract_strided_slice %162 {offsets = [0, 124], sizes = [4, 16], strides = [1, 1]} : vector<4x576xf32> to vector<4x16xf32>
    %c0_182 = arith.constant 0 : index
    %c0_183 = arith.constant 0 : index
    %c16_184 = arith.constant 16 : index
    %168 = vector.load %arg8[%c0_182, %c0_183, %c16_184] : memref<1x4x256xf32, #tpu.memory_space<vmem>>, vector<1x4x16xf32>
    %169 = vector.shape_cast %168 : vector<1x4x16xf32> to vector<4x16xf32>
    %170 = vector.shape_cast %167 : vector<4x16xf32> to vector<1x4x16xf32>
    tpu.vector_store %arg8[%c0_182, %c0_183, %c16_184], %170 {strides = array<i32>} : memref<1x4x256xf32, #tpu.memory_space<vmem>>, vector<1x4x16xf32>,
    %171 = vector.extract_strided_slice %162 {offsets = [0, 148], sizes = [4, 16], strides = [1, 1]} : vector<4x576xf32> to vector<4x16xf32>
    %c0_185 = arith.constant 0 : index
    %c0_186 = arith.constant 0 : index
    %c32_187 = arith.constant 32 : index
    %172 = vector.load %arg8[%c0_185, %c0_186, %c32_187] : memref<1x4x256xf32, #tpu.memory_space<vmem>>, vector<1x4x16xf32>
    %173 = vector.shape_cast %172 : vector<1x4x16xf32> to vector<4x16xf32>
    %174 = vector.shape_cast %171 : vector<4x16xf32> to vector<1x4x16xf32>
    tpu.vector_store %arg8[%c0_185, %c0_186, %c32_187], %174 {strides = array<i32>} : memref<1x4x256xf32, #tpu.memory_space<vmem>>, vector<1x4x16xf32>,
    %175 = vector.extract_strided_slice %162 {offsets = [0, 172], sizes = [4, 16], strides = [1, 1]} : vector<4x576xf32> to vector<4x16xf32>
    %c0_188 = arith.constant 0 : index
    %c0_189 = arith.constant 0 : index
    %c48_190 = arith.constant 48 : index
    %176 = vector.load %arg8[%c0_188, %c0_189, %c48_190] : memref<1x4x256xf32, #tpu.memory_space<vmem>>, vector<1x4x16xf32>
    %177 = vector.shape_cast %176 : vector<1x4x16xf32> to vector<4x16xf32>
    %178 = vector.shape_cast %175 : vector<4x16xf32> to vector<1x4x16xf32>
    tpu.vector_store %arg8[%c0_188, %c0_189, %c48_190], %178 {strides = array<i32>} : memref<1x4x256xf32, #tpu.memory_space<vmem>>, vector<1x4x16xf32>,
    %179 = vector.extract_strided_slice %162 {offsets = [0, 196], sizes = [4, 16], strides = [1, 1]} : vector<4x576xf32> to vector<4x16xf32>
    %c0_191 = arith.constant 0 : index
    %c0_192 = arith.constant 0 : index
    %c64_193 = arith.constant 64 : index
    %180 = vector.load %arg8[%c0_191, %c0_192, %c64_193] : memref<1x4x256xf32, #tpu.memory_space<vmem>>, vector<1x4x16xf32>
    %181 = vector.shape_cast %180 : vector<1x4x16xf32> to vector<4x16xf32>
    %182 = vector.shape_cast %179 : vector<4x16xf32> to vector<1x4x16xf32>
    tpu.vector_store %arg8[%c0_191, %c0_192, %c64_193], %182 {strides = array<i32>} : memref<1x4x256xf32, #tpu.memory_space<vmem>>, vector<1x4x16xf32>,
    %183 = vector.extract_strided_slice %162 {offsets = [0, 220], sizes = [4, 16], strides = [1, 1]} : vector<4x576xf32> to vector<4x16xf32>
    %c0_194 = arith.constant 0 : index
    %c0_195 = arith.constant 0 : index
    %c80 = arith.constant 80 : index
    %184 = vector.load %arg8[%c0_194, %c0_195, %c80] : memref<1x4x256xf32, #tpu.memory_space<vmem>>, vector<1x4x16xf32>
    %185 = vector.shape_cast %184 : vector<1x4x16xf32> to vector<4x16xf32>
    %186 = vector.shape_cast %183 : vector<4x16xf32> to vector<1x4x16xf32>
    tpu.vector_store %arg8[%c0_194, %c0_195, %c80], %186 {strides = array<i32>} : memref<1x4x256xf32, #tpu.memory_space<vmem>>, vector<1x4x16xf32>,
    %187 = vector.extract_strided_slice %162 {offsets = [0, 244], sizes = [4, 16], strides = [1, 1]} : vector<4x576xf32> to vector<4x16xf32>
    %c0_196 = arith.constant 0 : index
    %c0_197 = arith.constant 0 : index
    %c96_198 = arith.constant 96 : index
    %188 = vector.load %arg8[%c0_196, %c0_197, %c96_198] : memref<1x4x256xf32, #tpu.memory_space<vmem>>, vector<1x4x16xf32>
    %189 = vector.shape_cast %188 : vector<1x4x16xf32> to vector<4x16xf32>
    %190 = vector.shape_cast %187 : vector<4x16xf32> to vector<1x4x16xf32>
    tpu.vector_store %arg8[%c0_196, %c0_197, %c96_198], %190 {strides = array<i32>} : memref<1x4x256xf32, #tpu.memory_space<vmem>>, vector<1x4x16xf32>,
    %191 = vector.extract_strided_slice %162 {offsets = [0, 268], sizes = [4, 16], strides = [1, 1]} : vector<4x576xf32> to vector<4x16xf32>
    %c0_199 = arith.constant 0 : index
    %c0_200 = arith.constant 0 : index
    %c112 = arith.constant 112 : index
    %192 = vector.load %arg8[%c0_199, %c0_200, %c112] : memref<1x4x256xf32, #tpu.memory_space<vmem>>, vector<1x4x16xf32>
    %193 = vector.shape_cast %192 : vector<1x4x16xf32> to vector<4x16xf32>
    %194 = vector.shape_cast %191 : vector<4x16xf32> to vector<1x4x16xf32>
    tpu.vector_store %arg8[%c0_199, %c0_200, %c112], %194 {strides = array<i32>} : memref<1x4x256xf32, #tpu.memory_space<vmem>>, vector<1x4x16xf32>,
    %195 = vector.extract_strided_slice %162 {offsets = [0, 292], sizes = [4, 16], strides = [1, 1]} : vector<4x576xf32> to vector<4x16xf32>
    %c0_201 = arith.constant 0 : index
    %c0_202 = arith.constant 0 : index
    %c128_203 = arith.constant 128 : index
    %196 = vector.load %arg8[%c0_201, %c0_202, %c128_203] : memref<1x4x256xf32, #tpu.memory_space<vmem>>, vector<1x4x16xf32>
    %197 = vector.shape_cast %196 : vector<1x4x16xf32> to vector<4x16xf32>
    %198 = vector.shape_cast %195 : vector<4x16xf32> to vector<1x4x16xf32>
    tpu.vector_store %arg8[%c0_201, %c0_202, %c128_203], %198 {strides = array<i32>} : memref<1x4x256xf32, #tpu.memory_space<vmem>>, vector<1x4x16xf32>,
    %199 = vector.extract_strided_slice %162 {offsets = [0, 316], sizes = [4, 16], strides = [1, 1]} : vector<4x576xf32> to vector<4x16xf32>
    %c0_204 = arith.constant 0 : index
    %c0_205 = arith.constant 0 : index
    %c144_206 = arith.constant 144 : index
    %200 = vector.load %arg8[%c0_204, %c0_205, %c144_206] : memref<1x4x256xf32, #tpu.memory_space<vmem>>, vector<1x4x16xf32>
    %201 = vector.shape_cast %200 : vector<1x4x16xf32> to vector<4x16xf32>
    %202 = vector.shape_cast %199 : vector<4x16xf32> to vector<1x4x16xf32>
    tpu.vector_store %arg8[%c0_204, %c0_205, %c144_206], %202 {strides = array<i32>} : memref<1x4x256xf32, #tpu.memory_space<vmem>>, vector<1x4x16xf32>,
    %203 = vector.extract_strided_slice %162 {offsets = [0, 340], sizes = [4, 16], strides = [1, 1]} : vector<4x576xf32> to vector<4x16xf32>
    %c0_207 = arith.constant 0 : index
    %c0_208 = arith.constant 0 : index
    %c160 = arith.constant 160 : index
    %204 = vector.load %arg8[%c0_207, %c0_208, %c160] : memref<1x4x256xf32, #tpu.memory_space<vmem>>, vector<1x4x16xf32>
    %205 = vector.shape_cast %204 : vector<1x4x16xf32> to vector<4x16xf32>
    %206 = vector.shape_cast %203 : vector<4x16xf32> to vector<1x4x16xf32>
    tpu.vector_store %arg8[%c0_207, %c0_208, %c160], %206 {strides = array<i32>} : memref<1x4x256xf32, #tpu.memory_space<vmem>>, vector<1x4x16xf32>,
    %207 = vector.extract_strided_slice %162 {offsets = [0, 364], sizes = [4, 16], strides = [1, 1]} : vector<4x576xf32> to vector<4x16xf32>
    %c0_209 = arith.constant 0 : index
    %c0_210 = arith.constant 0 : index
    %c176 = arith.constant 176 : index
    %208 = vector.load %arg8[%c0_209, %c0_210, %c176] : memref<1x4x256xf32, #tpu.memory_space<vmem>>, vector<1x4x16xf32>
    %209 = vector.shape_cast %208 : vector<1x4x16xf32> to vector<4x16xf32>
    %210 = vector.shape_cast %207 : vector<4x16xf32> to vector<1x4x16xf32>
    tpu.vector_store %arg8[%c0_209, %c0_210, %c176], %210 {strides = array<i32>} : memref<1x4x256xf32, #tpu.memory_space<vmem>>, vector<1x4x16xf32>,
    %211 = vector.extract_strided_slice %162 {offsets = [0, 388], sizes = [4, 16], strides = [1, 1]} : vector<4x576xf32> to vector<4x16xf32>
    %c0_211 = arith.constant 0 : index
    %c0_212 = arith.constant 0 : index
    %c192_213 = arith.constant 192 : index
    %212 = vector.load %arg8[%c0_211, %c0_212, %c192_213] : memref<1x4x256xf32, #tpu.memory_space<vmem>>, vector<1x4x16xf32>
    %213 = vector.shape_cast %212 : vector<1x4x16xf32> to vector<4x16xf32>
    %214 = vector.shape_cast %211 : vector<4x16xf32> to vector<1x4x16xf32>
    tpu.vector_store %arg8[%c0_211, %c0_212, %c192_213], %214 {strides = array<i32>} : memref<1x4x256xf32, #tpu.memory_space<vmem>>, vector<1x4x16xf32>,
    %215 = vector.extract_strided_slice %162 {offsets = [0, 412], sizes = [4, 16], strides = [1, 1]} : vector<4x576xf32> to vector<4x16xf32>
    %c0_214 = arith.constant 0 : index
    %c0_215 = arith.constant 0 : index
    %c208 = arith.constant 208 : index
    %216 = vector.load %arg8[%c0_214, %c0_215, %c208] : memref<1x4x256xf32, #tpu.memory_space<vmem>>, vector<1x4x16xf32>
    %217 = vector.shape_cast %216 : vector<1x4x16xf32> to vector<4x16xf32>
    %218 = vector.shape_cast %215 : vector<4x16xf32> to vector<1x4x16xf32>
    tpu.vector_store %arg8[%c0_214, %c0_215, %c208], %218 {strides = array<i32>} : memref<1x4x256xf32, #tpu.memory_space<vmem>>, vector<1x4x16xf32>,
    %219 = vector.extract_strided_slice %162 {offsets = [0, 436], sizes = [4, 16], strides = [1, 1]} : vector<4x576xf32> to vector<4x16xf32>
    %c0_216 = arith.constant 0 : index
    %c0_217 = arith.constant 0 : index
    %c224 = arith.constant 224 : index
    %220 = vector.load %arg8[%c0_216, %c0_217, %c224] : memref<1x4x256xf32, #tpu.memory_space<vmem>>, vector<1x4x16xf32>
    %221 = vector.shape_cast %220 : vector<1x4x16xf32> to vector<4x16xf32>
    %222 = vector.shape_cast %219 : vector<4x16xf32> to vector<1x4x16xf32>
    tpu.vector_store %arg8[%c0_216, %c0_217, %c224], %222 {strides = array<i32>} : memref<1x4x256xf32, #tpu.memory_space<vmem>>, vector<1x4x16xf32>,
    %223 = vector.extract_strided_slice %162 {offsets = [0, 460], sizes = [4, 16], strides = [1, 1]} : vector<4x576xf32> to vector<4x16xf32>
    %c0_218 = arith.constant 0 : index
    %c0_219 = arith.constant 0 : index
    %c240 = arith.constant 240 : index
    %224 = vector.load %arg8[%c0_218, %c0_219, %c240] : memref<1x4x256xf32, #tpu.memory_space<vmem>>, vector<1x4x16xf32>
    %225 = vector.shape_cast %224 : vector<1x4x16xf32> to vector<4x16xf32>
    %226 = vector.shape_cast %223 : vector<4x16xf32> to vector<1x4x16xf32>
    tpu.vector_store %arg8[%c0_218, %c0_219, %c240], %226 {strides = array<i32>} : memref<1x4x256xf32, #tpu.memory_space<vmem>>, vector<1x4x16xf32>,
    return
  }
  func.func @transform_0(%arg0: i32) -> (i32, i32, i32) {
    %c0_i32 = arith.constant 0 : i32
    %c0_i32_0 = arith.constant 0 : i32
    %c0_i32_1 = arith.constant 0 : i32
    return %arg0, %c0_i32, %c0_i32_0 : i32, i32, i32
  }
  func.func @transform_1(%arg0: i32) -> (i32, i32, i32) {
    %c0_i32 = arith.constant 0 : i32
    %c0_i32_0 = arith.constant 0 : i32
    %c0_i32_1 = arith.constant 0 : i32
    %c0_i32_2 = arith.constant 0 : i32
    return %c0_i32, %c0_i32_0, %c0_i32_1 : i32, i32, i32
  }
  func.func @transform_2(%arg0: i32) -> (i32, i32) {
    %c0_i32 = arith.constant 0 : i32
    %c0_i32_0 = arith.constant 0 : i32
    %c0_i32_1 = arith.constant 0 : i32
    return %c0_i32, %c0_i32_0 : i32, i32
  }
  func.func @transform_3(%arg0: i32) -> (i32, i32) {
    %c0_i32 = arith.constant 0 : i32
    %c0_i32_0 = arith.constant 0 : i32
    %c0_i32_1 = arith.constant 0 : i32
    return %c0_i32, %c0_i32_0 : i32, i32
  }
  func.func @transform_4(%arg0: i32) -> (i32, i32) {
    %c0_i32 = arith.constant 0 : i32
    %c0_i32_0 = arith.constant 0 : i32
    %c0_i32_1 = arith.constant 0 : i32
    return %c0_i32, %c0_i32_0 : i32, i32
  }
  func.func @transform_5(%arg0: i32) -> (i32, i32, i32) {
    %c0_i32 = arith.constant 0 : i32
    %c0_i32_0 = arith.constant 0 : i32
    %c0_i32_1 = arith.constant 0 : i32
    %c0_i32_2 = arith.constant 0 : i32
    return %c0_i32, %c0_i32_0, %c0_i32_1 : i32, i32, i32
  }
  func.func @transform_6(%arg0: i32) -> (i32, i32) {
    %c0_i32 = arith.constant 0 : i32
    %c0_i32_0 = arith.constant 0 : i32
    %c0_i32_1 = arith.constant 0 : i32
    return %c0_i32, %c0_i32_0 : i32, i32
  }
  func.func @transform_7(%arg0: i32) -> (i32, i32, i32) {
    %c0_i32 = arith.constant 0 : i32
    %c0_i32_0 = arith.constant 0 : i32
    %c0_i32_1 = arith.constant 0 : i32
    return %arg0, %c0_i32, %c0_i32_0 : i32, i32, i32
  }
}

</mosaic_0001>

<bundles_post_ra>
// kernel: srcnn_forward.1
= control target key start
LH: loop header
LB: loop body
LE: loop exit
PB: predicated region body
PF: predicated region fallthrough
CT: control target
= control target key end

     0   :  { %s7911_s24 = smov 0   ;;  %s11471_s0 = inlined_call_operand.vmem [shape: bf16[2,8,776], index: 0, kind: input, shape index: {}]   ;;  %s11472_s1 = inlined_call_operand.vmem [shape: bf16[9,64,72], index: 1, kind: input, shape index: {}]   ;;  %s11473_s2 = inlined_call_operand.vmem [shape: f32[64,1], index: 2, kind: input, shape index: {}]   ;;  %s11474_s3 = inlined_call_operand.vmem [shape: bf16[32,64], index: 3, kind: input, shape index: {}]   ;;  %s11475_s4 = inlined_call_operand.vmem [shape: f32[32,1], index: 4, kind: input, shape index: {}]   ;;  %s11476_s5 = inlined_call_operand.vmem [shape: bf16[5,4,160], index: 5, kind: input, shape index: {}]   ;;  %s11477_s6 = inlined_call_operand.vmem [shape: f32[4,1], index: 6, kind: input, shape index: {}]   ;;  %s11478_s7 = inlined_call_operand.vmem [shape: f32[2,4,256], index: 7, kind: output, shape index: {}]  }
   0x1 LB: > { %s6811_s25 = sadd.s32 4294967295, %s7836_s24   ;;  %p6815_p0 = scmp.ge.s32.totalorder %s7836_s24, 1  ;;  %s7836_s24 = sphi %s7911_s24, %s17_s24  }
   0x2   : > { %p237_p1 = scmp.lt.s32.totalorder %s7836_s24, 3 }
   0x4   : > { %p238_p2 = pnand %p6815_p0, %p237_p1 }
   0x6   : > { %241 = sbr.rel (%p238_p2) target bundleno = 2387 (0x953), region = 48 }
   0xd   : > { %p269_p3 = scmp.lt.s32.totalorder %s6811_s25, 1  ;;  %s7838_s30 = smov 104   ;;  %vm285_vm0 = vcmask 584704   ;;  %vm302_vm1 = vcmask 1043456   ;;  %vm304_vm2 = vcmask 850944   ;;  %vm330_vm3 = vcmask 654336  }
   0xe   : > { %s7839_s8 = smov 80   ;;  %s7840_s9 = smov 56   ;;  %vm356_vm4 = vcmask 457728   ;;  %vm383_vm5 = vcmask 261120   ;;  %vm410_vm6 = vcmask 64512   ;;  %vm437_vm7 = vcmask 916480  }
   0xf   : > { %s11832_s25 = smov (!%p269_p3, %s6811_s25), 1  ;;  %s7841_s10 = smov 32   ;;  %vm463_vm8 = vcmask 719872   ;;  %vm489_vm9 = vcmask 523264   ;;  %vm11493_vm10 = vcmask 1039360   ;;  %vm752_vm11 = vcmask 588800  }
  0x10   : > { %s7690_s26 = smul.u32 28, %s11832_s25  ;;  %s7842_s11 = smov 8   ;;  %vm11494_vm12 = vcmask 1031168   ;;  %vm11492_vm13 = vcmask 1022976   ;;  %vm11491_vm14 = vcmask 1014784   ;;  %vm2543_vm15 = vcmask 1006592  }
  0x11   : > { %s7843_s12 = smov 112   ;;  %s7844_s13 = smov 88  }
  0x12   : > { %s7925_s29 = scalar_lea.vmem %s11471_s0, %s7690_s26  ;;  %s7845_s14 = smov 64  }
  0x13   : > { %v289_v0 = vld [vmem:[%s7925_s29 + $0x10] sm:$0xf]  ;;  %v7929_v1 = vld [vmem:[%s7925_s29] sm:$0xff]  ;;  %v7932_v2 = vld [vmem:[%s7925_s29 + $0x8] sm:$0xff]  ;;  %s7846_s15 = smov 127   ;;  %s7848_s16 = smov 126  }
  0x14   : > { %297 = vrot.lane.b32.xlu1 %v289_v0, %s7838_s30  ;;  %293 = vrot.lane.b32.xlu0 %v7929_v1, %s7838_s30  ;;  %v282_v3 = vld [vmem:[%s7925_s29 + $0x10] sm:$0xf]  ;;  %v421_v6 = vld [vmem:[%s7925_s29 + $0x4] sm:$0xff]  ;;  %s7849_s17 = smov 125   ;;  %s7850_s18 = smov 124  }
  0x15   : > { %v316_v4 = vld [vmem:[%s7925_s29 + $0x10] sm:$0xf]  ;;  %286 = vst.msk [vmem:[#allocation2 + $0x10] sm:$0xf] %vm285_vm0, %v282_v3  ;;  %v423_v7 = vld [vmem:[%s7925_s29 + $0x14] sm:$0xf] }
  0x16   : > { %v342_v5 = vld [vmem:[%s7925_s29 + $0x10] sm:$0xff]  ;;  %s7852_s23 = smov 122   ;;  %s7856_s27 = smov 28  }
  0x17   : > { %v422_v8 = vld [vmem:[%s7925_s29 + $0xc] sm:$0xff]  ;;  %v449_v9 = vld [vmem:[%s7925_s29 + $0x14] sm:$0xf]  ;;  %s7857_s28 = smov 12   ;;  %s7862_s19 = smov 92  }
  0x18   : > { %320 = vrot.lane.b32.xlu1 %v7929_v1, %s7839_s8  ;;  %295 = vrot.lane.b32.xlu0 %v7932_v2, %s7838_s30  ;;  %v475_v10 = vld [vmem:[%s7925_s29 + $0x14] sm:$0xff]  ;;  %s7851_s29 = smov 123  }
  0x1c   : > { %324 = vrot.lane.b32.xlu1 %v316_v4, %s7839_s8  ;;  %322 = vrot.lane.b32.xlu0 %v7932_v2, %s7839_s8 }
  0x20   : > { %348 = vrot.lane.b32.xlu1 %v7932_v2, %s7840_s9  ;;  %346 = vrot.lane.b32.xlu0 %v7929_v1, %s7840_s9 }
  0x24   : > { %373 = vrot.lane.b32.xlu1 %v7929_v1, %s7841_s10  ;;  %350 = vrot.lane.b32.xlu0 %v342_v5, %s7840_s9 }
  0x28   : > { %377 = vrot.lane.b32.xlu1 %v342_v5, %s7841_s10  ;;  %375 = vrot.lane.b32.xlu0 %v7932_v2, %s7841_s10 }
  0x2c   : > { %402 = vrot.lane.b32.xlu1 %v7932_v2, %s7842_s11  ;;  %400 = vrot.lane.b32.xlu0 %v7929_v1, %s7842_s11 }
  0x30   : > { %427 = vrot.lane.b32.xlu1 %v421_v6, %s7843_s12  ;;  %404 = vrot.lane.b32.xlu0 %v342_v5, %s7842_s11  ;;  %s7858_s11 = smov 4  }
  0x34   : > { %431 = vrot.lane.b32.xlu1 %v423_v7, %s7843_s12  ;;  %429 = vrot.lane.b32.xlu0 %v422_v8, %s7843_s12  ;;  %s7854_s12 = smov 120  }
  0x38   : > { %455 = vrot.lane.b32.xlu1 %v422_v8, %s7844_s13  ;;  %453 = vrot.lane.b32.xlu0 %v421_v6, %s7844_s13 }
  0x3c   : > { %479 = vrot.lane.b32.xlu1 %v421_v6, %s7845_s14  ;;  %457 = vrot.lane.b32.xlu0 %v449_v9, %s7844_s13  ;;  %s7860_s13 = smov 20  }
  0x40   : > { %483 = vrot.lane.b32.xlu1 %v475_v10, %s7845_s14  ;;  %481 = vrot.lane.b32.xlu0 %v422_v8, %s7845_s14  ;;  %s7861_s14 = smov 84  }
  0x86   : > { %v298_v11 = vpop.permute.xlu1 %297  ;;  %v294_v12 = vpop.permute.xlu0 %293 }
  0x87   : > { %313 = vst.msk [vmem:[#allocation2 + $0x24] sm:$0xf] %vm285_vm0, %v298_v11  ;;  %v301_v15 = vrot.slane %v298_v11, 4  ;;  %v299_v16 = vrot.slane %v294_v12, 4 }
  0x8a   : > { %v321_v13 = vpop.permute.xlu1 %320  ;;  %v296_v14 = vpop.permute.xlu0 %295 }
  0x8b   : > { %v300_v17 = vrot.slane %v296_v14, 4  ;;  %v326_v24 = vrot.slane %v321_v13, 4 }
  0x8d   : > { %v303_v18 = vsel %vm302_vm1, %v299_v16, %v300_v17  ;;  %v306_v19 = vsel %vm302_vm1, %v300_v17, %v301_v15 }
  0x8e   : > { %v305_v20 = vsel %vm304_vm2, %v294_v12, %v303_v18  ;;  %v7970_v21 = vsel %vm304_vm2, %v296_v14, %v306_v19  ;;  %v325_v22 = vpop.permute.xlu1 %324  ;;  %v323_v23 = vpop.permute.xlu0 %322 }
  0x8f   : > { %v7974_v25 = vcombine.low %v7932_v2, %v7970_v21  ;;  %v328_v26 = vrot.slane %v325_v22, 4  ;;  %339 = vst.msk [vmem:[#allocation2 + $0x38] sm:$0xf] %vm285_vm0, %v325_v22  ;;  %v327_v27 = vrot.slane %v323_v23, 4  ;;  %v7978_v28 = vcombine.high %v7929_v1, %v305_v20 }
  0x90   : > { %v7989_v37 = vcombine.low %v7929_v1, %v305_v20 }
  0x91   : > { %v329_v29 = vsel %vm302_vm1, %v326_v24, %v327_v27  ;;  %v332_v30 = vsel %vm302_vm1, %v327_v27, %v328_v26  ;;  %665 = vrot.lane.b32.xlu1 %v7974_v25, %s7846_s15  ;;  %663 = vrot.lane.b32.xlu0 %v7978_v28, %s7846_s15 }
  0x92   : > { %v331_v31 = vsel %vm330_vm3, %v321_v13, %v329_v29  ;;  %v333_v32 = vsel %vm330_vm3, %v323_v23, %v332_v30  ;;  %v349_v33 = vpop.permute.xlu1 %348  ;;  %v347_v34 = vpop.permute.xlu0 %346 }
  0x93   : > { %v353_v35 = vrot.slane %v349_v33, 4  ;;  %v352_v36 = vrot.slane %v347_v34, 4 }
  0x95   : > { %v355_v38 = vsel %vm302_vm1, %v352_v36, %v353_v35  ;;  %661 = vrot.lane.b32.xlu0 %v7989_v37, %s7846_s15 }
  0x96   : > { %v357_v39 = vsel %vm356_vm4, %v347_v34, %v355_v38  ;;  %v374_v40 = vpop.permute.xlu1 %373  ;;  %v351_v41 = vpop.permute.xlu0 %350 }
  0x97   : > { %v7995_v42 = vcombine.high %v331_v31, %v357_v39  ;;  %v354_v43 = vrot.slane %v351_v41, 4  ;;  %v8001_v46 = vcombine.low %v331_v31, %v357_v39  ;;  %v379_v47 = vrot.slane %v374_v40, 4 }
  0x99   : > { %v358_v44 = vsel %vm302_vm1, %v353_v35, %v354_v43  ;;  %v360_v45 = vsel %vm356_vm4, %v351_v41, %v354_v43  ;;  %673 = vrot.lane.b32.xlu1 %v7995_v42, %s7846_s15 }
  0x9a   : > { %v359_v48 = vsel %vm356_vm4, %v349_v33, %v358_v44  ;;  %366 = vst.msk [vmem:[#allocation2 + $0x4c] sm:$0xf] %vm285_vm0, %v360_v45  ;;  %v378_v49 = vpop.permute.xlu1 %377  ;;  %v376_v50 = vpop.permute.xlu0 %375 }
  0x9b   : > { %v381_v51 = vrot.slane %v378_v49, 4  ;;  %v380_v52 = vrot.slane %v376_v50, 4  ;;  %v8005_v53 = vcombine.low %v333_v32, %v359_v48  ;;  %v8007_v54 = vcombine.high %v333_v32, %v359_v48 }
  0x9d   : > { %v387_v55 = vsel %vm383_vm5, %v378_v49, %v381_v51  ;;  %v382_v56 = vsel %vm302_vm1, %v379_v47, %v380_v52  ;;  %v385_v57 = vsel %vm302_vm1, %v380_v52, %v381_v51  ;;  %671 = vrot.lane.b32.xlu1 %v8001_v46, %s7846_s15  ;;  %675 = vrot.lane.b32.xlu0 %v8005_v53, %s7846_s15  ;;  %v11479_v51 = vmov 0  }
  0x9e   : > { %393 = vst.msk [vmem:[#allocation2 + $0x60] sm:$0xf] %vm285_vm0, %v387_v55  ;;  %v384_v58 = vsel %vm383_vm5, %v374_v40, %v382_v56  ;;  %v386_v59 = vsel %vm383_vm5, %v376_v50, %v385_v57  ;;  %v403_v60 = vpop.permute.xlu1 %402  ;;  %v401_v61 = vpop.permute.xlu0 %400  ;;  %4484 = vst [vmem:[#allocation5] sm:$0xff] %v11479_v51  ;;  %813 = vmatprep.mubr.bf16.mxu0 %v11479_v51  ;;  %886 = vmatprep.mubr.bf16.mxu1 %v11479_v51 }
  0x9f   : > { %v407_v62 = vrot.slane %v403_v60, 4  ;;  %v406_v63 = vrot.slane %v401_v61, 4  ;;  %4485 = vst [vmem:[#allocation5 + $0x8] sm:$0xff] %v11479_v51  ;;  %4486 = vst [vmem:[#allocation5 + $0x10] sm:$0xff] %v11479_v51  ;;  %7733 = vset.pattern.permute.xlu1 %v11479_v51  ;;  %7732 = vset.pattern.permute.xlu0 %v11479_v51 }
  0xa0   : > { %4487 = vst [vmem:[#allocation5 + $0x18] sm:$0xff] %v11479_v51  ;;  %4488 = vst [vmem:[#allocation5 + $0x20] sm:$0xff] %v11479_v51 }
  0xa1   : > { %v409_v0 = vsel %vm302_vm1, %v406_v63, %v407_v62  ;;  %4492 = vst [vmem:[#allocation5 + $0x38] sm:$0xff] %v11479_v51  ;;  %4493 = vst [vmem:[#allocation5 + $0x40] sm:$0xff] %v11479_v51  ;;  %v516_v63 = vld [vmem:[#allocation2 + $0x38] sm:$0xf] }
  0xa2   : > { %v411_v1 = vsel %vm410_vm6, %v401_v61, %v409_v0  ;;  %v428_v3 = vpop.permute.xlu1 %427  ;;  %v405_v4 = vpop.permute.xlu0 %404  ;;  %4494 = vst [vmem:[#allocation5 + $0x48] sm:$0xff] %v11479_v51  ;;  %4495 = vst [vmem:[#allocation5 + $0x50] sm:$0xff] %v11479_v51  ;;  %v519_v61 = vld [vmem:[#allocation2 + $0x4c] sm:$0xf] }
  0xa3   : > { %v8020_v5 = vcombine.high %v384_v58, %v411_v1  ;;  %v408_v6 = vrot.slane %v405_v4, 4  ;;  %v8025_v9 = vcombine.low %v384_v58, %v411_v1  ;;  %v433_v10 = vrot.slane %v428_v3, 4  ;;  %v8085_v58 = vld [vmem:[#allocation2 + $0x10] ss:$20 sps:$4 sm:$0xff]  }
  0xa4   : > { %v8097_v1 = vcombine.low %v516_v63, %v519_v61 }
  0xa5   : > { %v412_v7 = vsel %vm302_vm1, %v407_v62, %v408_v6  ;;  %v414_v8 = vsel %vm410_vm6, %v405_v4, %v408_v6  ;;  %683 = vrot.lane.b32.xlu0 %v8020_v5, %s7846_s15  ;;  %v522_v62 = vld [vmem:[#allocation2 + $0x60] sm:$0xf] }
  0xa6   : > { %v413_v11 = vsel %vm410_vm6, %v403_v60, %v412_v7  ;;  %420 = vst.msk [vmem:[#allocation2 + $0x74] sm:$0xf] %vm285_vm0, %v414_v8  ;;  %v432_v12 = vpop.permute.xlu1 %431  ;;  %v430_v13 = vpop.permute.xlu0 %429  ;;  %v8153_v8 = vcombine.high %v7932_v2, %v7970_v21  ;;  %vm3339_vm6 = vcmask 990208  }
  0xa7   : > { %v435_v14 = vrot.slane %v432_v12, 4  ;;  %446 = vst.msk [vmem:[#allocation2 + $0x88] sm:$0xf] %vm285_vm0, %v432_v12  ;;  %v434_v15 = vrot.slane %v430_v13, 4  ;;  %v8029_v16 = vcombine.low %v386_v59, %v413_v11  ;;  %v8031_v17 = vcombine.high %v386_v59, %v413_v11 }
  0xa9   : > { %v436_v18 = vsel %vm302_vm1, %v433_v10, %v434_v15  ;;  %v439_v19 = vsel %vm302_vm1, %v434_v15, %v435_v14  ;;  %685 = vrot.lane.b32.xlu1 %v8029_v16, %s7846_s15  ;;  %681 = vrot.lane.b32.xlu0 %v8025_v9, %s7846_s15 }
  0xaa   : > { %v438_v20 = vsel %vm437_vm7, %v428_v3, %v436_v18  ;;  %v440_v22 = vsel %vm437_vm7, %v430_v13, %v439_v19  ;;  %v456_v23 = vpop.permute.xlu1 %455  ;;  %v454_v24 = vpop.permute.xlu0 %453  ;;  %vm3737_vm7 = vcmask 982016  }
  0xab   : > { %v460_v26 = vrot.slane %v456_v23, 4  ;;  %v459_v27 = vrot.slane %v454_v24, 4 }
  0xad   : > { %v462_v29 = vsel %vm302_vm1, %v459_v27, %v460_v26  ;;  %v525_v59 = vld [vmem:[#allocation2 + $0x74] sm:$0xf] }
  0xae   : > { %v464_v30 = vsel %vm463_vm8, %v454_v24, %v462_v29  ;;  %v480_v31 = vpop.permute.xlu1 %479  ;;  %v458_v32 = vpop.permute.xlu0 %457  ;;  %v8095_v0 = vcombine.low %v522_v62, %v525_v59  ;;  %v528_v4 = vld [vmem:[#allocation2 + $0x88] sm:$0xf] }
  0xaf   : > { %v8040_v33 = vcombine.high %v438_v20, %v464_v30  ;;  %v461_v34 = vrot.slane %v458_v32, 4  ;;  %472 = vst.msk [vmem:[#allocation2 + $0x9c] sm:$0xf] %vm285_vm0, %v458_v32  ;;  %v485_v35 = vrot.slane %v480_v31, 4  ;;  %v8046_v38 = vcombine.low %v438_v20, %v464_v30  ;;  %v8286_v59 = vld [vmem:[%s11472_s1 + $0x28] sm:$0xff]  }
  0xb1   : > { %v465_v36 = vsel %vm302_vm1, %v460_v26, %v461_v34  ;;  %693 = vrot.lane.b32.xlu1 %v8040_v33, %s7846_s15 }
  0xb2   : > { %v466_v39 = vsel %vm463_vm8, %v456_v23, %v465_v36  ;;  %v484_v40 = vpop.permute.xlu1 %483  ;;  %v482_v41 = vpop.permute.xlu0 %481  ;;  %vm4661_vm8 = vcmask 179248  }
  0xb3   : > { %v487_v43 = vrot.slane %v484_v40, 4  ;;  %v486_v44 = vrot.slane %v482_v41, 4  ;;  %v8048_v45 = vcombine.low %v440_v22, %v466_v39  ;;  %v8050_v47 = vcombine.high %v440_v22, %v466_v39 }
  0xb5   : > { %v493_v48 = vsel %vm489_vm9, %v484_v40, %v487_v43  ;;  %v488_v49 = vsel %vm302_vm1, %v485_v35, %v486_v44  ;;  %v491_v50 = vsel %vm302_vm1, %v486_v44, %v487_v43  ;;  %691 = vrot.lane.b32.xlu1 %v8046_v38, %s7846_s15  ;;  %695 = vrot.lane.b32.xlu0 %v8048_v45, %s7846_s15 }
  0xb6   : > { %499 = vst.msk [vmem:[#allocation2 + $0xb0] sm:$0xf] %vm285_vm0, %v493_v48  ;;  %v490_v52 = vsel %vm489_vm9, %v480_v31, %v488_v49  ;;  %v8071_v55 = vsel %vm489_vm9, %v482_v41, %v491_v50  ;;  %v531_v3 = vld [vmem:[#allocation2 + $0x9c] sm:$0xf]  ;;  %v8259_v48 = vld [vmem:[%s11472_s1 + $0x20] sm:$0xff]   ;;  %vm2941_vm0 = vcmask 998400  }
  0xb7   : > { %v8075_v56 = vcombine.high %v490_v52, %v490_v52  ;;  %v8078_v57 = vcombine.low %v490_v52, %v490_v52  ;;  %v8089_v60 = vcombine.low %v8071_v55, %v8071_v55  ;;  %v8105_v7 = vcombine.low %v528_v4, %v531_v3  ;;  %v8314_v4 = vld [vmem:[%s11472_s1 + $0x30] sm:$0xff]  }
  0xb8   : > { %v8196_v18 = vcombine.high %v8071_v55, %v8071_v55 }
  0xb9   : > { %703 = vrot.lane.b32.xlu1 %v8075_v56, %s7846_s15  ;;  %701 = vrot.lane.b32.xlu0 %v8078_v57, %s7846_s15 }
  0xbd   : > { %669 = vrot.lane.b32.xlu1 %v8085_v58, %s7846_s15  ;;  %705 = vrot.lane.b32.xlu0 %v8089_v60, %s7846_s15  ;;  %v8103_v6 = vld [vmem:[#allocation2 + $0xb0] ss:$0 sps:$4 sm:$0xff]  }
  0xc1   : > { %689 = vrot.lane.b32.xlu1 %v8095_v0, %s7846_s15  ;;  %679 = vrot.lane.b32.xlu0 %v8097_v1, %s7846_s15 }
  0xc5   : > { %709 = vrot.lane.b32.xlu1 %v8103_v6, %s7846_s15  ;;  %699 = vrot.lane.b32.xlu0 %v8105_v7, %s7846_s15 }
  0xc9   : > { %1307 = vrot.lane.b32.xlu1 %v8085_v58, %s7848_s16  ;;  %1317 = vrot.lane.b32.xlu0 %v8097_v1, %s7848_s16 }
  0xcd   : > { %1327 = vrot.lane.b32.xlu1 %v8095_v0, %s7848_s16  ;;  %1337 = vrot.lane.b32.xlu0 %v8105_v7, %s7848_s16 }
  0xd1   : > { %1347 = vrot.lane.b32.xlu1 %v8103_v6, %s7848_s16  ;;  %1301 = vrot.lane.b32.xlu0 %v7978_v28, %s7848_s16 }
  0xd5   : > { %1303 = vrot.lane.b32.xlu1 %v7974_v25, %s7848_s16  ;;  %1299 = vrot.lane.b32.xlu0 %v7989_v37, %s7848_s16 }
  0xd9   : > { %1311 = vrot.lane.b32.xlu1 %v7995_v42, %s7848_s16  ;;  %1313 = vrot.lane.b32.xlu0 %v8005_v53, %s7848_s16 }
  0xdd   : > { %1309 = vrot.lane.b32.xlu1 %v8001_v46, %s7848_s16  ;;  %1321 = vrot.lane.b32.xlu0 %v8020_v5, %s7848_s16 }
  0xe1   : > { %1323 = vrot.lane.b32.xlu1 %v8029_v16, %s7848_s16  ;;  %1319 = vrot.lane.b32.xlu0 %v8025_v9, %s7848_s16 }
  0xe5   : > { %1331 = vrot.lane.b32.xlu1 %v8040_v33, %s7848_s16  ;;  %1333 = vrot.lane.b32.xlu0 %v8048_v45, %s7848_s16 }
  0xe9   : > { %1329 = vrot.lane.b32.xlu1 %v8046_v38, %s7848_s16  ;;  %1339 = vrot.lane.b32.xlu0 %v8078_v57, %s7848_s16 }
  0xed   : > { %1341 = vrot.lane.b32.xlu1 %v8075_v56, %s7848_s16  ;;  %1343 = vrot.lane.b32.xlu0 %v8089_v60, %s7848_s16 }
  0xf1   : > { %1699 = vrot.lane.b32.xlu1 %v7978_v28, %s7849_s17  ;;  %667 = vrot.lane.b32.xlu0 %v8153_v8, %s7846_s15 }
  0xf5   : > { %1697 = vrot.lane.b32.xlu1 %v7989_v37, %s7849_s17  ;;  %1701 = vrot.lane.b32.xlu0 %v7974_v25, %s7849_s17 }
  0xf9   : > { %1709 = vrot.lane.b32.xlu1 %v7995_v42, %s7849_s17  ;;  %677 = vrot.lane.b32.xlu0 %v8007_v54, %s7846_s15 }
  0xfd   : > { %1707 = vrot.lane.b32.xlu1 %v8001_v46, %s7849_s17  ;;  %1711 = vrot.lane.b32.xlu0 %v8005_v53, %s7849_s17 }
 0x101   : > { %1719 = vrot.lane.b32.xlu1 %v8020_v5, %s7849_s17  ;;  %687 = vrot.lane.b32.xlu0 %v8031_v17, %s7846_s15 }
 0x103   : > { %v8175_v2 = vpop.permute.xlu1 %665  ;;  %v664_v21 = vpop.permute.xlu0 %663 }
 0x104   : > { %v713_v10 = vsel %vm11493_vm10, %v664_v21, %v8175_v2 }
 0x105   : > { %1717 = vrot.lane.b32.xlu1 %v8025_v9, %s7849_s17  ;;  %781 = vmatprep.subr.bf16.mxu0 %v713_v10 }
 0x106   : > { %1721 = vrot.lane.b32.xlu0 %v8029_v16, %s7849_s17 }
 0x107   : > { %v662_v11 = vpop.permute.xlu0 %661 }
 0x108   : > { %v712_v12 = vsel %vm11493_vm10, %v662_v11, %v664_v21 }
 0x109   : > { %1729 = vrot.lane.b32.xlu1 %v8040_v33, %s7849_s17  ;;  %782 = vmatpush1.bf16.msra.mxu0 %v712_v12 }
 0x10a   : > { %697 = vrot.lane.b32.xlu0 %v8050_v47, %s7846_s15 }
 0x10b   : > { %v674_v13 = vpop.permute.xlu1 %673 }
 0x10d   : > { %1727 = vrot.lane.b32.xlu1 %v8046_v38, %s7849_s17 }
 0x10e   : > { %1731 = vrot.lane.b32.xlu0 %v8048_v45, %s7849_s17 }
 0x10f   : > { %v672_v14 = vpop.permute.xlu1 %671  ;;  %v8192_v15 = vpop.permute.xlu0 %675 }
 0x110   : > { %v717_v19 = vsel %vm11493_vm10, %v674_v13, %v8192_v15  ;;  %v716_v20 = vsel %vm11493_vm10, %v672_v14, %v674_v13  ;;  %v8344_v14 = vld [vmem:[%s11472_s1 + $0x38] sm:$0xff]  }
 0x111   : > { %1737 = vrot.lane.b32.xlu1 %v8078_v57, %s7849_s17  ;;  %783 = vmatprep.subr.bf16.mxu0 %v717_v19 }
 0x112   : > { %707 = vrot.lane.b32.xlu0 %v8196_v18, %s7846_s15  ;;  %784 = vmatpush1.bf16.msra.mxu0 %v716_v20 }
 0x115   : > { %1741 = vrot.lane.b32.xlu1 %v8089_v60, %s7849_s17 }
 0x116   : > { %1739 = vrot.lane.b32.xlu0 %v8075_v56, %s7849_s17 }
 0x117   : > { %v684_v22 = vpop.permute.xlu0 %683 }
 0x119   : > { %1715 = vrot.lane.b32.xlu1 %v8097_v1, %s7849_s17 }
 0x11a   : > { %1705 = vrot.lane.b32.xlu0 %v8085_v58, %s7849_s17 }
 0x11b   : > { %v8213_v23 = vpop.permute.xlu1 %685  ;;  %v682_v24 = vpop.permute.xlu0 %681 }
 0x11c   : > { %v721_v26 = vsel %vm11493_vm10, %v684_v22, %v8213_v23  ;;  %v720_v27 = vsel %vm11493_vm10, %v682_v24, %v684_v22 }
 0x11d   : > { %1735 = vrot.lane.b32.xlu1 %v8105_v7, %s7849_s17  ;;  %785 = vmatprep.subr.bf16.mxu0 %v721_v26 }
 0x11e   : > { %1725 = vrot.lane.b32.xlu0 %v8095_v0, %s7849_s17  ;;  %786 = vmatpush1.bf16.msra.mxu0 %v720_v27 }
 0x121   : > { %2097 = vrot.lane.b32.xlu1 %v7978_v28, %s7850_s18 }
 0x122   : > { %1745 = vrot.lane.b32.xlu0 %v8103_v6, %s7849_s17 }
 0x123   : > { %v694_v29 = vpop.permute.xlu1 %693 }
 0x125   : > { %2095 = vrot.lane.b32.xlu1 %v7989_v37, %s7850_s18 }
 0x126   : > { %2099 = vrot.lane.b32.xlu0 %v7974_v25, %s7850_s18 }
 0x127   : > { %v692_v30 = vpop.permute.xlu1 %691  ;;  %v8230_v31 = vpop.permute.xlu0 %695 }
 0x128   : > { %v725_v32 = vsel %vm11493_vm10, %v694_v29, %v8230_v31  ;;  %v724_v34 = vsel %vm11493_vm10, %v692_v30, %v694_v29 }
 0x129   : > { %2109 = vrot.lane.b32.xlu1 %v8005_v53, %s7850_s18  ;;  %787 = vmatprep.subr.bf16.mxu0 %v725_v32 }
 0x12a   : > { %2107 = vrot.lane.b32.xlu0 %v7995_v42, %s7850_s18  ;;  %788 = vmatpush1.bf16.msra.mxu0 %v724_v34 }
 0x12b   : > { %v704_v35 = vpop.permute.xlu1 %703  ;;  %v702_v36 = vpop.permute.xlu0 %701 }
 0x12c   : > { %v728_v39 = vsel %vm11493_vm10, %v702_v36, %v704_v35 }
 0x12d   : > { %2117 = vrot.lane.b32.xlu1 %v8020_v5, %s7850_s18  ;;  %v767_v44 = vsel %vm302_vm1, %v728_v39, 0 }
 0x12e   : > { %2105 = vrot.lane.b32.xlu0 %v8001_v46, %s7850_s18 }
 0x12f   : > { %v8244_v40 = vpop.permute.xlu1 %669  ;;  %v8246_v41 = vpop.permute.xlu0 %705 }
 0x130   : > { %v729_v43 = vsel %vm11493_vm10, %v704_v35, %v8246_v41 }
 0x131   : > { %2115 = vrot.lane.b32.xlu1 %v8025_v9, %s7850_s18  ;;  %6856 = vmatprep.subr.msk.bf16.mxu0 %vm302_vm1, %v729_v43 }
 0x132   : > { %2119 = vrot.lane.b32.xlu0 %v8029_v16, %s7850_s18  ;;  %790 = vmatpush1.bf16.msra.mxu0 %v767_v44 }
 0x133   : > { %v8261_v49 = vpop.permute.xlu1 %689  ;;  %7187 = vmatprep.subr.bf16.mxu0 %v8244_v40  ;;  %v8264_v50 = vpop.permute.xlu0 %679 }
 0x135   : > { %2129 = vrot.lane.b32.xlu1 %v8048_v45, %s7850_s18  ;;  %6857 = vmatmul.mubr.msk.bf16.vlgmr.msra.gmra.mrb[0].mxu0 %vm752_vm11, %v8259_v48 }
 0x136   : > { %2127 = vrot.lane.b32.xlu0 %v8040_v33, %s7850_s18  ;;  %7188 = vmatpush3.bf16.msra.mxu0 %v8244_v40 }
 0x137   : > { %v8273_v52 = vpop.permute.xlu1 %709  ;;  %823 = vmatprep.mubr.bf16.mxu0 %v11479_v51  ;;  %7189 = vmatprep.subr.bf16.mxu0 %v8264_v50  ;;  %v8277_v55 = vpop.permute.xlu0 %699 }
 0x138   : > { %v779_v11 = vsel %vm302_vm1, %v8273_v52, 0 }
 0x139   : > { %2125 = vrot.lane.b32.xlu1 %v8046_v38, %s7850_s18 }
 0x13a   : > { %1305 = vrot.lane.b32.xlu0 %v8153_v8, %s7848_s16  ;;  %7190 = vmatpush3.bf16.msra.mxu0 %v8264_v50 }
 0x13b   : > { %v8289_v61 = vpop.permute.xlu1 %1307  ;;  %7191 = vmatprep.subr.bf16.mxu0 %v8261_v49  ;;  %v8292_v62 = vpop.permute.xlu0 %1317 }
 0x13d   : > { %2137 = vrot.lane.b32.xlu1 %v8075_v56, %s7850_s18  ;;  %6858 = vmatmul.mubr.msk.bf16.gmra.mrb[4].mxu0 %vm752_vm11, %v8286_v59 }
 0x13e   : > { %2135 = vrot.lane.b32.xlu0 %v8078_v57, %s7850_s18  ;;  %7192 = vmatpush3.bf16.msra.mxu0 %v8261_v49 }
 0x13f   : > { %v8301_v63 = vpop.permute.xlu1 %1327  ;;  %833 = vmatprep.mubr.bf16.mxu0 %v11479_v51  ;;  %7193 = vmatprep.subr.bf16.mxu0 %v8277_v55  ;;  %v8305_v3 = vpop.permute.xlu0 %1337 }
 0x141   : > { %1315 = vrot.lane.b32.xlu1 %v8007_v54, %s7848_s16 }
 0x142   : > { %2139 = vrot.lane.b32.xlu0 %v8089_v60, %s7850_s18  ;;  %7194 = vmatpush3.bf16.msra.mxu0 %v8277_v55 }
 0x143   : > { %v8317_v21 = vpop.permute.xlu1 %1347  ;;  %7681 = vmatprep.subr.msk.bf16.mxu0 %vm302_vm1, %v8273_v52  ;;  %v8321_v10 = vpop.permute.xlu0 %1301 }
 0x144   : > { %11526 = vst [vmem:[#allocation7_spill] sm:$0xff] %v8317_v21 }
 0x145   : > { %1335 = vrot.lane.b32.xlu1 %v8050_v47, %s7848_s16  ;;  %6859 = vmatmul.mubr.msk.bf16.gmra.mrb[8].mxu0 %vm752_vm11, %v8314_v4 }
 0x146   : > { %1325 = vrot.lane.b32.xlu0 %v8031_v17, %s7848_s16  ;;  %7196 = vmatpush3.bf16.msra.mxu0 %v779_v11 }
 0x147   : > { %v8331_v12 = vpop.permute.xlu1 %1303  ;;  %843 = vmatprep.mubr.bf16.mxu0 %v11479_v51  ;;  %1059 = vmatprep.subr.bf16.mxu0 %v7978_v28  ;;  %v8335_v13 = vpop.permute.xlu0 %1299 }
 0x149   : > { %2103 = vrot.lane.b32.xlu1 %v8085_v58, %s7850_s18 }
 0x14a   : > { %1345 = vrot.lane.b32.xlu0 %v8196_v18, %s7848_s16 }
 0x14b   : > { %v8346_v19 = vpop.permute.xlu1 %1311  ;;  %v8348_v20 = vpop.permute.xlu0 %1313 }
 0x14d   : > { %2123 = vrot.lane.b32.xlu1 %v8095_v0, %s7850_s18  ;;  %6860 = vmatmul.mubr.msk.bf16.gmra.mrb[12].mxu0 %vm752_vm11, %v8344_v14 }
 0x14e   : > { %2113 = vrot.lane.b32.xlu0 %v8097_v1, %s7850_s18  ;;  %7197 = vmatprep.mubr.msk.bf16.mxu0 %vm752_vm11, %v8259_v48 }
 0x14f   : > { %v8356_v22 = vpop.permute.xlu1 %1309  ;;  %v8360_v24 = vpop.permute.xlu0 %1321 }
 0x151   : > { %1703 = vrot.lane.b32.xlu1 %v8153_v8, %s7849_s17 }
 0x152   : > { %2133 = vrot.lane.b32.xlu0 %v8105_v7, %s7850_s18 }
 0x153   : > { %v8366_v26 = vpop.permute.xlu1 %1323  ;;  %v8368_v27 = vpop.permute.xlu0 %1319 }
 0x155   : > { %1713 = vrot.lane.b32.xlu1 %v8007_v54, %s7849_s17  ;;  %7198 = vmatmul.mubr.msk.bf16.vlgmr.msra.gmra.mrb[16].mxu0 %vm752_vm11, %v8286_v59 }
 0x156   : > { %2143 = vrot.lane.b32.xlu0 %v8103_v6, %s7850_s18  ;;  %1060 = vmatpush1.bf16.msra.mxu0 %v7989_v37 }
 0x157   : > { %v8377_v29 = vpop.permute.xlu1 %1331  ;;  %7201 = vmatprep.mubr.msk.bf16.mxu0 %vm752_vm11, %v8314_v4  ;;  %1061 = vmatprep.subr.bf16.mxu0 %v7995_v42  ;;  %v8382_v30 = vpop.permute.xlu0 %1333 }
 0x159   : > { %2497 = vrot.lane.b32.xlu1 %v7974_v25, %s7851_s29 }
 0x15a   : > { %2495 = vrot.lane.b32.xlu0 %v7978_v28, %s7851_s29  ;;  %1062 = vmatpush1.bf16.msra.mxu0 %v8001_v46 }
 0x15b   : > { %v8389_v32 = vpop.permute.xlu1 %1329  ;;  %1063 = vmatprep.subr.bf16.mxu0 %v8020_v5  ;;  %v8392_v34 = vpop.permute.xlu0 %1339 }
 0x15d   : > { %1723 = vrot.lane.b32.xlu1 %v8031_v17, %s7849_s17  ;;  %7202 = vmatmul.mubr.msk.bf16.gmra.mrb[20].mxu0 %vm752_vm11, %v8344_v14 }
 0x15e   : > { %2493 = vrot.lane.b32.xlu0 %v7989_v37, %s7851_s29  ;;  %1064 = vmatpush1.bf16.msra.mxu0 %v8025_v9 }
 0x15f   : > { %v8401_v35 = vpop.permute.xlu1 %1341  ;;  %1091 = vmatprep.mubr.bf16.mxu0 %v11479_v51  ;;  %1065 = vmatprep.subr.bf16.mxu0 %v8040_v33  ;;  %v8405_v36 = vpop.permute.xlu0 %1343  ;;  %v1045_v51 = vsel %vm302_vm1, %v8078_v57, 0 }
 0x161   : > { %2507 = vrot.lane.b32.xlu1 %v8005_v53, %s7851_s29 }
 0x162   : > { %2505 = vrot.lane.b32.xlu0 %v7995_v42, %s7851_s29  ;;  %1066 = vmatpush1.bf16.msra.mxu0 %v8046_v38 }
 0x163   : > { %v8412_v39 = vpop.permute.xlu1 %1699  ;;  %6874 = vmatprep.subr.msk.bf16.mxu0 %vm302_vm1, %v8075_v56  ;;  %v668_v43 = vpop.permute.xlu0 %667 }
 0x164   : > { %11527 = vst [vmem:[#allocation8_spill] sm:$0xff] %v8412_v39  ;;  %v715_v44 = vsel %vm11493_vm10, %v668_v43, %v8244_v40  ;;  %v714_v11 = vsel %vm11493_vm10, %v8175_v2, %v668_v43  ;;  %v8429_v39 = vld [vmem:[%s11472_s1] sm:$0xff]  }
 0x165   : > { %1733 = vrot.lane.b32.xlu1 %v8050_v47, %s7849_s17  ;;  %854 = vmatprep.subr.bf16.mxu1 %v715_v44 }
 0x166   : > { %2503 = vrot.lane.b32.xlu0 %v8001_v46, %s7851_s29  ;;  %1068 = vmatpush1.bf16.msra.mxu0 %v1045_v51  ;;  %v11530_v51 = vmov 0  }
 0x167   : > { %855 = vmatpush1.bf16.msra.mxu1 %v714_v11  ;;  %v8431_v21 = vpop.permute.xlu1 %1697  ;;  %7205 = vmatprep.subr.bf16.mxu0 %v8085_v58  ;;  %v8434_v40 = vpop.permute.xlu0 %1701 }
 0x168   : > { %11528 = vst [vmem:[#allocation9_spill] sm:$0xff] %v8431_v21 }
 0x169   : > { %2517 = vrot.lane.b32.xlu1 %v8029_v16, %s7851_s29  ;;  %6875 = vmatmul.mubr.msk.bf16.vlgmr.msra.gmra.mrb[0].mxu0 %vm752_vm11, %v8429_v39 }
 0x16a   : > { %2515 = vrot.lane.b32.xlu0 %v8020_v5, %s7851_s29  ;;  %7206 = vmatpush3.bf16.msra.mxu0 %v8085_v58 }
 0x16b   : > { %v8443_v2 = vpop.permute.xlu1 %1709  ;;  %1101 = vmatprep.mubr.bf16.mxu0 %v11530_v51  ;;  %7207 = vmatprep.subr.bf16.mxu0 %v8097_v1  ;;  %v678_v43 = vpop.permute.xlu0 %677 }
 0x16c   : > { %11529 = vst [vmem:[#allocation10_spill] sm:$0xff] %v8443_v2  ;;  %v719_v44 = vsel %vm11493_vm10, %v678_v43, %v8264_v50  ;;  %v718_v11 = vsel %vm11493_vm10, %v8192_v15, %v678_v43  ;;  %v8458_v2 = vld [vmem:[%s11472_s1 + $0x8] sm:$0xff]  }
 0x16d   : > { %1743 = vrot.lane.b32.xlu1 %v8196_v18, %s7849_s17  ;;  %856 = vmatprep.subr.bf16.mxu1 %v719_v44 }
 0x16e   : > { %2513 = vrot.lane.b32.xlu0 %v8025_v9, %s7851_s29  ;;  %7208 = vmatpush3.bf16.msra.mxu0 %v8097_v1 }
 0x16f   : > { %857 = vmatpush1.bf16.msra.mxu1 %v718_v11  ;;  %v8461_v21 = vpop.permute.xlu1 %1707  ;;  %7209 = vmatprep.subr.bf16.mxu0 %v8095_v0  ;;  %v8464_v50 = vpop.permute.xlu0 %1711 }
 0x170   : > { %11531 = vst [vmem:[#allocation11_spill] sm:$0xff] %v8461_v21 }
 0x171   : > { %2527 = vrot.lane.b32.xlu1 %v8048_v45, %s7851_s29  ;;  %6876 = vmatmul.mubr.msk.bf16.gmra.mrb[4].mxu0 %vm752_vm11, %v8458_v2 }
 0x172   : > { %2525 = vrot.lane.b32.xlu0 %v8040_v33, %s7851_s29  ;;  %7210 = vmatpush3.bf16.msra.mxu0 %v8095_v0 }
 0x173   : > { %v8473_v15 = vpop.permute.xlu1 %1719  ;;  %1111 = vmatprep.mubr.bf16.mxu0 %v11530_v51  ;;  %7211 = vmatprep.subr.bf16.mxu0 %v8105_v7  ;;  %v688_v43 = vpop.permute.xlu0 %687 }
 0x174   : > { %11532 = vst [vmem:[#allocation12_spill] sm:$0xff] %v8473_v15  ;;  %v723_v44 = vsel %vm11493_vm10, %v688_v43, %v8261_v49  ;;  %v722_v11 = vsel %vm11493_vm10, %v8213_v23, %v688_v43  ;;  %v8488_v15 = vld [vmem:[%s11472_s1 + $0x10] sm:$0xff]   ;;  %v1057_v23 = vsel %vm302_vm1, %v8103_v6, 0  ;;  %v1351_v43 = vsel %vm11494_vm12, %v8321_v10, %v8331_v12 }
 0x175   : > { %2533 = vrot.lane.b32.xlu1 %v8078_v57, %s7851_s29  ;;  %858 = vmatprep.subr.bf16.mxu1 %v723_v44 }
 0x176   : > { %2523 = vrot.lane.b32.xlu0 %v8046_v38, %s7851_s29  ;;  %7212 = vmatpush3.bf16.msra.mxu0 %v8105_v7 }
 0x177   : > { %859 = vmatpush1.bf16.msra.mxu1 %v722_v11  ;;  %v8491_v21 = vpop.permute.xlu1 %1717  ;;  %7682 = vmatprep.subr.msk.bf16.mxu0 %vm302_vm1, %v8103_v6 }
 0x178   : > { %11533 = vst [vmem:[#allocation13_spill] sm:$0xff] %v8491_v21  ;;  %v8495_v49 = vpop.permute.xlu0 %1721 }
 0x179   : > { %11534 = vst [vmem:[#allocation14_spill] sm:$0xff] %v8495_v49  ;;  %2537 = vrot.lane.b32.xlu1 %v8089_v60, %s7851_s29  ;;  %6877 = vmatmul.mubr.msk.bf16.gmra.mrb[8].mxu0 %vm752_vm11, %v8488_v15 }
 0x17a   : > { %2535 = vrot.lane.b32.xlu0 %v8075_v56, %s7851_s29  ;;  %7214 = vmatpush3.bf16.msra.mxu0 %v1057_v23  ;;  %v8522_v23 = vld [vmem:[%s11472_s1 + $0x18] sm:$0xff]  }
 0x17b   : > { %v8508_v44 = vpop.permute.xlu1 %1729  ;;  %1121 = vmatprep.mubr.bf16.mxu0 %v11530_v51  ;;  %1417 = vmatprep.subr.bf16.mxu0 %v1351_v43 }
 0x17c   : > { %11535 = vst [vmem:[#allocation15_spill] sm:$0xff] %v8508_v44  ;;  %v698_v11 = vpop.permute.xlu0 %697 }
 0x17d   : > { %2111 = vrot.lane.b32.xlu1 %v8007_v54, %s7850_s18  ;;  %v727_v21 = vsel %vm11493_vm10, %v698_v11, %v8277_v55  ;;  %v726_v49 = vsel %vm11493_vm10, %v8230_v31, %v698_v11 }
 0x17e   : > { %2101 = vrot.lane.b32.xlu0 %v8153_v8, %s7850_s18  ;;  %860 = vmatprep.subr.bf16.mxu1 %v727_v21 }
 0x17f   : > { %861 = vmatpush1.bf16.msra.mxu1 %v726_v49  ;;  %v8524_v43 = vpop.permute.xlu1 %1727 }
 0x180   : > { %11536 = vst [vmem:[#allocation16_spill] sm:$0xff] %v8524_v43  ;;  %v8526_v44 = vpop.permute.xlu0 %1731 }
 0x181   : > { %2121 = vrot.lane.b32.xlu1 %v8031_v17, %s7850_s18  ;;  %6878 = vmatmul.mubr.msk.bf16.gmra.mrb[12].mxu0 %vm752_vm11, %v8522_v23 }
 0x182   : > { %2501 = vrot.lane.b32.xlu0 %v8085_v58, %s7851_s29  ;;  %7215 = vmatprep.mubr.msk.bf16.mxu0 %vm752_vm11, %v8429_v39 }
 0x183   : > { %v8534_v31 = vpop.permute.xlu1 %1737 }
 0x184   : > { %11537 = vst [vmem:[#allocation17_spill] sm:$0xff] %v8534_v31  ;;  %v708_v55 = vpop.permute.xlu0 %707 }
 0x185   : > { %2131 = vrot.lane.b32.xlu1 %v8050_v47, %s7850_s18  ;;  %v731_v21 = vsel %vm11493_vm10, %v708_v55, %v8273_v52  ;;  %v730_v49 = vsel %vm11493_vm10, %v8246_v41, %v708_v55  ;;  %v1350_v41 = vsel %vm11494_vm12, %v8335_v13, %v8321_v10  ;;  %v1355_v52 = vsel %vm11494_vm12, %v8346_v19, %v8348_v20 }
 0x186   : > { %2511 = vrot.lane.b32.xlu0 %v8097_v1, %s7851_s29  ;;  %6861 = vmatprep.subr.msk.bf16.mxu1 %vm302_vm1, %v731_v21  ;;  %v773_v11 = vsel %vm302_vm1, %v730_v49, 0  ;;  %v1359_v13 = vsel %vm11494_vm12, %v8360_v24, %v8366_v26  ;;  %vm4557_vm10 = vcmask 900848  }
 0x187   : > { %863 = vmatpush1.bf16.msra.mxu1 %v773_v11  ;;  %v8548_v31 = vpop.permute.xlu1 %1741 }
 0x188   : > { %1132 = vmatprep.subr.bf16.mxu1 %v8153_v8  ;;  %v8551_v43 = vpop.permute.xlu0 %1739 }
 0x189   : > { %2141 = vrot.lane.b32.xlu1 %v8196_v18, %s7850_s18  ;;  %7216 = vmatmul.mubr.msk.bf16.vlgmr.msra.gmra.mrb[16].mxu0 %vm752_vm11, %v8458_v2 }
 0x18a   : > { %2521 = vrot.lane.b32.xlu0 %v8095_v0, %s7851_s29  ;;  %1418 = vmatpush1.bf16.msra.mxu0 %v1350_v41  ;;  %v1367_v41 = vsel %vm11494_vm12, %v8401_v35, %v8405_v36 }
 0x18b   : > { %6862 = vmatmul.mubr.msk.bf16.vlgmr.msra.gmra.mrb[0].mxu1 %vm752_vm11, %v8259_v48  ;;  %v8567_v55 = vpop.permute.xlu1 %1715  ;;  %1419 = vmatprep.subr.bf16.mxu0 %v1355_v52  ;;  %v1354_v48 = vsel %vm11494_vm12, %v8356_v22, %v8346_v19  ;;  %v1358_v19 = vsel %vm11494_vm12, %v8368_v27, %v8360_v24  ;;  %v1363_v22 = vsel %vm11494_vm12, %v8377_v29, %v8382_v30 }
 0x18c   : > { %1133 = vmatpush1.bf16.msra.mxu1 %v7974_v25  ;;  %v8570_v10 = vpop.permute.xlu0 %1705  ;;  %896 = vmatprep.mubr.bf16.mxu1 %v11530_v51  ;;  %v1366_v27 = vsel %vm11494_vm12, %v8392_v34, %v8401_v35  ;;  %v8643_v34 = vld [vmem:[%s11472_s1 + $0x40] sm:$0xff]   ;;  %v1051_v35 = vsel %vm302_vm1, %v8089_v60, 0 }
 0x18d   : > { %1134 = vmatprep.subr.bf16.mxu1 %v8007_v54  ;;  %2541 = vrot.lane.b32.xlu1 %v8103_v6, %s7851_s29 }
 0x18e   : > { %2531 = vrot.lane.b32.xlu0 %v8105_v7, %s7851_s29  ;;  %1420 = vmatpush1.bf16.msra.mxu0 %v1354_v48 }
 0x18f   : > { %v8584_v21 = vpop.permute.xlu1 %1735  ;;  %7219 = vmatprep.mubr.msk.bf16.mxu0 %vm752_vm11, %v8488_v15  ;;  %1421 = vmatprep.subr.bf16.mxu0 %v1359_v13 }
 0x190   : > { %1135 = vmatpush1.bf16.msra.mxu1 %v8005_v53  ;;  %v8589_v49 = vpop.permute.xlu0 %1725 }
 0x191   : > { %1136 = vmatprep.subr.bf16.mxu1 %v8031_v17  ;;  %2895 = vrot.lane.b32.xlu1 %v7974_v25, %s7852_s23 }
 0x192   : > { %2893 = vrot.lane.b32.xlu0 %v7978_v28, %s7852_s23  ;;  %7220 = vmatmul.mubr.msk.bf16.gmra.mrb[20].mxu0 %vm752_vm11, %v8522_v23 }
 0x193   : > { %1422 = vmatpush1.bf16.msra.mxu0 %v1358_v19  ;;  %6863 = vmatmul.mubr.msk.bf16.gmra.mrb[4].mxu1 %vm752_vm11, %v8286_v59  ;;  %v8606_v11 = vpop.permute.xlu1 %2097  ;;  %v1362_v59 = vsel %vm11494_vm12, %v8389_v32, %v8377_v29  ;;  %v1403_v32 = vsel %vm302_vm1, %v1366_v27, 0 }
 0x194   : > { %1423 = vmatprep.subr.bf16.mxu0 %v1363_v22  ;;  %1137 = vmatpush1.bf16.msra.mxu1 %v8029_v16  ;;  %v8609_v24 = vpop.permute.xlu0 %1745  ;;  %v8675_v22 = vld [vmem:[%s11472_s1 + $0x48] sm:$0xff]  }
 0x195   : > { %1138 = vmatprep.subr.bf16.mxu1 %v8050_v47  ;;  %2903 = vrot.lane.b32.xlu1 %v7995_v42, %s7852_s23 }
 0x196   : > { %2891 = vrot.lane.b32.xlu0 %v7989_v37, %s7852_s23  ;;  %906 = vmatprep.mubr.bf16.mxu1 %v11530_v51 }
 0x197   : > { %1424 = vmatpush1.bf16.msra.mxu0 %v1362_v59  ;;  %v8626_v52 = vpop.permute.xlu1 %2095  ;;  %1449 = vmatprep.mubr.bf16.mxu0 %v11530_v51 }
 0x198   : > { %6900 = vmatprep.subr.msk.bf16.mxu0 %vm302_vm1, %v1367_v41  ;;  %1139 = vmatpush1.bf16.msra.mxu1 %v8048_v45  ;;  %v8631_v29 = vpop.permute.xlu0 %2099 }
 0x199   : > { %6879 = vmatprep.subr.msk.bf16.mxu1 %vm302_vm1, %v8196_v18  ;;  %2901 = vrot.lane.b32.xlu1 %v8001_v46, %s7852_s23 }
 0x19a   : > { %2905 = vrot.lane.b32.xlu0 %v8005_v53, %s7852_s23 }
 0x19b   : > { %1426 = vmatpush1.bf16.msra.mxu0 %v1403_v32  ;;  %6864 = vmatmul.mubr.msk.bf16.gmra.mrb[8].mxu1 %vm752_vm11, %v8314_v4  ;;  %v8649_v48 = vpop.permute.xlu1 %2109  ;;  %v8706_v32 = vld [vmem:[%s11472_s1 + $0x50] sm:$0xff]  }
 0x19c   : > { %7223 = vmatprep.subr.bf16.mxu0 %v8289_v61  ;;  %1141 = vmatpush1.bf16.msra.mxu1 %v1051_v35  ;;  %v8652_v13 = vpop.permute.xlu0 %2107 }
 0x19d   : > { %2913 = vrot.lane.b32.xlu1 %v8020_v5, %s7852_s23  ;;  %916 = vmatprep.mubr.bf16.mxu1 %v11530_v51 }
 0x19e   : > { %6901 = vmatmul.mubr.msk.bf16.vlgmr.msra.gmra.mrb[0].mxu0 %vm752_vm11, %v8643_v34  ;;  %2499 = vrot.lane.b32.xlu0 %v8153_v8, %s7851_s29 }
 0x19f   : > { %7224 = vmatpush3.bf16.msra.mxu0 %v8289_v61  ;;  %v8662_v4 = vpop.permute.xlu1 %2117  ;;  %1459 = vmatprep.mubr.bf16.mxu0 %v11530_v51 }
 0x1a0   : > { %11538 = vst [vmem:[#allocation18_spill] sm:$0xff] %v8662_v4  ;;  %7225 = vmatprep.subr.bf16.mxu0 %v8292_v62  ;;  %v8666_v19 = vpop.permute.xlu0 %2105 }
 0x1a1   : > { %11539 = vst [vmem:[#allocation19_spill] sm:$0xff] %v8666_v19  ;;  %2911 = vrot.lane.b32.xlu1 %v8025_v9, %s7852_s23 }
 0x1a2   : > { %2915 = vrot.lane.b32.xlu0 %v8029_v16, %s7852_s23 }
 0x1a3   : > { %7226 = vmatpush3.bf16.msra.mxu0 %v8292_v62  ;;  %6865 = vmatmul.mubr.msk.bf16.gmra.mrb[12].mxu1 %vm752_vm11, %v8344_v14  ;;  %v8680_v59 = vpop.permute.xlu1 %2115 }
 0x1a4   : > { %11540 = vst [vmem:[#allocation20_spill] sm:$0xff] %v8680_v59  ;;  %7227 = vmatprep.subr.bf16.mxu0 %v8301_v63  ;;  %v8683_v27 = vpop.permute.xlu0 %2119  ;;  %1164 = vmatprep.mubr.bf16.mxu1 %v11530_v51 }
 0x1a5   : > { %11541 = vst [vmem:[#allocation21_spill] sm:$0xff] %v8683_v27  ;;  %2923 = vrot.lane.b32.xlu1 %v8040_v33, %s7852_s23 }
 0x1a6   : > { %6902 = vmatmul.mubr.msk.bf16.gmra.mrb[4].mxu0 %vm752_vm11, %v8675_v22  ;;  %2509 = vrot.lane.b32.xlu0 %v8007_v54, %s7851_s29 }
 0x1a7   : > { %7228 = vmatpush3.bf16.msra.mxu0 %v8301_v63  ;;  %v8693_v14 = vpop.permute.xlu1 %2129  ;;  %1469 = vmatprep.mubr.bf16.mxu0 %v11530_v51 }
 0x1a8   : > { %11542 = vst [vmem:[#allocation22_spill] sm:$0xff] %v8693_v14  ;;  %7229 = vmatprep.subr.bf16.mxu0 %v8305_v3  ;;  %v8697_v41 = vpop.permute.xlu0 %2127 }
 0x1a9   : > { %11543 = vst [vmem:[#allocation23_spill] sm:$0xff] %v8697_v41  ;;  %2921 = vrot.lane.b32.xlu1 %v8046_v38, %s7852_s23  ;;  %v11545_v41 = vld [vmem:[#allocation7_spill] sm:$0xff] }
 0x1aa   : > { %2925 = vrot.lane.b32.xlu0 %v8048_v45, %s7852_s23 }
 0x1ab   : > { %7230 = vmatpush3.bf16.msra.mxu0 %v8305_v3  ;;  %6880 = vmatmul.mubr.msk.bf16.vlgmr.msra.gmra.mrb[0].mxu1 %vm752_vm11, %v8429_v39  ;;  %v8711_v35 = vpop.permute.xlu1 %2125  ;;  %v1415_v39 = vsel %vm302_vm1, %v11545_v41, 0 }
 0x1ac   : > { %11544 = vst [vmem:[#allocation24_spill] sm:$0xff] %v8711_v35  ;;  %7683 = vmatprep.subr.msk.bf16.mxu0 %vm302_vm1, %v11545_v41  ;;  %v1306_v14 = vpop.permute.xlu0 %1305  ;;  %1174 = vmatprep.mubr.bf16.mxu1 %v11530_v51  ;;  %v11546_v35 = vld [vmem:[#allocation8_spill] sm:$0xff] }
 0x1ad   : > { %2931 = vrot.lane.b32.xlu1 %v8078_v57, %s7852_s23  ;;  %v1353_v59 = vsel %vm11494_vm12, %v1306_v14, %v8289_v61  ;;  %v1352_v4 = vsel %vm11494_vm12, %v8331_v12, %v1306_v14  ;;  %v1749_v27 = vsel %vm11492_vm13, %v11546_v35, %v8434_v40  ;;  %v8743_v12 = vld [vmem:[%s11472_s1 + $0x58] sm:$0xff]  }
 0x1ae   : > { %6903 = vmatmul.mubr.msk.bf16.gmra.mrb[8].mxu0 %vm752_vm11, %v8706_v32  ;;  %2519 = vrot.lane.b32.xlu0 %v8031_v17, %s7851_s29 }
 0x1af   : > { %7232 = vmatpush3.bf16.msra.mxu0 %v1415_v39  ;;  %1490 = vmatprep.subr.bf16.mxu1 %v1353_v59  ;;  %v8731_v19 = vpop.permute.xlu1 %2137 }
 0x1b0   : > { %1815 = vmatprep.subr.bf16.mxu0 %v1749_v27  ;;  %1491 = vmatpush1.bf16.msra.mxu1 %v1352_v4  ;;  %v8733_v61 = vpop.permute.xlu0 %2135 }
 0x1b1   : > { %2935 = vrot.lane.b32.xlu1 %v8089_v60, %s7852_s23  ;;  %1479 = vmatprep.mubr.bf16.mxu0 %v11530_v51 }
 0x1b2   : > { %2933 = vrot.lane.b32.xlu0 %v8075_v56, %s7852_s23 }
 0x1b3   : > { %6881 = vmatmul.mubr.msk.bf16.gmra.mrb[4].mxu1 %vm752_vm11, %v8458_v2  ;;  %v1316_v59 = vpop.permute.xlu1 %1315 }
 0x1b4   : > { %v8747_v4 = vpop.permute.xlu0 %2139  ;;  %v1357_v27 = vsel %vm11494_vm12, %v1316_v59, %v8292_v62  ;;  %v1356_v14 = vsel %vm11494_vm12, %v8348_v20, %v1316_v59  ;;  %1184 = vmatprep.mubr.bf16.mxu1 %v11530_v51 }
 0x1b5   : > { %2539 = vrot.lane.b32.xlu1 %v8196_v18, %s7851_s29  ;;  %1492 = vmatprep.subr.bf16.mxu1 %v1357_v27 }
 0x1b6   : > { %6904 = vmatmul.mubr.msk.bf16.gmra.mrb[12].mxu0 %vm752_vm11, %v8743_v12  ;;  %2529 = vrot.lane.b32.xlu0 %v8050_v47, %s7851_s29  ;;  %s7853_s29 = smov 121  }
 0x1b7   : > { %1493 = vmatpush1.bf16.msra.mxu1 %v1356_v14  ;;  %v1336_v2 = vpop.permute.xlu1 %1335  ;;  %7233 = vmatprep.mubr.msk.bf16.mxu0 %vm752_vm11, %v8643_v34 }
 0x1b8   : > { %v1326_v62 = vpop.permute.xlu0 %1325  ;;  %v1365_v27 = vsel %vm11494_vm12, %v1336_v2, %v8305_v3  ;;  %v11548_v3 = vld [vmem:[#allocation10_spill] sm:$0xff] }
 0x1b9   : > { %2909 = vrot.lane.b32.xlu1 %v8097_v1, %s7852_s23  ;;  %v1361_v20 = vsel %vm11494_vm12, %v1326_v62, %v8301_v63  ;;  %v1360_v39 = vsel %vm11494_vm12, %v8366_v26, %v1326_v62  ;;  %v11547_v63 = vld [vmem:[#allocation9_spill] sm:$0xff]  ;;  %v1753_v26 = vsel %vm11492_vm13, %v11548_v3, %v8464_v50 }
 0x1ba   : > { %2899 = vrot.lane.b32.xlu0 %v8085_v58, %s7852_s23  ;;  %1494 = vmatprep.subr.bf16.mxu1 %v1361_v20  ;;  %v1748_v58 = vsel %vm11492_vm13, %v11547_v63, %v11546_v35 }
 0x1bb   : > { %6882 = vmatmul.mubr.msk.bf16.gmra.mrb[8].mxu1 %vm752_vm11, %v8488_v15  ;;  %v8772_v59 = vpop.permute.xlu1 %2103  ;;  %v1364_v15 = vsel %vm11494_vm12, %v8382_v30, %v1336_v2  ;;  %v11549_v30 = vld [vmem:[#allocation11_spill] sm:$0xff] }
 0x1bc   : > { %1495 = vmatpush1.bf16.msra.mxu1 %v1360_v39  ;;  %v1346_v14 = vpop.permute.xlu0 %1345  ;;  %1194 = vmatprep.mubr.bf16.mxu1 %v11530_v51  ;;  %v1752_v2 = vsel %vm11492_vm13, %v11549_v30, %v11548_v3  ;;  %v11554_v30 = vld [vmem:[#allocation16_spill] sm:$0xff] }
 0x1bd   : > { %1496 = vmatprep.subr.bf16.mxu1 %v1365_v27  ;;  %2919 = vrot.lane.b32.xlu1 %v8095_v0, %s7852_s23  ;;  %v1368_v35 = vsel %vm11494_vm12, %v8405_v36, %v1346_v14  ;;  %v1369_v20 = vsel %vm11494_vm12, %v1346_v14, %v11545_v41  ;;  %v11550_v36 = vld [vmem:[#allocation14_spill] sm:$0xff]  ;;  %v11551_v27 = vld [vmem:[#allocation12_spill] sm:$0xff]  ;;  %vm4570_vm12 = vcmask 1048496  }
 0x1be   : > { %7234 = vmatmul.mubr.msk.bf16.vlgmr.msra.gmra.mrb[16].mxu0 %vm752_vm11, %v8675_v22  ;;  %2897 = vrot.lane.b32.xlu0 %v8153_v8, %s7852_s23  ;;  %v1757_v63 = vsel %vm11492_vm13, %v11551_v27, %v11550_v36  ;;  %v1409_v41 = vsel %vm302_vm1, %v1368_v35, 0 }
 0x1bf   : > { %1816 = vmatpush1.bf16.msra.mxu0 %v1748_v58  ;;  %v8791_v62 = vpop.permute.xlu1 %2123  ;;  %7237 = vmatprep.mubr.msk.bf16.mxu0 %vm752_vm11, %v8706_v32 }
 0x1c0   : > { %1817 = vmatprep.subr.bf16.mxu0 %v1753_v26  ;;  %1497 = vmatpush1.bf16.msra.mxu1 %v1364_v15  ;;  %v8799_v39 = vpop.permute.xlu0 %2113  ;;  %v11552_v26 = vld [vmem:[#allocation13_spill] sm:$0xff] }
 0x1c1   : > { %6905 = vmatprep.subr.msk.bf16.mxu1 %vm302_vm1, %v1369_v20  ;;  %2929 = vrot.lane.b32.xlu1 %v8105_v7, %s7852_s23  ;;  %v1756_v15 = vsel %vm11492_vm13, %v11552_v26, %v11551_v27 }
 0x1c2   : > { %2907 = vrot.lane.b32.xlu0 %v8007_v54, %s7852_s23 }
 0x1c3   : > { %1818 = vmatpush1.bf16.msra.mxu0 %v1752_v2  ;;  %6883 = vmatmul.mubr.msk.bf16.gmra.mrb[12].mxu1 %vm752_vm11, %v8522_v23  ;;  %v1704_v14 = vpop.permute.xlu1 %1703  ;;  %v11553_v23 = vld [vmem:[#allocation15_spill] sm:$0xff] }
 0x1c4   : > { %1819 = vmatprep.subr.bf16.mxu0 %v1757_v63  ;;  %1499 = vmatpush1.bf16.msra.mxu1 %v1409_v41  ;;  %v8815_v58 = vpop.permute.xlu0 %2133  ;;  %v1751_v3 = vsel %vm11492_vm13, %v1704_v14, %v8570_v10  ;;  %v1761_v35 = vsel %vm11492_vm13, %v11553_v23, %v8526_v44  ;;  %v1760_v2 = vsel %vm11492_vm13, %v11554_v30, %v11553_v23  ;;  %v11555_v63 = vld [vmem:[#allocation17_spill] sm:$0xff] }
 0x1c5   : > { %2939 = vrot.lane.b32.xlu1 %v8103_v6, %s7852_s23  ;;  %1888 = vmatprep.subr.bf16.mxu1 %v1751_v3  ;;  %v1764_v41 = vsel %vm11492_vm13, %v11555_v63, %v8551_v43  ;;  %v1750_v3 = vsel %vm11492_vm13, %v8434_v40, %v1704_v14  ;;  %v8867_v40 = vld [vmem:[%s11472_s1 + $0x60] sm:$0xff]  }
 0x1c6   : > { %2917 = vrot.lane.b32.xlu0 %v8031_v17, %s7852_s23  ;;  %7238 = vmatmul.mubr.msk.bf16.gmra.mrb[20].mxu0 %vm752_vm11, %v8743_v12  ;;  %v1801_v23 = vsel %vm302_vm1, %v1764_v41, 0 }
 0x1c7   : > { %1820 = vmatpush1.bf16.msra.mxu0 %v1756_v15  ;;  %v1714_v20 = vpop.permute.xlu1 %1713  ;;  %1522 = vmatprep.mubr.bf16.mxu1 %v11530_v51 }
 0x1c8   : > { %1821 = vmatprep.subr.bf16.mxu0 %v1761_v35  ;;  %v8832_v6 = vpop.permute.xlu0 %2143  ;;  %1847 = vmatprep.mubr.bf16.mxu0 %v11530_v51  ;;  %v1755_v27 = vsel %vm11492_vm13, %v1714_v20, %v8567_v55  ;;  %v1765_v51 = vsel %vm11492_vm13, %v8551_v43, %v8548_v31  ;;  %v8869_v43 = vld [vmem:[#allocation5] sm:$0xff] }
 0x1c9   : > { %3291 = vrot.lane.b32.xlu1 %v7978_v28, %s7853_s29 }
 0x1ca   : > { %2927 = vrot.lane.b32.xlu0 %v8050_v47, %s7852_s23 }
 0x1cb   : > { %1822 = vmatpush1.bf16.msra.mxu0 %v1760_v2  ;;  %6906 = vmatmul.mubr.msk.bf16.vlgmr.msra.gmra.mrb[0].mxu1 %vm752_vm11, %v8643_v34  ;;  %v8854_v26 = vpop.permute.xlu1 %2497  ;;  %v1754_v34 = vsel %vm11492_vm13, %v8464_v50, %v1714_v20 }
 0x1cc   : > { %6926 = vmatprep.subr.msk.bf16.mxu0 %vm302_vm1, %v1765_v51  ;;  %1889 = vmatpush1.bf16.msra.mxu1 %v1750_v3  ;;  %v8857_v15 = vpop.permute.xlu0 %2495 }
 0x1cd   : > { %1890 = vmatprep.subr.bf16.mxu1 %v1755_v27  ;;  %3289 = vrot.lane.b32.xlu1 %v7989_v37, %s7853_s29 }
 0x1ce   : > { %3293 = vrot.lane.b32.xlu0 %v7974_v25, %s7853_s29  ;;  %1532 = vmatprep.mubr.bf16.mxu1 %v8869_v43 }
 0x1cf   : > { %1824 = vmatpush1.bf16.msra.mxu0 %v1801_v23  ;;  %v1724_v14 = vpop.permute.xlu1 %1723  ;;  %v1813_v23 = vsel %vm302_vm1, %v8609_v24, 0 }
 0x1d0   : > { %7241 = vmatprep.subr.bf16.mxu0 %v8570_v10  ;;  %1891 = vmatpush1.bf16.msra.mxu1 %v1754_v34  ;;  %v8875_v35 = vpop.permute.xlu0 %2493  ;;  %v1759_v30 = vsel %vm11492_vm13, %v1724_v14, %v8589_v49  ;;  %v1758_v2 = vsel %vm11492_vm13, %v11550_v36, %v1724_v14 }
 0x1d1   : > { %3301 = vrot.lane.b32.xlu1 %v7995_v42, %s7853_s29  ;;  %1892 = vmatprep.subr.bf16.mxu1 %v1759_v30 }
 0x1d2   : > { %6927 = vmatmul.mubr.msk.bf16.vlgmr.msra.gmra.mrb[0].mxu0 %vm752_vm11, %v8867_v40  ;;  %2937 = vrot.lane.b32.xlu0 %v8196_v18, %s7852_s23 }
 0x1d3   : > { %7242 = vmatpush3.bf16.msra.mxu0 %v8570_v10  ;;  %v8888_v50 = vpop.permute.xlu1 %2507  ;;  %1857 = vmatprep.mubr.bf16.mxu0 %v8869_v43  ;;  %v8903_v10 = vld [vmem:[%s11472_s1 + $0x68] sm:$0xff]  }
 0x1d4   : > { %7243 = vmatprep.subr.bf16.mxu0 %v8567_v55  ;;  %1893 = vmatpush1.bf16.msra.mxu1 %v1758_v2  ;;  %v8892_v20 = vpop.permute.xlu0 %2505 }
 0x1d5   : > { %3299 = vrot.lane.b32.xlu1 %v8001_v46, %s7853_s29  ;;  %6907 = vmatmul.mubr.msk.bf16.gmra.mrb[4].mxu1 %vm752_vm11, %v8675_v22 }
 0x1d6   : > { %3303 = vrot.lane.b32.xlu0 %v8005_v53, %s7853_s29  ;;  %1542 = vmatprep.mubr.bf16.mxu1 %v8869_v43 }
 0x1d7   : > { %7244 = vmatpush3.bf16.msra.mxu0 %v8567_v55  ;;  %v1734_v36 = vpop.permute.xlu1 %1733 }
 0x1d8   : > { %7245 = vmatprep.subr.bf16.mxu0 %v8589_v49  ;;  %v8908_v27 = vpop.permute.xlu0 %2503  ;;  %v1763_v22 = vsel %vm11492_vm13, %v1734_v36, %v8584_v21  ;;  %v1762_v63 = vsel %vm11492_vm13, %v8526_v44, %v1734_v36  ;;  %v8936_v44 = vld [vmem:[%s11472_s1 + $0x70] sm:$0xff]  }
 0x1d9   : > { %3313 = vrot.lane.b32.xlu1 %v8029_v16, %s7853_s29  ;;  %1894 = vmatprep.subr.bf16.mxu1 %v1763_v22  ;;  %v8998_v22 = vld [vmem:[#allocation2 + $0x10] ss:$20 sps:$4 sm:$0xff]  }
 0x1da   : > { %6928 = vmatmul.mubr.msk.bf16.gmra.mrb[4].mxu0 %vm752_vm11, %v8903_v10  ;;  %3311 = vrot.lane.b32.xlu0 %v8020_v5, %s7853_s29 }
 0x1db   : > { %7246 = vmatpush3.bf16.msra.mxu0 %v8589_v49  ;;  %1895 = vmatpush1.bf16.msra.mxu1 %v1762_v63  ;;  %v8921_v55 = vpop.permute.xlu1 %2517 }
 0x1dc   : > { %7247 = vmatprep.subr.bf16.mxu0 %v8584_v21  ;;  %v8924_v41 = vpop.permute.xlu0 %2515  ;;  %1867 = vmatprep.mubr.bf16.mxu0 %v8869_v43 }
 0x1dd   : > { %3321 = vrot.lane.b32.xlu1 %v8040_v33, %s7853_s29  ;;  %6908 = vmatmul.mubr.msk.bf16.gmra.mrb[8].mxu1 %vm752_vm11, %v8706_v32 }
 0x1de   : > { %3309 = vrot.lane.b32.xlu0 %v8025_v9, %s7853_s29  ;;  %1552 = vmatprep.mubr.bf16.mxu1 %v8869_v43 }
 0x1df   : > { %7248 = vmatpush3.bf16.msra.mxu0 %v8584_v21  ;;  %v1744_v49 = vpop.permute.xlu1 %1743 }
 0x1e0   : > { %7684 = vmatprep.subr.msk.bf16.mxu0 %vm302_vm1, %v8609_v24  ;;  %v1766_v32 = vsel %vm11492_vm13, %v8548_v31, %v1744_v49  ;;  %v8944_v51 = vpop.permute.xlu0 %2513  ;;  %v1767_v3 = vsel %vm11492_vm13, %v1744_v49, %v8609_v24  ;;  %v2147_v31 = vsel %vm11491_vm14, %v8606_v11, %v8631_v29  ;;  %v8975_v24 = vld [vmem:[%s11472_s1 + $0x78] sm:$0xff]   ;;  %vm4544_vm13 = vcmask 704048  }
 0x1e1   : > { %3319 = vrot.lane.b32.xlu1 %v8046_v38, %s7853_s29  ;;  %6931 = vmatprep.subr.msk.bf16.mxu1 %vm302_vm1, %v1767_v3  ;;  %v1807_v21 = vsel %vm302_vm1, %v1766_v32, 0 }
 0x1e2   : > { %6929 = vmatmul.mubr.msk.bf16.gmra.mrb[8].mxu0 %vm752_vm11, %v8936_v44  ;;  %3323 = vrot.lane.b32.xlu0 %v8048_v45, %s7853_s29 }
 0x1e3   : > { %7250 = vmatpush3.bf16.msra.mxu0 %v1813_v23  ;;  %1897 = vmatpush1.bf16.msra.mxu1 %v1807_v21  ;;  %v8961_v34 = vpop.permute.xlu1 %2527  ;;  %v2151_v21 = vsel %vm11491_vm14, %v8652_v13, %v8649_v48 }
 0x1e4   : > { %2213 = vmatprep.subr.bf16.mxu0 %v2147_v31  ;;  %v8963_v14 = vpop.permute.xlu0 %2525  ;;  %1877 = vmatprep.mubr.bf16.mxu0 %v8869_v43 }
 0x1e5   : > { %3331 = vrot.lane.b32.xlu1 %v8075_v56, %s7853_s29  ;;  %6909 = vmatmul.mubr.msk.bf16.gmra.mrb[12].mxu1 %vm752_vm11, %v8743_v12 }
 0x1e6   : > { %3329 = vrot.lane.b32.xlu0 %v8078_v57, %s7853_s29  ;;  %1920 = vmatprep.mubr.bf16.mxu1 %v8869_v43 }
 0x1e7   : > { %v8978_v30 = vpop.permute.xlu1 %2533 }
 0x1e8   : > { %v8980_v2 = vpop.permute.xlu0 %2523 }
 0x1e9   : > { %3295 = vrot.lane.b32.xlu1 %v8153_v8, %s7853_s29 }
 0x1ea   : > { %6930 = vmatmul.mubr.msk.bf16.gmra.mrb[12].mxu0 %vm752_vm11, %v8975_v24  ;;  %3333 = vrot.lane.b32.xlu0 %v8089_v60, %s7853_s29 }
 0x1eb   : > { %v8988_v12 = vpop.permute.xlu1 %2537  ;;  %7251 = vmatprep.mubr.msk.bf16.mxu0 %vm752_vm11, %v8867_v40 }
 0x1ec   : > { %v8992_v36 = vpop.permute.xlu0 %2535 }
 0x1ed   : > { %3305 = vrot.lane.b32.xlu1 %v8007_v54, %s7853_s29  ;;  %6932 = vmatmul.mubr.msk.bf16.vlgmr.msra.gmra.mrb[0].mxu1 %vm752_vm11, %v8867_v40  ;;  %v2146_v40 = vsel %vm11491_vm14, %v8626_v52, %v8606_v11  ;;  %v11556_v11 = vld [vmem:[#allocation19_spill] sm:$0xff] }
 0x1ee   : > { %3297 = vrot.lane.b32.xlu0 %v8998_v22, %s7853_s29  ;;  %1930 = vmatprep.mubr.bf16.mxu1 %v8869_v43  ;;  %v2150_v52 = vsel %vm11491_vm14, %v11556_v11, %v8652_v13  ;;  %v11559_v11 = vld [vmem:[#allocation20_spill] sm:$0xff] }
 0x1ef   : > { %v2112_v63 = vpop.permute.xlu1 %2111 }
 0x1f0   : > { %v2102_v49 = vpop.permute.xlu0 %2101 }
 0x1f1   : > { %3315 = vrot.lane.b32.xlu1 %v8031_v17, %s7853_s29  ;;  %v2149_v32 = vsel %vm11491_vm14, %v2102_v49, %v8772_v59  ;;  %v2148_v3 = vsel %vm11491_vm14, %v8631_v29, %v2102_v49  ;;  %v2153_v29 = vsel %vm11491_vm14, %v2112_v63, %v8799_v39  ;;  %v11557_v49 = vld [vmem:[#allocation21_spill] sm:$0xff] }
 0x1f2   : > { %7252 = vmatmul.mubr.msk.bf16.vlgmr.msra.gmra.mrb[16].mxu0 %vm752_vm11, %v8903_v10  ;;  %3307 = vrot.lane.b32.xlu0 %v8097_v1, %s7853_s29 }
 0x1f3   : > { %2214 = vmatpush1.bf16.msra.mxu0 %v2146_v40  ;;  %2286 = vmatprep.subr.bf16.mxu1 %v2149_v32  ;;  %v2122_v23 = vpop.permute.xlu1 %2121  ;;  %v11558_v32 = vld [vmem:[#allocation18_spill] sm:$0xff]  ;;  %v2152_v40 = vsel %vm11491_vm14, %v8649_v48, %v2112_v63 }
 0x1f4   : > { %2215 = vmatprep.subr.bf16.mxu0 %v2151_v21  ;;  %2287 = vmatpush1.bf16.msra.mxu1 %v2148_v3  ;;  %v9021_v31 = vpop.permute.xlu0 %2501  ;;  %v2155_v3 = vsel %vm11491_vm14, %v11558_v32, %v11557_v49  ;;  %v2157_v13 = vsel %vm11491_vm14, %v2122_v23, %v8791_v62  ;;  %v11560_v48 = vld [vmem:[#allocation22_spill] sm:$0xff] }
 0x1f5   : > { %2288 = vmatprep.subr.bf16.mxu1 %v2153_v29  ;;  %3325 = vrot.lane.b32.xlu1 %v8050_v47, %s7853_s29 }
 0x1f6   : > { %3317 = vrot.lane.b32.xlu0 %v8095_v0, %s7853_s29  ;;  %7255 = vmatprep.mubr.msk.bf16.mxu0 %vm752_vm11, %v8936_v44 }
 0x1f7   : > { %2216 = vmatpush1.bf16.msra.mxu0 %v2150_v52  ;;  %v2132_v21 = vpop.permute.xlu1 %2131  ;;  %6933 = vmatmul.mubr.msk.bf16.gmra.mrb[4].mxu1 %vm752_vm11, %v8903_v10  ;;  %v2154_v52 = vsel %vm11491_vm14, %v11559_v11, %v11558_v32  ;;  %v11561_v10 = vld [vmem:[#allocation23_spill] sm:$0xff]  ;;  %v11562_v11 = vld [vmem:[#allocation24_spill] sm:$0xff] }
 0x1f8   : > { %2217 = vmatprep.subr.bf16.mxu0 %v2155_v3  ;;  %2289 = vmatpush1.bf16.msra.mxu1 %v2152_v40  ;;  %v9041_v29 = vpop.permute.xlu0 %2511  ;;  %v2159_v63 = vsel %vm11491_vm14, %v11561_v10, %v11560_v48  ;;  %v2156_v3 = vsel %vm11491_vm14, %v11557_v49, %v2122_v23  ;;  %v2161_v32 = vsel %vm11491_vm14, %v2132_v21, %v8815_v58  ;;  %v9067_v23 = vld [vmem:[#allocation2 + $0xb0] ss:$0 sps:$4 sm:$0xff]  }
 0x1f9   : > { %2290 = vmatprep.subr.bf16.mxu1 %v2157_v13  ;;  %3335 = vrot.lane.b32.xlu1 %v8196_v18, %s7853_s29  ;;  %v2162_v49 = vsel %vm11491_vm14, %v8733_v61, %v8731_v19 }
 0x1fa   : > { %7256 = vmatmul.mubr.msk.bf16.gmra.mrb[20].mxu0 %vm752_vm11, %v8975_v24  ;;  %3327 = vrot.lane.b32.xlu0 %v8105_v7, %s7853_s29 }
 0x1fb   : > { %2218 = vmatpush1.bf16.msra.mxu0 %v2154_v52  ;;  %v2142_v40 = vpop.permute.xlu1 %2141  ;;  %2245 = vmatprep.mubr.bf16.mxu0 %v8869_v43  ;;  %v2158_v52 = vsel %vm11491_vm14, %v11562_v11, %v11561_v10 }
 0x1fc   : > { %2219 = vmatprep.subr.bf16.mxu0 %v2159_v63  ;;  %2291 = vmatpush1.bf16.msra.mxu1 %v2156_v3  ;;  %v9060_v13 = vpop.permute.xlu0 %2521  ;;  %v2160_v63 = vsel %vm11491_vm14, %v11560_v48, %v2132_v21  ;;  %v2164_v3 = vsel %vm11491_vm14, %v8747_v4, %v2142_v40  ;;  %v2165_v61 = vsel %vm11491_vm14, %v2142_v40, %v8832_v6 }
 0x1fd   : > { %2292 = vmatprep.subr.bf16.mxu1 %v2161_v32  ;;  %3689 = vrot.lane.b32.xlu1 %v7978_v28, %s7854_s12  ;;  %v2163_v28 = vsel %vm11491_vm14, %v8731_v19, %v8747_v4  ;;  %v2199_v19 = vsel %vm302_vm1, %v2162_v49, 0  ;;  %v9100_v4 = vld [vmem:[%s11472_s1 + $0x80] sm:$0xff]   ;;  %vm4648_vm14 = vcmask 1032048  }
 0x1fe   : > { %3337 = vrot.lane.b32.xlu0 %v9067_v23, %s7853_s29  ;;  %1940 = vmatprep.mubr.bf16.mxu1 %v8869_v43  ;;  %s7855_s29 = smov 50  }
 0x1ff   : > { %2220 = vmatpush1.bf16.msra.mxu0 %v2158_v52  ;;  %v9080_v10 = vpop.permute.xlu1 %2541  ;;  %6934 = vmatmul.mubr.msk.bf16.gmra.mrb[8].mxu1 %vm752_vm11, %v8936_v44  ;;  %v2205_v44 = vsel %vm302_vm1, %v2164_v3, 0 }
 0x200   : > { %6952 = vmatprep.subr.msk.bf16.mxu0 %vm302_vm1, %v2163_v28  ;;  %2293 = vmatpush1.bf16.msra.mxu1 %v2160_v63  ;;  %v9089_v32 = vpop.permute.xlu0 %2531 }
 0x201   : > { %6957 = vmatprep.subr.msk.bf16.mxu1 %vm302_vm1, %v2165_v61  ;;  %3687 = vrot.lane.b32.xlu1 %v7989_v37, %s7854_s12 }
 0x202   : > { %3691 = vrot.lane.b32.xlu0 %v7974_v25, %s7854_s12  ;;  %1950 = vmatprep.mubr.bf16.mxu1 %v8869_v43 }
 0x203   : > { %2222 = vmatpush1.bf16.msra.mxu0 %v2199_v19  ;;  %v9104_v21 = vpop.permute.xlu1 %2895  ;;  %v2556_v19 = vsel %vm2543_vm15, %v8980_v2, %v8963_v14 }
 0x204   : > { %7259 = vmatprep.subr.bf16.mxu0 %v8772_v59  ;;  %2295 = vmatpush1.bf16.msra.mxu1 %v2205_v44  ;;  %v9107_v37 = vpop.permute.xlu0 %2893 }
 0x205   : > { %3695 = vrot.lane.b32.xlu1 %v8998_v22, %s7854_s12  ;;  %v2211_v22 = vsel %vm302_vm1, %v8832_v6, 0 }
 0x206   : > { %6953 = vmatmul.mubr.msk.bf16.vlgmr.msra.gmra.mrb[0].mxu0 %vm752_vm11, %v9100_v4  ;;  %3693 = vrot.lane.b32.xlu0 %v8153_v8, %s7854_s12  ;;  %v9130_v8 = vld [vmem:[%s11472_s1 + $0x88] sm:$0xff]  }
 0x207   : > { %7260 = vmatpush3.bf16.msra.mxu0 %v8772_v59  ;;  %v9116_v25 = vpop.permute.xlu1 %2903  ;;  %2255 = vmatprep.mubr.bf16.mxu0 %v8869_v43 }
 0x208   : > { %7261 = vmatprep.subr.bf16.mxu0 %v8799_v39  ;;  %v9120_v48 = vpop.permute.xlu0 %2891  ;;  %6935 = vmatmul.mubr.msk.bf16.gmra.mrb[12].mxu1 %vm752_vm11, %v8975_v24 }
 0x209   : > { %3701 = vrot.lane.b32.xlu1 %v8005_v53, %s7854_s12  ;;  %2318 = vmatprep.mubr.bf16.mxu1 %v8869_v43 }
 0x20a   : > { %3699 = vrot.lane.b32.xlu0 %v7995_v42, %s7854_s12 }
 0x20b   : > { %7262 = vmatpush3.bf16.msra.mxu0 %v8799_v39  ;;  %v9135_v59 = vpop.permute.xlu1 %2901 }
 0x20c   : > { %7263 = vmatprep.subr.bf16.mxu0 %v8791_v62  ;;  %v9138_v24 = vpop.permute.xlu0 %2905 }
 0x20d   : > { %3703 = vrot.lane.b32.xlu1 %v8007_v54, %s7854_s12 }
 0x20e   : > { %6954 = vmatmul.mubr.msk.bf16.gmra.mrb[4].mxu0 %vm752_vm11, %v9130_v8  ;;  %3697 = vrot.lane.b32.xlu0 %v8001_v46, %s7854_s12 }
 0x20f   : > { %7264 = vmatpush3.bf16.msra.mxu0 %v8791_v62  ;;  %v9147_v42 = vpop.permute.xlu1 %2913  ;;  %2265 = vmatprep.mubr.bf16.mxu0 %v8869_v43  ;;  %v7794_v62 = vld [vmem:[%s11472_s1 + $0x90] sm:$0xff]  }
 0x210   : > { %7265 = vmatprep.subr.bf16.mxu0 %v8815_v58  ;;  %v2500_v53 = vpop.permute.xlu0 %2499  ;;  %6958 = vmatmul.mubr.msk.bf16.vlgmr.msra.gmra.mrb[0].mxu1 %vm752_vm11, %v9100_v4 }
 0x211   : > { %3709 = vrot.lane.b32.xlu1 %v8020_v5, %s7854_s12  ;;  %v2547_v54 = vsel %vm2543_vm15, %v2500_v53, %v9021_v31  ;;  %v2546_v46 = vsel %vm2543_vm15, %v8854_v26, %v2500_v53  ;;  %2328 = vmatprep.mubr.bf16.mxu1 %v8869_v43 }
 0x212   : > { %3705 = vrot.lane.b32.xlu0 %v8097_v1, %s7854_s12  ;;  %2684 = vmatprep.subr.bf16.mxu1 %v2547_v54  ;;  %v2545_v1 = vsel %vm2543_vm15, %v8857_v15, %v8854_v26 }
 0x213   : > { %7266 = vmatpush3.bf16.msra.mxu0 %v8815_v58  ;;  %2685 = vmatpush1.bf16.msra.mxu1 %v2546_v46  ;;  %v9166_v5 = vpop.permute.xlu1 %2911 }
 0x214   : > { %7685 = vmatprep.subr.msk.bf16.mxu0 %vm302_vm1, %v8832_v6  ;;  %v9170_v39 = vpop.permute.xlu0 %2915  ;;  %v7795_v6 = vld [vmem:[%s11472_s1 + $0x98] sm:$0xff]  }
 0x215   : > { %3707 = vrot.lane.b32.xlu1 %v8025_v9, %s7854_s12 }
 0x216   : > { %6955 = vmatmul.mubr.msk.bf16.gmra.mrb[8].mxu0 %vm752_vm11, %v7794_v62  ;;  %3711 = vrot.lane.b32.xlu0 %v8029_v16, %s7854_s12 }
 0x217   : > { %7268 = vmatpush3.bf16.msra.mxu0 %v2211_v22  ;;  %v9182_v58 = vpop.permute.xlu1 %2923  ;;  %2275 = vmatprep.mubr.bf16.mxu0 %v8869_v43 }
 0x218   : > { %2611 = vmatprep.subr.bf16.mxu0 %v2545_v1  ;;  %v2510_v40 = vpop.permute.xlu0 %2509  ;;  %6959 = vmatmul.mubr.msk.bf16.gmra.mrb[4].mxu1 %vm752_vm11, %v9130_v8 }
 0x219   : > { %3715 = vrot.lane.b32.xlu1 %v8095_v0, %s7854_s12  ;;  %v2551_v9 = vsel %vm2543_vm15, %v2510_v40, %v9041_v29  ;;  %v2550_v16 = vsel %vm2543_vm15, %v8888_v50, %v2510_v40  ;;  %2338 = vmatprep.mubr.bf16.mxu1 %v8869_v43 }
 0x21a   : > { %3713 = vrot.lane.b32.xlu0 %v8031_v17, %s7854_s12  ;;  %2686 = vmatprep.subr.bf16.mxu1 %v2551_v9 }
 0x21b   : > { %2687 = vmatpush1.bf16.msra.mxu1 %v2550_v16  ;;  %v9199_v26 = vpop.permute.xlu1 %2921 }
 0x21c   : > { %v9201_v0 = vpop.permute.xlu0 %2925 }
 0x21d   : > { %3721 = vrot.lane.b32.xlu1 %v8048_v45, %s7854_s12 }
 0x21e   : > { %6956 = vmatmul.mubr.msk.bf16.gmra.mrb[12].mxu0 %vm752_vm11, %v7795_v6  ;;  %3719 = vrot.lane.b32.xlu0 %v8040_v33, %s7854_s12 }
 0x21f   : > { %v9208_v11 = vpop.permute.xlu1 %2931  ;;  %7269 = vmatprep.mubr.msk.bf16.mxu0 %vm752_vm11, %v9100_v4  ;;  %v2561_v4 = vsel %vm2543_vm15, %v8992_v36, %v8988_v12 }
 0x220   : > { %v2520_v17 = vpop.permute.xlu0 %2519  ;;  %6960 = vmatmul.mubr.msk.bf16.gmra.mrb[8].mxu1 %vm752_vm11, %v7794_v62 }
 0x221   : > { %3723 = vrot.lane.b32.xlu1 %v8050_v47, %s7854_s12  ;;  %v2555_v52 = vsel %vm2543_vm15, %v2520_v17, %v9060_v13  ;;  %v2554_v45 = vsel %vm2543_vm15, %v8921_v55, %v2520_v17  ;;  %2348 = vmatprep.mubr.bf16.mxu1 %v8869_v43  ;;  %v2544_v47 = vsel %vm2543_vm15, %v8875_v35, %v8857_v15 }
 0x222   : > { %3717 = vrot.lane.b32.xlu0 %v8046_v38, %s7854_s12  ;;  %2688 = vmatprep.subr.bf16.mxu1 %v2555_v52  ;;  %v2549_v38 = vsel %vm2543_vm15, %v8892_v20, %v8888_v50  ;;  %v2548_v35 = vsel %vm2543_vm15, %v8908_v27, %v8892_v20 }
 0x223   : > { %2689 = vmatpush1.bf16.msra.mxu1 %v2554_v45  ;;  %v9222_v33 = vpop.permute.xlu1 %2935 }
 0x224   : > { %v9224_v49 = vpop.permute.xlu0 %2933 }
 0x225   : > { %3727 = vrot.lane.b32.xlu1 %v8078_v57, %s7854_s12 }
 0x226   : > { %7270 = vmatmul.mubr.msk.bf16.vlgmr.msra.gmra.mrb[16].mxu0 %vm752_vm11, %v9130_v8  ;;  %3725 = vrot.lane.b32.xlu0 %v8105_v7, %s7854_s12 }
 0x227   : > { %2612 = vmatpush1.bf16.msra.mxu0 %v2544_v47  ;;  %v2540_v28 = vpop.permute.xlu1 %2539  ;;  %7273 = vmatprep.mubr.msk.bf16.mxu0 %vm752_vm11, %v7794_v62  ;;  %v7797_v62 = vld [vmem:[%s11472_s1 + $0xa8] sm:$0xff]  }
 0x228   : > { %2613 = vmatprep.subr.bf16.mxu0 %v2549_v38  ;;  %v2530_v57 = vpop.permute.xlu0 %2529  ;;  %6961 = vmatmul.mubr.msk.bf16.gmra.mrb[12].mxu1 %vm752_vm11, %v7795_v6  ;;  %v2562_v50 = vsel %vm2543_vm15, %v8988_v12, %v2540_v28  ;;  %v2563_v3 = vsel %vm2543_vm15, %v2540_v28, %v9080_v10  ;;  %v2609_v38 = vsel %vm302_vm1, %v9080_v10, 0  ;;  %v2943_v28 = vsel %vm2941_vm0, %v9107_v37, %v9104_v21 }
 0x229   : > { %3731 = vrot.lane.b32.xlu1 %v8089_v60, %s7854_s12  ;;  %v2559_v15 = vsel %vm2543_vm15, %v2530_v57, %v9089_v32  ;;  %v2558_v7 = vsel %vm2543_vm15, %v8961_v34, %v2530_v57  ;;  %2716 = vmatprep.mubr.bf16.mxu1 %v8869_v43  ;;  %v2553_v60 = vsel %vm2543_vm15, %v8924_v41, %v8921_v55  ;;  %v2603_v27 = vsel %vm302_vm1, %v2562_v50, 0  ;;  %v9276_v55 = vld [vmem:[%s11472_s1 + $0xa0] sm:$0xff]  }
 0x22a   : > { %3729 = vrot.lane.b32.xlu0 %v8075_v56, %s7854_s12  ;;  %2690 = vmatprep.subr.bf16.mxu1 %v2559_v15  ;;  %v2552_v56 = vsel %vm2543_vm15, %v8944_v51, %v8924_v41 }
 0x22b   : > { %2614 = vmatpush1.bf16.msra.mxu0 %v2548_v35  ;;  %2691 = vmatpush1.bf16.msra.mxu1 %v2558_v7  ;;  %v9257_v63 = vpop.permute.xlu1 %2909 }
 0x22c   : > { %2615 = vmatprep.subr.bf16.mxu0 %v2553_v60  ;;  %6983 = vmatprep.subr.msk.bf16.mxu1 %vm302_vm1, %v2563_v3  ;;  %v9262_v20 = vpop.permute.xlu0 %2899 }
 0x22d   : > { %3735 = vrot.lane.b32.xlu1 %v9067_v23, %s7854_s12  ;;  %v2557_v23 = vsel %vm2543_vm15, %v8963_v14, %v8961_v34  ;;  %v2560_v34 = vsel %vm2543_vm15, %v8978_v30, %v8992_v36  ;;  %vm4687_vm15 = vcmask 572848  }
 0x22e   : > { %7274 = vmatmul.mubr.msk.bf16.gmra.mrb[20].mxu0 %vm752_vm11, %v7795_v6  ;;  %3733 = vrot.lane.b32.xlu0 %v8196_v18, %s7854_s12  ;;  %v2597_v30 = vsel %vm302_vm1, %v2560_v34, 0  ;;  %v7798_v6 = vld [vmem:[%s11472_s1 + $0xb0] sm:$0xff]   ;;  %s7859_s12 = smov 116  }
 0x22f   : > { %2616 = vmatpush1.bf16.msra.mxu0 %v2552_v56  ;;  %2693 = vmatpush1.bf16.msra.mxu1 %v2603_v27  ;;  %v9281_v61 = vpop.permute.xlu1 %2919  ;;  %v9403_v56 = vld [vmem:[%s11472_s1 + $0xc8] sm:$0xff]   ;;  %v2942_v27 = vsel %vm2941_vm0, %v9120_v48, %v9107_v37  ;;  %v2946_v37 = vsel %vm2941_vm0, %v9135_v59, %v9116_v25  ;;  %v2951_v48 = vsel %vm2941_vm0, %v9147_v42, %v9170_v39 }
 0x230   : > { %2617 = vmatprep.subr.bf16.mxu0 %v2557_v23  ;;  %v2898_v41 = vpop.permute.xlu0 %2897  ;;  %2643 = vmatprep.mubr.bf16.mxu0 %v8869_v43 }
 0x231   : > { %v2945_v18 = vsel %vm2941_vm0, %v2898_v41, %v9262_v20  ;;  %v2944_v51 = vsel %vm2941_vm0, %v9104_v21, %v2898_v41  ;;  %v9384_v21 = vld [vmem:[%s11472_s1 + $0xc0] sm:$0xff]  }
 0x232   : > { %3082 = vmatprep.subr.bf16.mxu1 %v2945_v18  ;;  %6984 = vmatmul.mubr.msk.bf16.vlgmr.msra.gmra.mrb[0].mxu1 %vm752_vm11, %v9276_v55 }
 0x233   : > { %2618 = vmatpush1.bf16.msra.mxu0 %v2556_v19  ;;  %3083 = vmatpush1.bf16.msra.mxu1 %v2944_v51  ;;  %v9299_v44 = vpop.permute.xlu1 %2929  ;;  %v9431_v19 = vld [vmem:[%s11472_s1 + $0xd0] sm:$0xff]  }
 0x234   : > { %6978 = vmatprep.subr.msk.bf16.mxu0 %vm302_vm1, %v2561_v4  ;;  %v2908_v8 = vpop.permute.xlu0 %2907  ;;  %2726 = vmatprep.mubr.bf16.mxu1 %v8869_v43 }
 0x235   : > { %v2949_v14 = vsel %vm2941_vm0, %v2908_v8, %v9257_v63  ;;  %v2948_v2 = vsel %vm2941_vm0, %v9138_v24, %v2908_v8  ;;  %v2958_v8 = vsel %vm2941_vm0, %v9208_v11, %v9224_v49 }
 0x236   : > { %3084 = vmatprep.subr.bf16.mxu1 %v2949_v14  ;;  %v2959_v14 = vsel %vm2941_vm0, %v9224_v49, %v9222_v33  ;;  %v2995_v11 = vsel %vm302_vm1, %v2958_v8, 0  ;;  %v9589_v8 = vld [vmem:[%s11472_s1 + $0xf0] sm:$0xff]  }
 0x237   : > { %2620 = vmatpush1.bf16.msra.mxu0 %v2597_v30  ;;  %3085 = vmatpush1.bf16.msra.mxu1 %v2948_v2  ;;  %v9308_v12 = vpop.permute.xlu1 %2939  ;;  %v9469_v30 = vld [vmem:[%s11472_s1 + $0xd8] sm:$0xff]  }
 0x238   : > { %7277 = vmatprep.subr.bf16.mxu0 %v9021_v31  ;;  %v2918_v36 = vpop.permute.xlu0 %2917 }
 0x239   : > { %v2953_v53 = vsel %vm2941_vm0, %v2918_v36, %v9281_v61  ;;  %v2952_v54 = vsel %vm2941_vm0, %v9170_v39, %v2918_v36  ;;  %v2955_v39 = vsel %vm2941_vm0, %v9182_v58, %v9201_v0 }
 0x23a   : > { %6979 = vmatmul.mubr.msk.bf16.vlgmr.msra.gmra.mrb[0].mxu0 %vm752_vm11, %v9276_v55  ;;  %3086 = vmatprep.subr.bf16.mxu1 %v2953_v53 }
 0x23b   : > { %7278 = vmatpush3.bf16.msra.mxu0 %v9021_v31  ;;  %3087 = vmatpush1.bf16.msra.mxu1 %v2952_v54  ;;  %v9318_v46 = vpop.permute.xlu1 %3291  ;;  %v4057_v54 = vld [vmem:[%s11473_s2 + $0x8] sm:$0xff] }
 0x23c   : > { %7279 = vmatprep.subr.bf16.mxu0 %v9041_v29  ;;  %2653 = vmatprep.mubr.bf16.mxu0 %v8869_v43  ;;  %v2928_v22 = vpop.permute.xlu0 %2927 }
 0x23d   : > { %v2957_v1 = vsel %vm2941_vm0, %v2928_v22, %v9299_v44  ;;  %v2956_v40 = vsel %vm2941_vm0, %v9201_v0, %v2928_v22  ;;  %6985 = vmatmul.mubr.msk.bf16.gmra.mrb[4].mxu1 %vm752_vm11, %v7797_v62  ;;  %4071 = vperm.xlu1 %7733, %v4057_v54  }
 0x23e   : > { %3088 = vmatprep.subr.bf16.mxu1 %v2957_v1  ;;  %2736 = vmatprep.mubr.bf16.mxu1 %v8869_v43  ;;  %v4056_v1 = vld [vmem:[%s11473_s2] sm:$0xff] }
 0x23f   : > { %7280 = vmatpush3.bf16.msra.mxu0 %v9041_v29  ;;  %3089 = vmatpush1.bf16.msra.mxu1 %v2956_v40  ;;  %v9332_v31 = vpop.permute.xlu1 %3289 }
 0x240   : > { %7281 = vmatprep.subr.bf16.mxu0 %v9060_v13  ;;  %v9335_v9 = vpop.permute.xlu0 %3293  ;;  %4066 = vperm.xlu0 %7732, %v4056_v1   ;;  %v3340_v1 = vsel %vm3339_vm6, %v9332_v31, %v9318_v46  ;;  %v9639_v31 = vld [vmem:[#allocation5] sm:$0xff] }
 0x242   : > { %6980 = vmatmul.mubr.msk.bf16.gmra.mrb[4].mxu0 %vm752_vm11, %v7797_v62 }
 0x243   : > { %7282 = vmatpush3.bf16.msra.mxu0 %v9060_v13  ;;  %v9339_v16 = vpop.permute.xlu1 %3301  ;;  %2663 = vmatprep.mubr.bf16.mxu0 %v8869_v43 }
 0x244   : > { %7283 = vmatprep.subr.bf16.mxu0 %v9089_v32  ;;  %v2938_v29 = vpop.permute.xlu0 %2937 }
 0x245   : > { %v2960_v17 = vsel %vm2941_vm0, %v9222_v33, %v2938_v29  ;;  %v2961_v52 = vsel %vm2941_vm0, %v2938_v29, %v9308_v12  ;;  %6986 = vmatmul.mubr.msk.bf16.gmra.mrb[8].mxu1 %vm752_vm11, %v7798_v6  ;;  %v4058_v29 = vld [vmem:[%s11473_s2 + $0x10] sm:$0xff] }
 0x246   : > { %7009 = vmatprep.subr.msk.bf16.mxu1 %vm302_vm1, %v2961_v52  ;;  %v3001_v13 = vsel %vm302_vm1, %v2960_v17, 0  ;;  %2746 = vmatprep.mubr.bf16.mxu1 %v8869_v43 }
 0x247   : > { %7284 = vmatpush3.bf16.msra.mxu0 %v9089_v32  ;;  %3091 = vmatpush1.bf16.msra.mxu1 %v3001_v13  ;;  %v9355_v45 = vpop.permute.xlu1 %3299  ;;  %v7799_v32 = vld [vmem:[%s11472_s1 + $0xb8] sm:$0xff]  }
 0x248   : > { %7686 = vmatprep.subr.msk.bf16.mxu0 %vm302_vm1, %v9080_v10  ;;  %v9359_v47 = vpop.permute.xlu0 %3303  ;;  %v4059_v13 = vld [vmem:[%s11473_s2 + $0x18] sm:$0xff]  ;;  %4076 = vperm.xlu1 %7733, %v4058_v29  }
 0x249   : > { %4081 = vperm.xlu0 %7732, %v4059_v13  }
 0x24a   : > { %6981 = vmatmul.mubr.msk.bf16.gmra.mrb[8].mxu0 %vm752_vm11, %v7798_v6 }
 0x24b   : > { %7286 = vmatpush3.bf16.msra.mxu0 %v2609_v38  ;;  %v9367_v57 = vpop.permute.xlu1 %3313  ;;  %2673 = vmatprep.mubr.bf16.mxu0 %v8869_v43 }
 0x24c   : > { %3009 = vmatprep.subr.bf16.mxu0 %v2943_v28  ;;  %v9373_v15 = vpop.permute.xlu0 %3311  ;;  %v9520_v28 = vld [vmem:[%s11472_s1 + $0xe0] sm:$0xff]  }
 0x24d   : > { %6987 = vmatmul.mubr.msk.bf16.gmra.mrb[12].mxu1 %vm752_vm11, %v7799_v32 }
 0x24e   : > { %3114 = vmatprep.mubr.bf16.mxu1 %v8869_v43 }
 0x24f   : > { %v9377_v10 = vpop.permute.xlu1 %3321 }
 0x250   : > { %v9379_v7 = vpop.permute.xlu0 %3309 }
 0x252   : > { %6982 = vmatmul.mubr.msk.bf16.gmra.mrb[12].mxu0 %vm752_vm11, %v7799_v32 }
 0x253   : > { %v9387_v35 = vpop.permute.xlu1 %3319  ;;  %7287 = vmatprep.mubr.msk.bf16.mxu0 %vm752_vm11, %v9276_v55  ;;  %v2947_v55 = vsel %vm2941_vm0, %v9116_v25, %v9138_v24  ;;  %v2950_v25 = vsel %vm2941_vm0, %v9166_v5, %v9147_v42  ;;  %v2954_v5 = vsel %vm2941_vm0, %v9199_v26, %v9182_v58  ;;  %vm4700_vm0 = vcmask 769648  }
 0x254   : > { %v9391_v60 = vpop.permute.xlu0 %3323 }
 0x255   : > { %7010 = vmatmul.mubr.msk.bf16.vlgmr.msra.gmra.mrb[0].mxu1 %vm752_vm11, %v9384_v21 }
 0x256   : > { %3124 = vmatprep.mubr.bf16.mxu1 %v8869_v43 }
 0x257   : > { %v9396_v50 = vpop.permute.xlu1 %3331 }
 0x258   : > { %v9398_v3 = vpop.permute.xlu0 %3329 }
 0x25a   : > { %7288 = vmatmul.mubr.msk.bf16.vlgmr.msra.gmra.mrb[16].mxu0 %vm752_vm11, %v7797_v62 }
 0x25b   : > { %3010 = vmatpush1.bf16.msra.mxu0 %v2942_v27  ;;  %v3296_v23 = vpop.permute.xlu1 %3295  ;;  %7291 = vmatprep.mubr.msk.bf16.mxu0 %vm752_vm11, %v7798_v6  ;;  %v4061_v27 = vld [vmem:[%s11473_s2 + $0x28] sm:$0xff] }
 0x25c   : > { %3011 = vmatprep.subr.bf16.mxu0 %v2947_v55  ;;  %v9413_v41 = vpop.permute.xlu0 %3333  ;;  %v3342_v59 = vsel %vm3339_vm6, %v9335_v9, %v3296_v23  ;;  %4091 = vperm.xlu0 %7732, %v4061_v27  }
 0x25d   : > { %7011 = vmatmul.mubr.msk.bf16.gmra.mrb[4].mxu1 %vm752_vm11, %v9403_v56 }
 0x25e   : > { %3134 = vmatprep.mubr.bf16.mxu1 %v8869_v43 }
 0x25f   : > { %3012 = vmatpush1.bf16.msra.mxu0 %v2946_v37  ;;  %v3306_v24 = vpop.permute.xlu1 %3305  ;;  %v4062_v37 = vld [vmem:[%s11473_s2 + $0x30] sm:$0xff] }
 0x260   : > { %3013 = vmatprep.subr.bf16.mxu0 %v2951_v48  ;;  %v9424_v18 = vpop.permute.xlu0 %3297  ;;  %v3346_v0 = vsel %vm3339_vm6, %v9359_v47, %v3306_v24 }
 0x261   : > { %v3343_v51 = vsel %vm3339_vm6, %v3296_v23, %v9424_v18 }
 0x262   : > { %7292 = vmatmul.mubr.msk.bf16.gmra.mrb[20].mxu0 %vm752_vm11, %v7799_v32  ;;  %3480 = vmatprep.subr.bf16.mxu1 %v3343_v51 }
 0x263   : > { %3014 = vmatpush1.bf16.msra.mxu0 %v2950_v25  ;;  %3481 = vmatpush1.bf16.msra.mxu1 %v3342_v59  ;;  %v3316_v34 = vpop.permute.xlu1 %3315  ;;  %v9558_v25 = vld [vmem:[%s11472_s1 + $0xe8] sm:$0xff]   ;;  %v4249_v59 = vld [vmem:[%s11475_s4] sm:$0xff] }
 0x264   : > { %3015 = vmatprep.subr.bf16.mxu0 %v2955_v39  ;;  %v9442_v4 = vpop.permute.xlu0 %3307  ;;  %3041 = vmatprep.mubr.bf16.mxu0 %v8869_v43  ;;  %v3350_v33 = vsel %vm3339_vm6, %v9367_v57, %v3316_v34  ;;  %v3341_v39 = vsel %vm3339_vm6, %v9318_v46, %v9335_v9  ;;  %v3344_v46 = vsel %vm3339_vm6, %v9355_v45, %v9339_v16 }
 0x265   : > { %v3347_v42 = vsel %vm3339_vm6, %v3306_v24, %v9442_v4  ;;  %7012 = vmatmul.mubr.msk.bf16.gmra.mrb[8].mxu1 %vm752_vm11, %v9431_v19  ;;  %v4063_v24 = vld [vmem:[%s11473_s2 + $0x38] sm:$0xff] }
 0x266   : > { %3482 = vmatprep.subr.bf16.mxu1 %v3347_v42  ;;  %3144 = vmatprep.mubr.bf16.mxu1 %v8869_v43  ;;  %v4250_v42 = vld [vmem:[%s11475_s4 + $0x8] sm:$0xff] }
 0x267   : > { %3016 = vmatpush1.bf16.msra.mxu0 %v2954_v5  ;;  %3483 = vmatpush1.bf16.msra.mxu1 %v3346_v0  ;;  %v3326_v2 = vpop.permute.xlu1 %3325 }
 0x268   : > { %7004 = vmatprep.subr.msk.bf16.mxu0 %vm302_vm1, %v2959_v14  ;;  %v9462_v58 = vpop.permute.xlu0 %3317  ;;  %v3354_v62 = vsel %vm3339_vm6, %v9391_v60, %v3326_v2  ;;  %4101 = vperm.xlu0 %7732, %v4063_v24  }
 0x269   : > { %v3351_v26 = vsel %vm3339_vm6, %v3316_v34, %v9462_v58 }
 0x26a   : > { %3484 = vmatprep.subr.bf16.mxu1 %v3351_v26 }
 0x26b   : > { %3018 = vmatpush1.bf16.msra.mxu0 %v2995_v11  ;;  %3485 = vmatpush1.bf16.msra.mxu1 %v3350_v33  ;;  %v3336_v49 = vpop.permute.xlu1 %3335 }
 0x26c   : > { %7295 = vmatprep.subr.bf16.mxu0 %v9262_v20  ;;  %v9475_v36 = vpop.permute.xlu0 %3327  ;;  %v3358_v40 = vsel %vm3339_vm6, %v9413_v41, %v3336_v49  ;;  %4260 = vperm.xlu0 %7732, %v4250_v42  }
 0x26d   : > { %v3355_v53 = vsel %vm3339_vm6, %v3326_v2, %v9475_v36  ;;  %7013 = vmatmul.mubr.msk.bf16.gmra.mrb[12].mxu1 %vm752_vm11, %v9469_v30  ;;  %v3399_v17 = vsel %vm302_vm1, %v3358_v40, 0  ;;  %v4252_v2 = vld [vmem:[%s11475_s4 + $0x18] sm:$0xff] }
 0x26e   : > { %7005 = vmatmul.mubr.msk.bf16.vlgmr.msra.gmra.mrb[0].mxu0 %vm752_vm11, %v9384_v21  ;;  %3486 = vmatprep.subr.bf16.mxu1 %v3355_v53 }
 0x26f   : > { %7296 = vmatpush3.bf16.msra.mxu0 %v9262_v20  ;;  %3051 = vmatprep.mubr.bf16.mxu0 %v8869_v43  ;;  %v9490_v22 = vpop.permute.xlu1 %3689 }
 0x270   : > { %7297 = vmatprep.subr.bf16.mxu0 %v9257_v63  ;;  %3487 = vmatpush1.bf16.msra.mxu1 %v3354_v62  ;;  %v9498_v6 = vpop.permute.xlu0 %3337  ;;  %v9618_v62 = vld [vmem:[%s11472_s1 + $0xf8] sm:$0xff]  }
 0x271   : > { %v3359_v20 = vsel %vm3339_vm6, %v3336_v49, %v9498_v6  ;;  %3512 = vmatprep.mubr.bf16.mxu1 %v8869_v43  ;;  %4270 = vperm.xlu0 %7732, %v4252_v2  }
 0x272   : > { %7035 = vmatprep.subr.msk.bf16.mxu1 %vm302_vm1, %v3359_v20 }
 0x273   : > { %7298 = vmatpush3.bf16.msra.mxu0 %v9257_v63  ;;  %v9509_v52 = vpop.permute.xlu1 %3687  ;;  %v4060_v63 = vld [vmem:[%s11473_s2 + $0x20] sm:$0xff] }
 0x274   : > { %7299 = vmatprep.subr.bf16.mxu0 %v9281_v61  ;;  %3489 = vmatpush1.bf16.msra.mxu1 %v3399_v17  ;;  %v9515_v38 = vpop.permute.xlu0 %3691 }
 0x275   : > { %4086 = vperm.xlu1 %7733, %v4060_v63  }
 0x276   : > { %7006 = vmatmul.mubr.msk.bf16.gmra.mrb[4].mxu0 %vm752_vm11, %v9403_v56 }
 0x277   : > { %7300 = vmatpush3.bf16.msra.mxu0 %v9281_v61  ;;  %3061 = vmatprep.mubr.bf16.mxu0 %v8869_v43  ;;  %v9529_v32 = vpop.permute.xlu1 %3695 }
 0x278   : > { %7301 = vmatprep.subr.bf16.mxu0 %v9299_v44  ;;  %v3694_v55 = vpop.permute.xlu0 %3693  ;;  %7036 = vmatmul.mubr.msk.bf16.vlgmr.msra.gmra.mrb[0].mxu1 %vm752_vm11, %v9520_v28 }
 0x279   : > { %v3741_v23 = vsel %vm3737_vm7, %v3694_v55, %v9529_v32  ;;  %v3740_v61 = vsel %vm3737_vm7, %v9515_v38, %v3694_v55  ;;  %3522 = vmatprep.mubr.bf16.mxu1 %v8869_v43  ;;  %4096 = vperm.xlu1 %7733, %v4062_v37   ;;  %v9695_v55 = vld [vmem:[%s11472_s1 + $0x100] sm:$0xff]  }
 0x27a   : > { %3878 = vmatprep.subr.bf16.mxu1 %v3741_v23 }
 0x27b   : > { %7302 = vmatpush3.bf16.msra.mxu0 %v9299_v44  ;;  %3879 = vmatpush1.bf16.msra.mxu1 %v3740_v61  ;;  %v9546_v48 = vpop.permute.xlu1 %3701  ;;  %v3007_v44 = vsel %vm302_vm1, %v9308_v12, 0 }
 0x27c   : > { %7687 = vmatprep.subr.msk.bf16.mxu0 %vm302_vm1, %v9308_v12  ;;  %v9553_v51 = vpop.permute.xlu0 %3699  ;;  %v4251_v12 = vld [vmem:[%s11475_s4 + $0x10] sm:$0xff] }
 0x27d   : > { %4255 = vperm.xlu1 %7733, %v4249_v59  }
 0x27e   : > { %7007 = vmatmul.mubr.msk.bf16.gmra.mrb[8].mxu0 %vm752_vm11, %v9431_v19 }
 0x27f   : > { %7304 = vmatpush3.bf16.msra.mxu0 %v3007_v44  ;;  %3071 = vmatprep.mubr.bf16.mxu0 %v8869_v43  ;;  %v3704_v34 = vpop.permute.xlu1 %3703 }
 0x280   : > { %3407 = vmatprep.subr.bf16.mxu0 %v3341_v39  ;;  %v9574_v5 = vpop.permute.xlu0 %3697  ;;  %7037 = vmatmul.mubr.msk.bf16.gmra.mrb[4].mxu1 %vm752_vm11, %v9558_v25  ;;  %v3744_v26 = vsel %vm3737_vm7, %v9546_v48, %v3704_v34 }
 0x281   : > { %3532 = vmatprep.mubr.bf16.mxu1 %v8869_v43  ;;  %4265 = vperm.xlu1 %7733, %v4251_v12   ;;  %v3742_v23 = vsel %vm3737_vm7, %v9574_v5, %v9553_v51 }
 0x283   : > { %v9582_v9 = vpop.permute.xlu1 %3709 }
 0x284   : > { %v9584_v0 = vpop.permute.xlu0 %3705 }
 0x285   : > { %v3745_v14 = vsel %vm3737_vm7, %v3704_v34, %v9584_v0 }
 0x286   : > { %7008 = vmatmul.mubr.msk.bf16.gmra.mrb[12].mxu0 %vm752_vm11, %v9469_v30  ;;  %3880 = vmatprep.subr.bf16.mxu1 %v3745_v14 }
 0x287   : > { %7305 = vmatprep.mubr.msk.bf16.mxu0 %vm752_vm11, %v9384_v21  ;;  %3881 = vmatpush1.bf16.msra.mxu1 %v3744_v26  ;;  %v9602_v11 = vpop.permute.xlu1 %3707 }
 0x288   : > { %v9604_v33 = vpop.permute.xlu0 %3711  ;;  %7038 = vmatmul.mubr.msk.bf16.gmra.mrb[8].mxu1 %vm752_vm11, %v9589_v8 }
 0x289   : > { %3542 = vmatprep.mubr.bf16.mxu1 %v8869_v43  ;;  %v3345_v43 = vsel %vm3339_vm6, %v9339_v16, %v9359_v47  ;;  %v3349_v47 = vsel %vm3339_vm6, %v9373_v15, %v9367_v57  ;;  %v3353_v16 = vsel %vm3339_vm6, %v9377_v10, %v9391_v60  ;;  %v3356_v60 = vsel %vm3339_vm6, %v9398_v3, %v9396_v50 }
 0x28b   : > { %v9609_v49 = vpop.permute.xlu1 %3715 }
 0x28c   : > { %v3714_v53 = vpop.permute.xlu0 %3713 }
 0x28d   : > { %v3749_v54 = vsel %vm3737_vm7, %v3714_v53, %v9609_v49  ;;  %v3748_v21 = vsel %vm3737_vm7, %v9604_v33, %v3714_v53 }
 0x28e   : > { %7306 = vmatmul.mubr.msk.bf16.vlgmr.msra.gmra.mrb[16].mxu0 %vm752_vm11, %v9403_v56  ;;  %3882 = vmatprep.subr.bf16.mxu1 %v3749_v54 }
 0x28f   : > { %3408 = vmatpush1.bf16.msra.mxu0 %v3340_v1  ;;  %3883 = vmatpush1.bf16.msra.mxu1 %v3748_v21  ;;  %v9628_v40 = vpop.permute.xlu1 %3721 }
 0x290   : > { %3409 = vmatprep.subr.bf16.mxu0 %v3345_v43  ;;  %v9630_v20 = vpop.permute.xlu0 %3719  ;;  %7309 = vmatprep.mubr.msk.bf16.mxu0 %vm752_vm11, %v9431_v19  ;;  %v3348_v19 = vsel %vm3339_vm6, %v9379_v7, %v9373_v15  ;;  %v3352_v15 = vsel %vm3339_vm6, %v9387_v35, %v9377_v10  ;;  %v3393_v10 = vsel %vm302_vm1, %v3356_v60, 0 }
 0x291   : > { %7039 = vmatmul.mubr.msk.bf16.gmra.mrb[12].mxu1 %vm752_vm11, %v9618_v62  ;;  %v3751_v61 = vsel %vm3737_vm7, %v9630_v20, %v9628_v40 }
 0x292   : > { %3910 = vmatprep.mubr.bf16.mxu1 %v9639_v31 }
 0x293   : > { %3410 = vmatpush1.bf16.msra.mxu0 %v3344_v46  ;;  %v3724_v56 = vpop.permute.xlu1 %3723 }
 0x294   : > { %3411 = vmatprep.subr.bf16.mxu0 %v3349_v47  ;;  %v9645_v29 = vpop.permute.xlu0 %3717  ;;  %v3752_v7 = vsel %vm3737_vm7, %v9628_v40, %v3724_v56 }
 0x295   : > { %v3750_v37 = vsel %vm3737_vm7, %v9645_v29, %v9630_v20 }
 0x296   : > { %7310 = vmatmul.mubr.msk.bf16.gmra.mrb[20].mxu0 %vm752_vm11, %v9469_v30  ;;  %v3357_v30 = vsel %vm3339_vm6, %v9396_v50, %v9413_v41  ;;  %vm4713_vm6 = vcmask 966448  }
 0x297   : > { %3412 = vmatpush1.bf16.msra.mxu0 %v3348_v19  ;;  %v9655_v45 = vpop.permute.xlu1 %3727  ;;  %3439 = vmatprep.mubr.bf16.mxu0 %v9639_v31 }
 0x298   : > { %3413 = vmatprep.subr.bf16.mxu0 %v3353_v16  ;;  %v9658_v57 = vpop.permute.xlu0 %3725 }
 0x299   : > { %v3753_v17 = vsel %vm3737_vm7, %v3724_v56, %v9658_v57 }
 0x29a   : > { %3884 = vmatprep.subr.bf16.mxu1 %v3753_v17 }
 0x29b   : > { %3414 = vmatpush1.bf16.msra.mxu0 %v3352_v15  ;;  %3885 = vmatpush1.bf16.msra.mxu1 %v3752_v7  ;;  %v9673_v13 = vpop.permute.xlu1 %3731 }
 0x29c   : > { %7030 = vmatprep.subr.msk.bf16.mxu0 %vm302_vm1, %v3357_v30  ;;  %v9676_v63 = vpop.permute.xlu0 %3729 }
 0x29d   : > { %v3755_v24 = vsel %vm3737_vm7, %v9676_v63, %v9673_v13 }
 0x29f   : > { %3416 = vmatpush1.bf16.msra.mxu0 %v3393_v10  ;;  %v9679_v35 = vpop.permute.xlu1 %3735 }
 0x2a0   : > { %7313 = vmatprep.subr.bf16.mxu0 %v9424_v18  ;;  %v3734_v3 = vpop.permute.xlu0 %3733 }
 0x2a1   : > { %v3756_v27 = vsel %vm3737_vm7, %v9673_v13, %v3734_v3  ;;  %v3757_v50 = vsel %vm3737_vm7, %v3734_v3, %v9679_v35 }
 0x2a2   : > { %7031 = vmatmul.mubr.msk.bf16.vlgmr.msra.gmra.mrb[0].mxu0 %vm752_vm11, %v9520_v28  ;;  %7061 = vmatprep.subr.msk.bf16.mxu1 %vm302_vm1, %v3757_v50  ;;  %v3797_v41 = vsel %vm302_vm1, %v3756_v27, 0 }
 0x2a3   : > { %7314 = vmatpush3.bf16.msra.mxu0 %v9424_v18  ;;  %3449 = vmatprep.mubr.bf16.mxu0 %v9639_v31  ;;  %v7809_v18 = vld [vmem:[%s11472_s1 + $0x108] sm:$0xff]  }
 0x2a4   : > { %7315 = vmatprep.subr.bf16.mxu0 %v9442_v4  ;;  %3887 = vmatpush1.bf16.msra.mxu1 %v3797_v41 }
 0x2a7   : > { %7316 = vmatpush3.bf16.msra.mxu0 %v9442_v4  ;;  %7062 = vmatmul.mubr.msk.bf16.vlgmr.msra.gmra.mrb[0].mxu1 %vm752_vm11, %v9695_v55  ;;  %v3405_v4 = vsel %vm302_vm1, %v9498_v6, 0 }
 0x2a8   : > { %7317 = vmatprep.subr.bf16.mxu0 %v9462_v58  ;;  %3920 = vmatprep.mubr.bf16.mxu1 %v9639_v31 }
 0x2aa   : > { %7032 = vmatmul.mubr.msk.bf16.gmra.mrb[4].mxu0 %vm752_vm11, %v9558_v25 }
 0x2ab   : > { %7318 = vmatpush3.bf16.msra.mxu0 %v9462_v58  ;;  %3459 = vmatprep.mubr.bf16.mxu0 %v9639_v31  ;;  %v3739_v58 = vsel %vm3737_vm7, %v9490_v22, %v9515_v38  ;;  %v3738_v38 = vsel %vm3737_vm7, %v9509_v52, %v9490_v22  ;;  %v3747_v22 = vsel %vm3737_vm7, %v9582_v9, %v9604_v33 }
 0x2ac   : > { %7319 = vmatprep.subr.bf16.mxu0 %v9475_v36  ;;  %v3746_v52 = vsel %vm3737_vm7, %v9602_v11, %v9582_v9 }
 0x2af   : > { %7320 = vmatpush3.bf16.msra.mxu0 %v9475_v36  ;;  %7063 = vmatmul.mubr.msk.bf16.gmra.mrb[4].mxu1 %vm752_vm11, %v7809_v18  ;;  %v7810_v36 = vld [vmem:[%s11472_s1 + $0x110] sm:$0xff]  }
 0x2b0   : > { %7688 = vmatprep.subr.msk.bf16.mxu0 %vm302_vm1, %v9498_v6  ;;  %3930 = vmatprep.mubr.bf16.mxu1 %v9639_v31  ;;  %v7811_v6 = vld [vmem:[%s11472_s1 + $0x118] sm:$0xff]  }
 0x2b2   : > { %7033 = vmatmul.mubr.msk.bf16.gmra.mrb[8].mxu0 %vm752_vm11, %v9589_v8 }
 0x2b3   : > { %7322 = vmatpush3.bf16.msra.mxu0 %v3405_v4  ;;  %3469 = vmatprep.mubr.bf16.mxu0 %v9639_v31 }
 0x2b4   : > { %3805 = vmatprep.subr.bf16.mxu0 %v3739_v58 }
 0x2b7   : > { %7064 = vmatmul.mubr.msk.bf16.gmra.mrb[8].mxu1 %vm752_vm11, %v7810_v36 }
 0x2b8   : > { %3940 = vmatprep.mubr.bf16.mxu1 %v9639_v31 }
 0x2ba   : > { %7034 = vmatmul.mubr.msk.bf16.gmra.mrb[12].mxu0 %vm752_vm11, %v9618_v62 }
 0x2bb   : > { %7323 = vmatprep.mubr.msk.bf16.mxu0 %vm752_vm11, %v9520_v28  ;;  %v3743_v28 = vsel %vm3737_vm7, %v9553_v51, %v9546_v48  ;;  %v3754_v48 = vsel %vm3737_vm7, %v9655_v45, %v9676_v63  ;;  %vm4746_vm7 = vcmask 556032  }
 0x2bc   : > { %v3791_v51 = vsel %vm302_vm1, %v3754_v48, 0  ;;  %v9817_v42 = vpop.permute.xlu1 %4071 }
 0x2bf   : > { %7065 = vmatmul.mubr.msk.bf16.gmra.mrb[12].mxu1 %vm752_vm11, %v7811_v6  ;;  %v9814_v44 = vpop.permute.xlu0 %4066 }
 0x2c0   : > { %4374 = vmatprep.mubr.bf16.mxu1 %v9639_v31 }
 0x2c2   : > { %7324 = vmatmul.mubr.msk.bf16.vlgmr.msra.gmra.mrb[16].mxu0 %vm752_vm11, %v9558_v25  ;;  %v9802_v25 = vpack.i.bf16 %v9639_v31, %v9639_v31 }
 0x2c3   : > { %3806 = vmatpush1.bf16.msra.mxu0 %v3738_v38  ;;  %7327 = vmatprep.mubr.msk.bf16.mxu0 %vm752_vm11, %v9589_v8 }
 0x2c4   : > { %3807 = vmatprep.subr.bf16.mxu0 %v3743_v28  ;;  %7740 = vrot.lane.b32.xlu1 %v9802_v25, %s7839_s8 }
 0x2c5   : > { %7735 = vrot.lane.b32.xlu0 %v9802_v25, %s7838_s30 }
 0x2c7   : > { %3808 = vmatpush1.bf16.msra.mxu0 %v3742_v23 }
 0x2c8   : > { %3809 = vmatprep.subr.bf16.mxu0 %v3747_v22  ;;  %7750 = vrot.lane.b32.xlu1 %v9802_v25, %s7841_s10  ;;  %v9825_v1 = vpop.permute.xlu0 %4081 }
 0x2c9   : > { %7745 = vrot.lane.b32.xlu0 %v9802_v25, %s7840_s9 }
 0x2ca   : > { %7328 = vmatmul.mubr.msk.bf16.gmra.mrb[20].mxu0 %vm752_vm11, %v9618_v62 }
 0x2cb   : > { %3810 = vmatpush1.bf16.msra.mxu0 %v3746_v52  ;;  %3837 = vmatprep.mubr.bf16.mxu0 %v9639_v31 }
 0x2cc   : > { %3811 = vmatprep.subr.bf16.mxu0 %v3751_v61  ;;  %7755 = vrot.lane.b32.xlu1 %v9802_v25, %s7846_s15 }
 0x2cf   : > { %3812 = vmatpush1.bf16.msra.mxu0 %v3750_v37 }
 0x2d0   : > { %7056 = vmatprep.subr.msk.bf16.mxu0 %vm302_vm1, %v3755_v24 }
 0x2d3   : > { %3814 = vmatpush1.bf16.msra.mxu0 %v3791_v51 }
 0x2d4   : > { %7331 = vmatprep.subr.bf16.mxu0 %v9529_v32 }
 0x2d6   : > { %7057 = vmatmul.mubr.msk.bf16.vlgmr.msra.gmra.mrb[0].mxu0 %vm752_vm11, %v9695_v55 }
 0x2d7   : > { %7332 = vmatpush3.bf16.msra.mxu0 %v9529_v32  ;;  %3847 = vmatprep.mubr.bf16.mxu0 %v9639_v31  ;;  %v3803_v32 = vsel %vm302_vm1, %v9679_v35, 0 }
 0x2d8   : > { %7333 = vmatprep.subr.bf16.mxu0 %v9584_v0 }
 0x2db   : > { %7334 = vmatpush3.bf16.msra.mxu0 %v9584_v0  ;;  %v9833_v30 = vpop.permute.xlu0 %4091 }
 0x2dc   : > { %7335 = vmatprep.subr.bf16.mxu0 %v9609_v49 }
 0x2de   : > { %7058 = vmatmul.mubr.msk.bf16.gmra.mrb[4].mxu0 %vm752_vm11, %v7809_v18 }
 0x2df   : > { %7336 = vmatpush3.bf16.msra.mxu0 %v9609_v49  ;;  %3857 = vmatprep.mubr.bf16.mxu0 %v9639_v31  ;;  %v9822_v49 = vpop.permute.xlu1 %4076 }
 0x2e0   : > { %7337 = vmatprep.subr.bf16.mxu0 %v9658_v57 }
 0x2e3   : > { %7338 = vmatpush3.bf16.msra.mxu0 %v9658_v57 }
 0x2e4   : > { %7689 = vmatprep.subr.msk.bf16.mxu0 %vm302_vm1, %v9679_v35  ;;  %vm4489_vm1 = vcmask 293888  }
 0x2e5   : > { %4490 = vst.msk [vmem:[#allocation5 + $0x28] sm:$0xff] %vm4489_vm1, %v9639_v31  ;;  %4496 = vst.msk [vmem:[#allocation5 + $0x58] sm:$0xff] %vm4489_vm1, %v9639_v31  ;;  %vm4726_vm1 = vcmask 1048560  }
 0x2e6   : > { %7059 = vmatmul.mubr.msk.bf16.gmra.mrb[8].mxu0 %vm752_vm11, %v7810_v36 }
 0x2e7   : > { %7340 = vmatpush3.bf16.msra.mxu0 %v3803_v32  ;;  %3867 = vmatprep.mubr.bf16.mxu0 %v9639_v31  ;;  %v9841_v28 = vpop.permute.xlu0 %4101 }
 0x2ee   : > { %7060 = vmatmul.mubr.msk.bf16.gmra.mrb[12].mxu0 %vm752_vm11, %v7811_v6 }
 0x2ef   : > { %7341 = vmatprep.mubr.msk.bf16.mxu0 %vm752_vm11, %v9695_v55 }
 0x2f4   : > { %v9830_v57 = vpop.permute.xlu1 %4086 }
 0x2f6   : > { %7342 = vmatmul.mubr.msk.bf16.vlgmr.msra.gmra.mrb[16].mxu0 %vm752_vm11, %v7809_v18 }
 0x2f7   : > { %7345 = vmatprep.mubr.msk.bf16.mxu0 %vm752_vm11, %v7810_v36 }
 0x2f8   : > { %v9838_v4 = vpop.permute.xlu1 %4096 }
 0x2fe   : > { %7346 = vmatmul.mubr.msk.bf16.gmra.mrb[20].mxu0 %vm752_vm11, %v7811_v6  ;;  %vm4728_vm11 = vcmask 113664  }
 0x2ff   : > { %4321 = vmatprep.mubr.bf16.mxu0 %v9639_v31 }
 0x37a   : > { %v3912_v59 = vpop.f32.mrb[0].mxu1 }
 0x37b   : > { %v4106_v39 = vadd.f32 %v9814_v44, %v3912_v59  ;;  %v3914_v34 = vpop.f32.mrb[1].mxu1 }
 0x37c   : > { %v4107_v5 = vadd.f32 %v9814_v44, %v3914_v34  ;;  %v3916_v12 = vpop.f32.mrb[2].mxu1  ;;  %v9849_v34 = vld [vmem:[%s11474_s3] sm:$0xff]  }
 0x37d   : > { %v4111_v9 = vadd.f32 %v9817_v42, %v3916_v12  ;;  %v3918_v0 = vpop.f32.mrb[3].mxu1  ;;  %v4146_v14 = vmax.f32 %v4106_v39, 0.0 }
 0x37e   : > { %v4112_v8 = vadd.f32 %v9817_v42, %v3918_v0  ;;  %v4147_v26 = vmax.f32 %v4107_v5, 0.0  ;;  %v9857_v5 = vld [vmem:[%s11474_s3 + $0x8] sm:$0xff]  }
 0x37f   : > { %v4151_v2 = vmax.f32 %v4111_v9, 0.0 }
 0x380   : > { %v4152_v11 = vmax.f32 %v4112_v8, 0.0 }
 0x381   : > { %v4186_v33 = vpack.c.bf16 %v4151_v2, %v4146_v14 }
 0x382   : > { %v4187_v53 = vpack.c.bf16 %v4152_v11, %v4147_v26  ;;  %v3922_v54 = vpop.f32.mrb[4].mxu1 }
 0x383   : > { %v4116_v21 = vadd.f32 %v9822_v49, %v3922_v54  ;;  %v3924_v62 = vpop.f32.mrb[5].mxu1 }
 0x384   : > { %v4117_v43 = vadd.f32 %v9822_v49, %v3924_v62  ;;  %v3926_v40 = vpop.f32.mrb[6].mxu1  ;;  %4342 = vmatprep.subr.bf16.mxu1 %v4187_v53 }
 0x385   : > { %v4121_v20 = vadd.f32 %v9825_v1, %v3926_v40  ;;  %v3928_v46 = vpop.f32.mrb[7].mxu1  ;;  %4343 = vmatpush1.bf16.msra.mxu1 %v4186_v33  ;;  %v4156_v56 = vmax.f32 %v4116_v21, 0.0 }
 0x386   : > { %v4122_v47 = vadd.f32 %v9825_v1, %v3928_v46  ;;  %v4157_v19 = vmax.f32 %v4117_v43, 0.0 }
 0x387   : > { %v4161_v29 = vmax.f32 %v4121_v20, 0.0 }
 0x388   : > { %v4162_v16 = vmax.f32 %v4122_v47, 0.0 }
 0x389   : > { %v4191_v45 = vpack.c.bf16 %v4161_v29, %v4156_v56 }
 0x38a   : > { %v4192_v17 = vpack.c.bf16 %v4162_v16, %v4157_v19  ;;  %v3932_v15 = vpop.f32.mrb[8].mxu1 }
 0x38b   : > { %v4126_v7 = vadd.f32 %v9830_v57, %v3932_v15  ;;  %v3934_v60 = vpop.f32.mrb[9].mxu1 }
 0x38c   : > { %v4127_v13 = vadd.f32 %v9830_v57, %v3934_v60  ;;  %v3936_v63 = vpop.f32.mrb[10].mxu1  ;;  %4344 = vmatprep.subr.bf16.mxu1 %v4192_v17 }
 0x38d   : > { %v4131_v10 = vadd.f32 %v9833_v30, %v3936_v63  ;;  %v3938_v35 = vpop.f32.mrb[11].mxu1  ;;  %4345 = vmatpush1.bf16.msra.mxu1 %v4191_v45  ;;  %v4166_v27 = vmax.f32 %v4126_v7, 0.0 }
 0x38e   : > { %v4132_v3 = vadd.f32 %v9833_v30, %v3938_v35  ;;  %v4167_v41 = vmax.f32 %v4127_v13, 0.0 }
 0x38f   : > { %v4171_v50 = vmax.f32 %v4131_v10, 0.0 }
 0x390   : > { %v4172_v55 = vmax.f32 %v4132_v3, 0.0 }
 0x391   : > { %v4196_v18 = vpack.c.bf16 %v4171_v50, %v4166_v27 }
 0x392   : > { %v4197_v58 = vpack.c.bf16 %v4172_v55, %v4167_v41  ;;  %v3942_v36 = vpop.f32.mrb[12].mxu1 }
 0x393   : > { %v4136_v6 = vadd.f32 %v9838_v4, %v3942_v36  ;;  %v3944_v38 = vpop.f32.mrb[13].mxu1 }
 0x394   : > { %v4137_v23 = vadd.f32 %v9838_v4, %v3944_v38  ;;  %v3946_v22 = vpop.f32.mrb[14].mxu1  ;;  %4346 = vmatprep.subr.bf16.mxu1 %v4197_v58 }
 0x395   : > { %v4141_v52 = vadd.f32 %v9841_v28, %v3946_v22  ;;  %v3948_v61 = vpop.f32.mrb[15].mxu1  ;;  %4347 = vmatpush1.bf16.msra.mxu1 %v4196_v18  ;;  %v4176_v48 = vmax.f32 %v4136_v6, 0.0 }
 0x396   : > { %v4142_v37 = vadd.f32 %v9841_v28, %v3948_v61  ;;  %v4177_v51 = vmax.f32 %v4137_v23, 0.0 }
 0x397   : > { %v4181_v24 = vmax.f32 %v4141_v52, 0.0 }
 0x398   : > { %v4182_v32 = vmax.f32 %v4142_v37, 0.0 }
 0x399   : > { %v4201_v59 = vpack.c.bf16 %v4181_v24, %v4176_v48 }
 0x39a   : > { %v4202_v39 = vpack.c.bf16 %v4182_v32, %v4177_v51 }
 0x39c   : > { %4348 = vmatprep.subr.bf16.mxu1 %v4202_v39 }
 0x39d   : > { %4349 = vmatpush1.bf16.msra.mxu1 %v4201_v59 }
 0x3a0   : > { %7074 = vmatmul.mubr.msk.bf16.vlgmr.msra.gmra.mrb[16].mxu1 %vm489_vm9, %v9849_v34 }
 0x3a1   : > { %4384 = vmatprep.mubr.bf16.mxu1 %v9639_v31 }
 0x3a8   : > { %7075 = vmatmul.mubr.msk.bf16.gmra.mrb[20].mxu1 %vm489_vm9, %v9857_v5 }
 0x3a9   : > { %v3839_v12 = vpop.f32.mrb[0].mxu0  ;;  %7357 = vmatprep.mubr.msk.bf16.mxu1 %vm489_vm9, %v9849_v34 }
 0x3aa   : > { %v4104_v9 = vadd.f32 %v9814_v44, %v3839_v12  ;;  %v3841_v0 = vpop.f32.mrb[1].mxu0 }
 0x3ab   : > { %v4105_v8 = vadd.f32 %v9814_v44, %v3841_v0  ;;  %v3843_v14 = vpop.f32.mrb[2].mxu0 }
 0x3ac   : > { %v4109_v2 = vadd.f32 %v9817_v42, %v3843_v14  ;;  %v3845_v26 = vpop.f32.mrb[3].mxu0  ;;  %v4144_v33 = vmax.f32 %v4104_v9, 0.0 }
 0x3ad   : > { %v4110_v11 = vadd.f32 %v9817_v42, %v3845_v26  ;;  %v4145_v54 = vmax.f32 %v4105_v8, 0.0 }
 0x3ae   : > { %v4149_v53 = vmax.f32 %v4109_v2, 0.0 }
 0x3af   : > { %v4150_v21 = vmax.f32 %v4110_v11, 0.0 }
 0x3b0   : > { %v4184_v62 = vpack.c.bf16 %v4149_v53, %v4144_v33 }
 0x3b1   : > { %v4185_v43 = vpack.c.bf16 %v4150_v21, %v4145_v54  ;;  %v3849_v40 = vpop.f32.mrb[4].mxu0 }
 0x3b2   : > { %v4114_v20 = vadd.f32 %v9822_v49, %v3849_v40  ;;  %v3851_v46 = vpop.f32.mrb[5].mxu0 }
 0x3b3   : > { %v4115_v47 = vadd.f32 %v9822_v49, %v3851_v46  ;;  %v3853_v56 = vpop.f32.mrb[6].mxu0  ;;  %4289 = vmatprep.subr.bf16.mxu0 %v4185_v43 }
 0x3b4   : > { %v4119_v29 = vadd.f32 %v9825_v1, %v3853_v56  ;;  %v3855_v19 = vpop.f32.mrb[7].mxu0  ;;  %4290 = vmatpush1.bf16.msra.mxu0 %v4184_v62  ;;  %v4154_v45 = vmax.f32 %v4114_v20, 0.0 }
 0x3b5   : > { %v4120_v16 = vadd.f32 %v9825_v1, %v3855_v19  ;;  %v4155_v15 = vmax.f32 %v4115_v47, 0.0 }
 0x3b6   : > { %v4159_v17 = vmax.f32 %v4119_v29, 0.0 }
 0x3b7   : > { %v4160_v7 = vmax.f32 %v4120_v16, 0.0 }
 0x3b8   : > { %v4189_v60 = vpack.c.bf16 %v4159_v17, %v4154_v45 }
 0x3b9   : > { %v4190_v13 = vpack.c.bf16 %v4160_v7, %v4155_v15  ;;  %v3859_v63 = vpop.f32.mrb[8].mxu0 }
 0x3ba   : > { %v4124_v10 = vadd.f32 %v9830_v57, %v3859_v63  ;;  %v3861_v35 = vpop.f32.mrb[9].mxu0  ;;  %v4900_v63 = vld [vmem:[#allocation5 + $0x58] sm:$0xff] }
 0x3bb   : > { %v4125_v3 = vadd.f32 %v9830_v57, %v3861_v35  ;;  %v3863_v27 = vpop.f32.mrb[10].mxu0  ;;  %4291 = vmatprep.subr.bf16.mxu0 %v4190_v13  ;;  %v4894_v13 = vld [vmem:[#allocation5 + $0x28] sm:$0xff] }
 0x3bc   : > { %v4129_v50 = vadd.f32 %v9833_v30, %v3863_v27  ;;  %v3865_v41 = vpop.f32.mrb[11].mxu0  ;;  %4292 = vmatpush1.bf16.msra.mxu0 %v4189_v60  ;;  %v4164_v18 = vmax.f32 %v4124_v10, 0.0  ;;  %4923 = vrot.lane.b32.xlu0 %v4894_v13, %s7840_s9  ;;  %v4256_v10 = vpop.permute.xlu1 %4255 }
 0x3bd   : > { %v4130_v55 = vadd.f32 %v9833_v30, %v3865_v41  ;;  %v4165_v36 = vmax.f32 %v4125_v3, 0.0  ;;  %5001 = vrot.lane.b32.xlu1 %v4894_v13, %s7841_s10  ;;  %v4261_v27 = vpop.permute.xlu0 %4260 }
 0x3be   : > { %v4169_v58 = vmax.f32 %v4129_v50, 0.0 }
 0x3bf   : > { %v4170_v6 = vmax.f32 %v4130_v55, 0.0 }
 0x3c0   : > { %v4194_v38 = vpack.c.bf16 %v4169_v58, %v4164_v18  ;;  %4935 = vrot.lane.b32.xlu0 %v4900_v63, %s7840_s9 }
 0x3c1   : > { %v4195_v23 = vpack.c.bf16 %v4170_v6, %v4165_v36  ;;  %v3869_v22 = vpop.f32.mrb[12].mxu0  ;;  %5013 = vrot.lane.b32.xlu1 %v4900_v63, %s7841_s10 }
 0x3c2   : > { %v4134_v52 = vadd.f32 %v9838_v4, %v3869_v22  ;;  %v3871_v61 = vpop.f32.mrb[13].mxu0  ;;  %v4266_v22 = vpop.permute.xlu1 %4265 }
 0x3c3   : > { %v4135_v37 = vadd.f32 %v9838_v4, %v3871_v61  ;;  %v3873_v48 = vpop.f32.mrb[14].mxu0  ;;  %4293 = vmatprep.subr.bf16.mxu0 %v4195_v23 }
 0x3c4   : > { %v4139_v24 = vadd.f32 %v9841_v28, %v3873_v48  ;;  %v3875_v51 = vpop.f32.mrb[15].mxu0  ;;  %4294 = vmatpush1.bf16.msra.mxu0 %v4194_v38  ;;  %v4174_v59 = vmax.f32 %v4134_v52, 0.0  ;;  %7760 = vrot.lane.b32.xlu0 %v9802_v25, %s7848_s16  ;;  %v4271_v48 = vpop.permute.xlu0 %4270 }
 0x3c5   : > { %v4140_v32 = vadd.f32 %v9841_v28, %v3875_v51  ;;  %v4175_v12 = vmax.f32 %v4135_v37, 0.0 }
 0x3c6   : > { %v4179_v39 = vmax.f32 %v4139_v24, 0.0 }
 0x3c7   : > { %v4180_v9 = vmax.f32 %v4140_v32, 0.0 }
 0x3c8   : > { %v4199_v0 = vpack.c.bf16 %v4179_v39, %v4174_v59 }
 0x3c9   : > { %v4200_v8 = vpack.c.bf16 %v4180_v9, %v4175_v12  ;;  %v7343_v14 = vpop.f32.mrb[16].mxu0 }
 0x3ca   : > { %v4118_v2 = vadd.f32 %v7343_v14, %v9822_v49  ;;  %v3985_v26 = vpop.f32.mrb[17].mxu0 }
 0x3cb   : > { %v4108_v11 = vadd.f32 %v9814_v44, %v3985_v26  ;;  %v7344_v33 = vpop.f32.mrb[18].mxu0  ;;  %4295 = vmatprep.subr.bf16.mxu0 %v4200_v8 }
 0x3cc   : > { %v4123_v53 = vadd.f32 %v7344_v33, %v9825_v1  ;;  %v3988_v54 = vpop.f32.mrb[19].mxu0  ;;  %4296 = vmatpush1.bf16.msra.mxu0 %v4199_v0  ;;  %v4158_v62 = vmax.f32 %v4118_v2, 0.0 }
 0x3cd   : > { %v4113_v21 = vadd.f32 %v9817_v42, %v3988_v54  ;;  %v4148_v40 = vmax.f32 %v4108_v11, 0.0 }
 0x3ce   : > { %v4163_v43 = vmax.f32 %v4123_v53, 0.0 }
 0x3cf   : > { %v4153_v20 = vmax.f32 %v4113_v21, 0.0  ;;  %7072 = vmatmul.mubr.msk.bf16.vlgmr.msra.gmra.mrb[24].mxu0 %vm489_vm9, %v9849_v34 }
 0x3d0   : > { %v4193_v46 = vpack.c.bf16 %v4163_v43, %v4158_v62  ;;  %4331 = vmatprep.mubr.bf16.mxu0 %v9639_v31 }
 0x3d1   : > { %v4188_v49 = vpack.c.bf16 %v4153_v20, %v4148_v40  ;;  %v7347_v44 = vpop.f32.mrb[20].mxu0 }
 0x3d2   : > { %4214 = vst.msk [vmem:[#allocation3 + $0x48] sm:$0xff] %vm489_vm9, %v4193_v46  ;;  %v4138_v1 = vadd.f32 %v7347_v44, %v9838_v4  ;;  %v4001_v47 = vpop.f32.mrb[21].mxu0 }
 0x3d3   : > { %4209 = vst.msk [vmem:[#allocation3 + $0x20] sm:$0xff] %vm489_vm9, %v4188_v49  ;;  %v4128_v42 = vadd.f32 %v9830_v57, %v4001_v47  ;;  %v7348_v56 = vpop.f32.mrb[22].mxu0 }
 0x3d4   : > { %v4143_v29 = vadd.f32 %v7348_v56, %v9841_v28  ;;  %v4004_v19 = vpop.f32.mrb[23].mxu0  ;;  %v4178_v16 = vmax.f32 %v4138_v1, 0.0 }
 0x3d5   : > { %v4133_v34 = vadd.f32 %v9833_v30, %v4004_v19  ;;  %v4168_v17 = vmax.f32 %v4128_v42, 0.0 }
 0x3d6   : > { %v4183_v45 = vmax.f32 %v4143_v29, 0.0 }
 0x3d7   : > { %v4173_v15 = vmax.f32 %v4133_v34, 0.0  ;;  %7073 = vmatmul.mubr.msk.bf16.gmra.mrb[28].mxu0 %vm489_vm9, %v9857_v5 }
 0x3d8   : > { %v4203_v7 = vpack.c.bf16 %v4183_v45, %v4178_v16 }
 0x3d9   : > { %v4198_v4 = vpack.c.bf16 %v4173_v15, %v4168_v17  ;;  %v4238_v57 = vld [vmem:[#allocation3 + $0x48] sm:$0xff] }
 0x3da   : > { %4224 = vst.msk [vmem:[#allocation3 + $0x98] sm:$0xff] %vm489_vm9, %v4203_v7  ;;  %v4233_v60 = vld [vmem:[#allocation3 + $0x20] sm:$0xff] }
 0x3db   : > { %4219 = vst.msk [vmem:[#allocation3 + $0x70] sm:$0xff] %vm489_vm9, %v4198_v4  ;;  %7349 = vmatprep.subr.bf16.mxu1 %v4233_v60 }
 0x3dc   : > { %7350 = vmatpush3.bf16.msra.mxu1 %v4233_v60 }
 0x3dd   : > { %7351 = vmatprep.subr.bf16.mxu1 %v4238_v57 }
 0x3e0   : > { %7352 = vmatpush3.bf16.msra.mxu1 %v4238_v57 }
 0x3e1   : > { %v4248_v28 = vld [vmem:[#allocation3 + $0x98] sm:$0xff] }
 0x3e2   : > { %v4243_v30 = vld [vmem:[#allocation3 + $0x70] sm:$0xff] }
 0x3e3   : > { %7353 = vmatprep.subr.bf16.mxu1 %v4243_v30 }
 0x3e4   : > { %7354 = vmatpush3.bf16.msra.mxu1 %v4243_v30 }
 0x3e5   : > { %7355 = vmatprep.subr.bf16.mxu1 %v4248_v28 }
 0x3e8   : > { %7356 = vmatpush3.bf16.msra.mxu1 %v4248_v28 }
 0x3eb   : > { %7358 = vmatmul.mubr.msk.bf16.vlgmr.msra.gmra.mrb[24].mxu1 %vm489_vm9, %v9857_v5  ;;  %vm4674_vm9 = vcmask 376048  }
 0x473   : > { %v4376_v5 = vpop.f32.mrb[16].mxu1 }
 0x474   : > { %v4377_v35 = vadd.f32 %v4376_v5, %v4256_v10  ;;  %v4378_v3 = vpop.f32.mrb[17].mxu1  ;;  %v9936_v5 = vpop.permute.xlu0 %7735 }
 0x475   : > { %v4379_v50 = vadd.f32 %v4378_v3, %v4256_v10  ;;  %v4380_v31 = vpop.f32.mrb[18].mxu1 }
 0x476   : > { %v4381_v41 = vadd.f32 %v4380_v31, %v4261_v27  ;;  %v4382_v55 = vpop.f32.mrb[19].mxu1  ;;  %v4446_v58 = vmax.f32 %v4377_v35, 0.0 }
 0x477   : > { %v4383_v18 = vadd.f32 %v4382_v55, %v4261_v27  ;;  %v4447_v6 = vmax.f32 %v4379_v50, 0.0 }
 0x478   : > { %v4451_v36 = vmax.f32 %v4381_v41, 0.0  ;;  %v9940_v3 = vpop.permute.xlu0 %7745 }
 0x479   : > { %v4452_v38 = vmax.f32 %v4383_v18, 0.0 }
 0x47a   : > { %v4466_v23 = vpack.c.bf16 %v4451_v36, %v4446_v58 }
 0x47b   : > { %v4467_v52 = vpack.c.bf16 %v4452_v38, %v4447_v6  ;;  %v4386_v61 = vpop.f32.mrb[20].mxu1 }
 0x47c   : > { %v4387_v37 = vadd.f32 %v4386_v61, %v4266_v22  ;;  %v4388_v25 = vpop.f32.mrb[21].mxu1  ;;  %4668 = vrot.lane.b32.xlu1 %v4466_v23, %s7855_s29  ;;  %4655 = vrot.lane.b32.xlu0 %v4466_v23, %s7855_s29  ;;  %v9944_v50 = vpop.permute.xlu0 %4923 }
 0x47d   : > { %v4389_v24 = vadd.f32 %v4388_v25, %v4266_v22  ;;  %v4390_v51 = vpop.f32.mrb[22].mxu1 }
 0x47e   : > { %v4391_v32 = vadd.f32 %v4390_v51, %v4271_v48  ;;  %v4392_v59 = vpop.f32.mrb[23].mxu1  ;;  %v4456_v12 = vmax.f32 %v4387_v37, 0.0 }
 0x47f   : > { %v4393_v39 = vadd.f32 %v4392_v59, %v4271_v48  ;;  %v4457_v0 = vmax.f32 %v4389_v24, 0.0 }
 0x480   : > { %v4461_v9 = vmax.f32 %v4391_v32, 0.0  ;;  %4642 = vrot.lane.b32.xlu1 %v4466_v23, %s7855_s29  ;;  %4599 = vrot.lane.b32.xlu0 %v4466_v23, %s7855_s29  ;;  %v9948_v41 = vpop.permute.xlu0 %4935 }
 0x481   : > { %v4462_v8 = vmax.f32 %v4393_v39, 0.0 }
 0x482   : > { %v4471_v14 = vpack.c.bf16 %v4461_v9, %v4456_v12 }
 0x483   : > { %v4472_v2 = vpack.c.bf16 %v4462_v8, %v4457_v0 }
 0x484   : > { %4694 = vrot.lane.b32.xlu1 %v4467_v52, %s7855_s29  ;;  %4616 = vrot.lane.b32.xlu0 %v4466_v23, %s7855_s29  ;;  %v9952_v18 = vpop.permute.xlu0 %7760 }
 0x488   : > { %4720 = vrot.lane.b32.xlu1 %v4467_v52, %s7855_s29  ;;  %4629 = vrot.lane.b32.xlu0 %v4466_v23, %s7855_s29 }
 0x48c   : > { %4681 = vrot.lane.b32.xlu0 %v4467_v52, %s7855_s29  ;;  %4657 = vrot.lane.b32.xlu1 %v4471_v14, %s7855_s29 }
 0x490   : > { %4707 = vrot.lane.b32.xlu0 %v4467_v52, %s7855_s29  ;;  %4631 = vrot.lane.b32.xlu1 %v4471_v14, %s7855_s29 }
 0x494   : > { %4644 = vrot.lane.b32.xlu1 %v4471_v14, %s7855_s29  ;;  %4603 = vrot.lane.b32.xlu0 %v4471_v14, %s7855_s29 }
 0x498   : > { %4696 = vrot.lane.b32.xlu1 %v4472_v2, %s7855_s29  ;;  %4670 = vrot.lane.b32.xlu0 %v4471_v14, %s7855_s29 }
 0x49c   : > { %4618 = vrot.lane.b32.xlu0 %v4471_v14, %s7855_s29 }
 0x4a0   : > { %4683 = vrot.lane.b32.xlu0 %v4472_v2, %s7855_s29 }
 0x4a2   : > { %v4323_v26 = vpop.f32.mrb[24].mxu0 }
 0x4a3   : > { %v4324_v11 = vadd.f32 %v4323_v26, %v4256_v10  ;;  %v4325_v33 = vpop.f32.mrb[25].mxu0 }
 0x4a4   : > { %v4326_v53 = vadd.f32 %v4325_v33, %v4256_v10  ;;  %v4327_v54 = vpop.f32.mrb[26].mxu0  ;;  %4709 = vrot.lane.b32.xlu0 %v4472_v2, %s7855_s29  ;;  %v9934_v10 = vpop.permute.xlu1 %7740 }
 0x4a5   : > { %v4328_v21 = vadd.f32 %v4327_v54, %v4261_v27  ;;  %v4329_v62 = vpop.f32.mrb[27].mxu0  ;;  %v4444_v40 = vmax.f32 %v4324_v11, 0.0 }
 0x4a6   : > { %v4330_v43 = vadd.f32 %v4329_v62, %v4261_v27  ;;  %v4445_v46 = vmax.f32 %v4326_v53, 0.0 }
 0x4a7   : > { %v4449_v20 = vmax.f32 %v4328_v21, 0.0 }
 0x4a8   : > { %v4450_v49 = vmax.f32 %v4330_v43, 0.0  ;;  %4722 = vrot.lane.b32.xlu0 %v4472_v2, %s7855_s29  ;;  %v9938_v35 = vpop.permute.xlu1 %7750 }
 0x4a9   : > { %v9926_v44 = vpack.c.bf16 %v4449_v20, %v4444_v40 }
 0x4aa   : > { %v9928_v1 = vpack.c.bf16 %v4450_v49, %v4445_v46  ;;  %v4333_v47 = vpop.f32.mrb[28].mxu0 }
 0x4ab   : > { %v4334_v42 = vadd.f32 %v4333_v47, %v4266_v22  ;;  %v4335_v56 = vpop.f32.mrb[29].mxu0 }
 0x4ac   : > { %v4336_v29 = vadd.f32 %v4335_v56, %v4266_v22  ;;  %v4337_v19 = vpop.f32.mrb[30].mxu0  ;;  %v9942_v27 = vpop.permute.xlu1 %7755 }
 0x4ad   : > { %v4338_v34 = vadd.f32 %v4337_v19, %v4271_v48  ;;  %v4339_v16 = vpop.f32.mrb[31].mxu0  ;;  %v4454_v17 = vmax.f32 %v4334_v42, 0.0 }
 0x4ae   : > { %v4340_v45 = vadd.f32 %v4339_v16, %v4271_v48  ;;  %v4455_v7 = vmax.f32 %v4336_v29, 0.0 }
 0x4af   : > { %v4459_v15 = vmax.f32 %v4338_v34, 0.0 }
 0x4b0   : > { %v4460_v4 = vmax.f32 %v4340_v45, 0.0  ;;  %v9946_v31 = vpop.permute.xlu1 %5001 }
 0x4b1   : > { %v9930_v60 = vpack.c.bf16 %v4459_v15, %v4454_v17 }
 0x4b2   : > { %v9932_v57 = vpack.c.bf16 %v4460_v4, %v4455_v7 }
 0x4b4   : > { %v9950_v55 = vpop.permute.xlu1 %5013 }
 0x4be   : > { %v7359_v30 = vpop.f32.mrb[24].mxu1 }
 0x4bf   : > { %v4429_v28 = vpop.f32.mrb[25].mxu1 }
 0x4c0   : > { %v7360_v13 = vpop.f32.mrb[26].mxu1 }
 0x4c1   : > { %v4432_v63 = vpop.f32.mrb[27].mxu1 }
 0x4ee   : > { %v4669_v58 = vpop.permute.xlu1 %4668  ;;  %v4656_v36 = vpop.permute.xlu0 %4655 }
 0x4ef   : > { %4662 = vst.msk [vmem:[#allocation5 + $0x18] sm:$0xff] %vm4661_vm8, %v4656_v36 }
 0x4f0   : > { %4675 = vst.msk [vmem:[#allocation5 + $0x18] sm:$0xff] %vm4674_vm9, %v4669_v58 }
 0x4f2   : > { %v9956_v6 = vpop.permute.xlu1 %4642  ;;  %v9958_v38 = vpop.permute.xlu0 %4599 }
 0x4f6   : > { %v4695_v23 = vpop.permute.xlu1 %4694  ;;  %v9960_v22 = vpop.permute.xlu0 %4616 }
 0x4fa   : > { %v4721_v52 = vpop.permute.xlu1 %4720  ;;  %v9962_v61 = vpop.permute.xlu0 %4629 }
 0x4fb   : > { %4729 = vst.msk [vmem:[#allocation5 + $0x20] sm:$0xff] %vm4728_vm11, %v4721_v52 }
 0x4fe   : > { %v4658_v37 = vpop.permute.xlu1 %4657  ;;  %v4682_v25 = vpop.permute.xlu0 %4681 }
 0x4ff   : > { %4663 = vst.msk [vmem:[#allocation5 + $0x48] sm:$0xff] %vm4661_vm8, %v4658_v37  ;;  %vm4507_vm8 = vcmask 310448  }
 0x500   : > { %4688 = vst.msk [vmem:[#allocation5 + $0x18] sm:$0xff] %vm4687_vm15, %v4682_v25 }
 0x501   : > { %4701 = vst.msk [vmem:[#allocation5 + $0x18] sm:$0xff] %vm4700_vm0, %v4695_v23 }
 0x502   : > { %v4736_v48 = vld [vmem:[#allocation5 + $0x20] sm:$0xff]  ;;  %v4708_v24 = vpop.permute.xlu0 %4707  ;;  %v9975_v32 = vpop.permute.xlu1 %4631 }
 0x503   : > { %4714 = vst.msk [vmem:[#allocation5 + $0x18] sm:$0xff] %vm4713_vm6, %v4708_v24  ;;  %4781 = vrot.lane.b32.xlu1 %v4736_v48, %s7838_s30  ;;  %4999 = vrot.lane.b32.xlu0 %v4736_v48, %s7841_s10 }
 0x504   : > { %4747 = vst.msk [vmem:[#allocation6 + $0x20] sm:$0xff] %vm4746_vm7, %v4736_v48 }
 0x505   : > { %4727 = vst.msk [vmem:[#allocation5 + $0x18] sm:$0xff] %vm4726_vm1, %v4721_v52 }
 0x506   : > { %v9973_v51 = vpop.permute.xlu0 %4603  ;;  %v9985_v12 = vpop.permute.xlu1 %4644 }
 0x507   : > { %4849 = vrot.lane.b32.xlu1 %v4736_v48, %s7839_s8 }
 0x50a   : > { %v4671_v59 = vpop.permute.xlu0 %4670  ;;  %v4697_v8 = vpop.permute.xlu1 %4696 }
 0x50b   : > { %4676 = vst.msk [vmem:[#allocation5 + $0x48] sm:$0xff] %vm4674_vm9, %v4671_v59  ;;  %4921 = vrot.lane.b32.xlu1 %v4736_v48, %s7840_s9  ;;  %v10006_v33 = vld [vmem:[#allocation6 + $0x20] sm:$0xff]  ;;  %vm4572_vm9 = vcmask 48128  }
 0x50c   : > { %v9980_v39 = vld [vmem:[#allocation5 + $0x18] sm:$0xff] }
 0x50d   : > { %4847 = vrot.lane.b32.xlu0 %v9980_v39, %s7839_s8  ;;  %4745 = vst [vmem:[#allocation6 + $0x18] sm:$0xff] %v9980_v39 }
 0x50e   : > { %v9987_v9 = vpop.permute.xlu0 %4618 }
 0x50f   : > { %4779 = vrot.lane.b32.xlu1 %v9980_v39, %s7838_s30 }
 0x511   : > { %4997 = vrot.lane.b32.xlu0 %v9980_v39, %s7841_s10 }
 0x512   : > { %v4684_v0 = vpop.permute.xlu0 %4683 }
 0x513   : > { %4689 = vst.msk [vmem:[#allocation5 + $0x48] sm:$0xff] %vm4687_vm15, %v4684_v0  ;;  %4919 = vrot.lane.b32.xlu1 %v9980_v39, %s7840_s9  ;;  %vm4531_vm15 = vcmask 507248  }
 0x514   : > { %4702 = vst.msk [vmem:[#allocation5 + $0x48] sm:$0xff] %vm4700_vm0, %v4697_v8  ;;  %vm4586_vm0 = vcmask 244848  }
 0x516   : > { %v4710_v14 = vpop.permute.xlu0 %4709 }
 0x517   : > { %4715 = vst.msk [vmem:[#allocation5 + $0x48] sm:$0xff] %vm4713_vm6, %v4710_v14  ;;  %vm4609_vm6 = vcmask 441648  }
 0x51a   : > { %v4723_v2 = vpop.permute.xlu0 %4722 }
 0x51b   : > { %4730 = vst.msk [vmem:[#allocation5 + $0x48] sm:$0xff] %vm4726_vm1, %v4723_v2  ;;  %vm4635_vm1 = vcmask 835248  }
 0x51c   : > { %4731 = vst.msk [vmem:[#allocation5 + $0x50] sm:$0xff] %vm4728_vm11, %v4723_v2  ;;  %vm4526_vm11 = vcmask 408576  }
 0x522   : > { %v10000_v26 = vld [vmem:[#allocation5 + $0x48] sm:$0xff] }
 0x523   : > { %v4741_v11 = vld [vmem:[#allocation5 + $0x50] sm:$0xff]  ;;  %4751 = vst [vmem:[#allocation6 + $0x40] sm:$0xff] %v10000_v26 }
 0x524   : > { %4933 = vrot.lane.b32.xlu1 %v4741_v11, %s7840_s9  ;;  %4791 = vrot.lane.b32.xlu0 %v4741_v11, %s7838_s30  ;;  %4752 = vst.msk [vmem:[#allocation6 + $0x48] sm:$0xff] %vm4746_vm7, %v4741_v11 }
 0x528   : > { %5166 = vrot.lane.b32.xlu1 %v10006_v33, %s7846_s15  ;;  %4859 = vrot.lane.b32.xlu0 %v4741_v11, %s7839_s8 }
 0x52b   : > { %v10022_v53 = vld [vmem:[#allocation6 + $0x48] sm:$0xff] }
 0x52c   : > { %5011 = vrot.lane.b32.xlu0 %v4741_v11, %s7841_s10  ;;  %4789 = vrot.lane.b32.xlu1 %v10000_v26, %s7838_s30 }
 0x530   : > { %5639 = vrot.lane.b32.xlu0 %v10006_v33, %s7848_s16  ;;  %4931 = vrot.lane.b32.xlu1 %v10000_v26, %s7840_s9 }
 0x534   : > { %4857 = vrot.lane.b32.xlu0 %v10000_v26, %s7839_s8  ;;  %5637 = vrot.lane.b32.xlu1 %v9980_v39, %s7848_s16 }
 0x538   : > { %5009 = vrot.lane.b32.xlu0 %v10000_v26, %s7841_s10  ;;  %5176 = vrot.lane.b32.xlu1 %v10022_v53, %s7846_s15 }
 0x53c   : > { %5164 = vrot.lane.b32.xlu0 %v9980_v39, %s7846_s15  ;;  %5647 = vrot.lane.b32.xlu1 %v10000_v26, %s7848_s16 }
 0x540   : > { %5649 = vrot.lane.b32.xlu0 %v10022_v53, %s7848_s16  ;;  %4501 = vrot.lane.b32.xlu1 %v9926_v44, %s7855_s29 }
 0x544   : > { %4564 = vrot.lane.b32.xlu1 %v9928_v1, %s7855_s29  ;;  %5174 = vrot.lane.b32.xlu0 %v10000_v26, %s7846_s15 }
 0x548   : > { %4520 = vrot.lane.b32.xlu1 %v9928_v1, %s7855_s29  ;;  %4518 = vrot.lane.b32.xlu0 %v9926_v44, %s7855_s29 }
 0x54c   : > { %4597 = vrot.lane.b32.xlu1 %v9928_v1, %s7855_s29  ;;  %4580 = vrot.lane.b32.xlu0 %v9928_v1, %s7855_s29 }
 0x550   : > { %4538 = vrot.lane.b32.xlu1 %v9928_v1, %s7855_s29  ;;  %4551 = vrot.lane.b32.xlu0 %v9928_v1, %s7855_s29 }
 0x554   : > { %4503 = vrot.lane.b32.xlu1 %v9930_v60, %s7855_s29  ;;  %4522 = vrot.lane.b32.xlu0 %v9930_v60, %s7855_s29 }
 0x558   : > { %4566 = vrot.lane.b32.xlu1 %v9932_v57, %s7855_s29  ;;  %4582 = vrot.lane.b32.xlu0 %v9932_v57, %s7855_s29 }
 0x55c   : > { %4524 = vrot.lane.b32.xlu1 %v9932_v57, %s7855_s29  ;;  %4553 = vrot.lane.b32.xlu0 %v9932_v57, %s7855_s29 }
 0x560   : > { %4601 = vrot.lane.b32.xlu1 %v9932_v57, %s7855_s29 }
 0x564   : > { %4540 = vrot.lane.b32.xlu1 %v9932_v57, %s7855_s29  ;;  %s7863_s29 = smov 76  }
 0x575   : > { %v4782_v54 = vpop.permute.xlu1 %4781  ;;  %v5000_v21 = vpop.permute.xlu0 %4999 }
 0x576   : > { %4815 = vst.msk [vmem:[#allocation6 + $0x70] sm:$0xff] %vm4746_vm7, %v4782_v54  ;;  %v5019_v62 = vsel %vm383_vm5, %v5000_v21, %v9946_v31 }
 0x577   : > { %5039 = vst.msk [vmem:[#allocation6 + $0x160] sm:$0xff] %vm4746_vm7, %v5019_v62 }
 0x579   : > { %v4850_v43 = vpop.permute.xlu1 %4849 }
 0x57a   : > { %4883 = vst.msk [vmem:[#allocation6 + $0xc0] sm:$0xff] %vm4746_vm7, %v4850_v43 }
 0x57d   : > { %v4922_v40 = vpop.permute.xlu1 %4921  ;;  %v10073_v20 = vld [vmem:[#allocation6 + $0x70] sm:$0xff] }
 0x57e   : > { %v4941_v46 = vsel %vm356_vm4, %v4922_v40, %v9944_v50  ;;  %5186 = vrot.lane.b32.xlu1 %v10073_v20, %s7846_s15  ;;  %v10124_v45 = vld [vmem:[#allocation6 + $0x160] sm:$0xff] }
 0x57f   : > { %v10079_v49 = vpop.permute.xlu0 %4847  ;;  %4961 = vst.msk [vmem:[#allocation6 + $0x110] sm:$0xff] %vm4746_vm7, %v4941_v46 }
 0x580   : > { %v10084_v44 = vsel %vm330_vm3, %v10079_v49, %v4850_v43 }
 0x581   : > { %4882 = vst [vmem:[#allocation6 + $0xb8] sm:$0xff] %v10084_v44  ;;  %v10087_v1 = vpop.permute.xlu1 %4779  ;;  %v10089_v47 = vld [vmem:[#allocation6 + $0xc0] sm:$0xff] }
 0x582   : > { %v10093_v42 = vsel %vm304_vm2, %v10087_v1, %v4782_v54  ;;  %5206 = vrot.lane.b32.xlu1 %v10089_v47, %s7846_s15 }
 0x583   : > { %v10097_v56 = vpop.permute.xlu0 %4997  ;;  %4814 = vst [vmem:[#allocation6 + $0x68] sm:$0xff] %v10093_v42  ;;  %5184 = vrot.lane.b32.xlu0 %v10093_v42, %s7846_s15 }
 0x584   : > { %v10102_v29 = vsel %vm383_vm5, %v10097_v56, %v5000_v21 }
 0x585   : > { %5038 = vst [vmem:[#allocation6 + $0x158] sm:$0xff] %v10102_v29  ;;  %v10107_v19 = vpop.permute.xlu1 %4919 }
 0x586   : > { %v10111_v34 = vsel %vm356_vm4, %v10107_v19, %v4922_v40  ;;  %5659 = vrot.lane.b32.xlu1 %v10073_v20, %s7848_s16  ;;  %v10118_v16 = vld [vmem:[#allocation6 + $0x110] sm:$0xff] }
 0x587   : > { %4960 = vst [vmem:[#allocation6 + $0x108] sm:$0xff] %v10111_v34  ;;  %5204 = vrot.lane.b32.xlu0 %v10084_v44, %s7846_s15 }
 0x58a   : > { %5226 = vrot.lane.b32.xlu1 %v10118_v16, %s7846_s15 }
 0x58b   : > { %5224 = vrot.lane.b32.xlu0 %v10111_v34, %s7846_s15 }
 0x58e   : > { %5246 = vrot.lane.b32.xlu1 %v10124_v45, %s7846_s15 }
 0x58f   : > { %5244 = vrot.lane.b32.xlu0 %v10102_v29, %s7846_s15 }
 0x593   : > { %5657 = vrot.lane.b32.xlu0 %v10093_v42, %s7848_s16 }
 0x596   : > { %v4934_v17 = vpop.permute.xlu1 %4933  ;;  %v4792_v15 = vpop.permute.xlu0 %4791 }
 0x597   : > { %v4946_v7 = vsel %vm356_vm4, %v4934_v17, %v9948_v41  ;;  %4820 = vst.msk [vmem:[#allocation6 + $0x98] sm:$0xff] %vm4746_vm7, %v4792_v15 }
 0x598   : > { %4966 = vst.msk [vmem:[#allocation6 + $0x138] sm:$0xff] %vm4746_vm7, %v4946_v7 }
 0x59a   : > { %v10136_v4 = vpop.permute.xlu1 %5166  ;;  %v4860_v60 = vpop.permute.xlu0 %4859 }
 0x59b   : > { %4888 = vst.msk [vmem:[#allocation6 + $0xe8] sm:$0xff] %vm4746_vm7, %v4860_v60 }
 0x59e   : > { %v10139_v57 = vpop.permute.xlu1 %4789  ;;  %v5012_v30 = vpop.permute.xlu0 %5011  ;;  %v10141_v28 = vld [vmem:[#allocation6 + $0x98] sm:$0xff] }
 0x59f   : > { %v10145_v13 = vsel %vm304_vm2, %v10139_v57, %v4792_v15  ;;  %v5024_v63 = vsel %vm383_vm5, %v5012_v30, %v9950_v55  ;;  %5196 = vrot.lane.b32.xlu1 %v10141_v28, %s7846_s15  ;;  %5669 = vrot.lane.b32.xlu0 %v10141_v28, %s7848_s16  ;;  %v10174_v23 = vld [vmem:[#allocation6 + $0x138] sm:$0xff] }
 0x5a0   : > { %4819 = vst [vmem:[#allocation6 + $0x90] sm:$0xff] %v10145_v13  ;;  %5044 = vst.msk [vmem:[#allocation6 + $0x188] sm:$0xff] %vm4746_vm7, %v5024_v63  ;;  %vm4622_vm7 = vcmask 638448  }
 0x5a2   : > { %v10155_v50 = vpop.permute.xlu1 %4931  ;;  %v10157_v31 = vpop.permute.xlu0 %5639  ;;  %v10159_v41 = vld [vmem:[#allocation6 + $0xe8] sm:$0xff] }
 0x5a3   : > { %11563 = vst [vmem:[#allocation7_spill] sm:$0xff] %v10157_v31  ;;  %v10163_v58 = vsel %vm356_vm4, %v10155_v50, %v4934_v17  ;;  %5216 = vrot.lane.b32.xlu1 %v10159_v41, %s7846_s15  ;;  %5194 = vrot.lane.b32.xlu0 %v10145_v13, %s7846_s15 }
 0x5a4   : > { %4965 = vst [vmem:[#allocation6 + $0x130] sm:$0xff] %v10163_v58 }
 0x5a6   : > { %v10170_v55 = vpop.permute.xlu1 %5637  ;;  %v10172_v36 = vpop.permute.xlu0 %4857 }
 0x5a7   : > { %11564 = vst [vmem:[#allocation8_spill] sm:$0xff] %v10170_v55  ;;  %v10178_v52 = vsel %vm330_vm3, %v10172_v36, %v4860_v60  ;;  %5236 = vrot.lane.b32.xlu1 %v10174_v23, %s7846_s15  ;;  %v10189_v48 = vld [vmem:[#allocation6 + $0x188] sm:$0xff] }
 0x5a8   : > { %4887 = vst [vmem:[#allocation6 + $0xe0] sm:$0xff] %v10178_v52  ;;  %5214 = vrot.lane.b32.xlu0 %v10178_v52, %s7846_s15 }
 0x5aa   : > { %v10185_v37 = vpop.permute.xlu1 %5176  ;;  %v10187_v25 = vpop.permute.xlu0 %5009 }
 0x5ab   : > { %v10193_v24 = vsel %vm383_vm5, %v10187_v25, %v5012_v30  ;;  %5256 = vrot.lane.b32.xlu1 %v10189_v48, %s7846_s15 }
 0x5ac   : > { %5043 = vst [vmem:[#allocation6 + $0x180] sm:$0xff] %v10193_v24  ;;  %5234 = vrot.lane.b32.xlu0 %v10163_v58, %s7846_s15 }
 0x5ae   : > { %v10200_v59 = vpop.permute.xlu1 %5647  ;;  %v10202_v0 = vpop.permute.xlu0 %5164 }
 0x5af   : > { %11565 = vst [vmem:[#allocation9_spill] sm:$0xff] %v10200_v59  ;;  %5667 = vrot.lane.b32.xlu1 %v10145_v13, %s7848_s16 }
 0x5b0   : > { %5254 = vrot.lane.b32.xlu0 %v10193_v24, %s7846_s15 }
 0x5b2   : > { %v4502_v8 = vpop.permute.xlu1 %4501  ;;  %v10208_v14 = vpop.permute.xlu0 %5649 }
 0x5b3   : > { %11566 = vst [vmem:[#allocation10_spill] sm:$0xff] %v10208_v14  ;;  %4508 = vst.msk [vmem:[#allocation5 + $0x8] sm:$0xff] %vm4507_vm8, %v4502_v8 }
 0x5b6   : > { %v4565_v2 = vpop.permute.xlu1 %4564  ;;  %v10211_v11 = vpop.permute.xlu0 %5174 }
 0x5b7   : > { %11567 = vst [vmem:[#allocation11_spill] sm:$0xff] %v10211_v11  ;;  %4573 = vst.msk [vmem:[#allocation5 + $0x10] sm:$0xff] %vm4572_vm9, %v4565_v2 }
 0x5ba   : > { %v4521_v54 = vpop.permute.xlu1 %4520  ;;  %v4519_v21 = vpop.permute.xlu0 %4518 }
 0x5bb   : > { %v4527_v62 = vsel %vm4526_vm11, %v4519_v21, %v4521_v54 }
 0x5bc   : > { %4532 = vst.msk [vmem:[#allocation5 + $0x8] sm:$0xff] %vm4531_vm15, %v4527_v62 }
 0x5be   : > { %v4598_v43 = vpop.permute.xlu1 %4597  ;;  %v4581_v40 = vpop.permute.xlu0 %4580 }
 0x5bf   : > { %v4605_v46 = vsel %vm4526_vm11, %v4598_v43, %v9958_v38  ;;  %4587 = vst.msk [vmem:[#allocation5 + $0x10] sm:$0xff] %vm4586_vm0, %v4581_v40 }
 0x5c0   : > { %4610 = vst.msk [vmem:[#allocation5 + $0x10] sm:$0xff] %vm4609_vm6, %v4605_v46 }
 0x5c1   : > { %4623 = vst.msk [vmem:[#allocation5 + $0x10] sm:$0xff] %vm4622_vm7, %v9960_v22 }
 0x5c2   : > { %4636 = vst.msk [vmem:[#allocation5 + $0x10] sm:$0xff] %vm4635_vm1, %v9962_v61  ;;  %v4539_v17 = vpop.permute.xlu1 %4538  ;;  %v4552_v15 = vpop.permute.xlu0 %4551 }
 0x5c3   : > { %4649 = vst.msk [vmem:[#allocation5 + $0x10] sm:$0xff] %vm4648_vm14, %v9956_v6 }
 0x5c4   : > { %4545 = vst.msk [vmem:[#allocation5 + $0x8] sm:$0xff] %vm4544_vm13, %v4539_v17 }
 0x5c5   : > { %4558 = vst.msk [vmem:[#allocation5 + $0x8] sm:$0xff] %vm4557_vm10, %v4552_v15 }
 0x5c6   : > { %4571 = vst.msk [vmem:[#allocation5 + $0x8] sm:$0xff] %vm4570_vm12, %v4565_v2  ;;  %v4504_v38 = vpop.permute.xlu1 %4503  ;;  %v4523_v7 = vpop.permute.xlu0 %4522 }
 0x5c7   : > { %4509 = vst.msk [vmem:[#allocation5 + $0x38] sm:$0xff] %vm4507_vm8, %v4504_v38 }
 0x5ca   : > { %v4567_v22 = vpop.permute.xlu1 %4566  ;;  %v4583_v60 = vpop.permute.xlu0 %4582  ;;  %v10230_v30 = vld [vmem:[#allocation5 + $0x10] sm:$0xff] }
 0x5cb   : > { %4575 = vst.msk [vmem:[#allocation5 + $0x40] sm:$0xff] %vm4572_vm9, %v4567_v22  ;;  %4744 = vst [vmem:[#allocation6 + $0x10] sm:$0xff] %v10230_v30 }
 0x5cc   : > { %4588 = vst.msk [vmem:[#allocation5 + $0x40] sm:$0xff] %vm4586_vm0, %v4583_v60 }
 0x5cd   : > { %v10235_v6 = vld [vmem:[#allocation5 + $0x8] sm:$0xff] }
 0x5ce   : > { %4843 = vrot.lane.b32.xlu0 %v10235_v6, %s7839_s8  ;;  %4775 = vrot.lane.b32.xlu1 %v10235_v6, %s7838_s30  ;;  %v4525_v61 = vpop.permute.xlu1 %4524  ;;  %v4554_v21 = vpop.permute.xlu0 %4553 }
 0x5cf   : > { %v4528_v63 = vsel %vm4526_vm11, %v4523_v7, %v4525_v61 }
 0x5d0   : > { %4533 = vst.msk [vmem:[#allocation5 + $0x38] sm:$0xff] %vm4531_vm15, %v4528_v63 }
 0x5d2   : > { %4993 = vrot.lane.b32.xlu0 %v10235_v6, %s7841_s10  ;;  %4915 = vrot.lane.b32.xlu1 %v10235_v6, %s7840_s9  ;;  %v4602_v8 = vpop.permute.xlu1 %4601 }
 0x5d3   : > { %v4606_v2 = vsel %vm4526_vm11, %v4602_v8, %v9973_v51 }
 0x5d4   : > { %4611 = vst.msk [vmem:[#allocation5 + $0x40] sm:$0xff] %vm4609_vm6, %v4606_v2 }
 0x5d5   : > { %4624 = vst.msk [vmem:[#allocation5 + $0x40] sm:$0xff] %vm4622_vm7, %v9987_v9 }
 0x5d6   : > { %4777 = vrot.lane.b32.xlu0 %v10230_v30, %s7838_s30  ;;  %4845 = vrot.lane.b32.xlu1 %v10230_v30, %s7839_s8  ;;  %4637 = vst.msk [vmem:[#allocation5 + $0x40] sm:$0xff] %vm4635_vm1, %v9975_v32  ;;  %v4541_v54 = vpop.permute.xlu1 %4540 }
 0x5d7   : > { %4650 = vst.msk [vmem:[#allocation5 + $0x40] sm:$0xff] %vm4648_vm14, %v9985_v12 }
 0x5d8   : > { %4546 = vst.msk [vmem:[#allocation5 + $0x38] sm:$0xff] %vm4544_vm13, %v4541_v54 }
 0x5d9   : > { %4559 = vst.msk [vmem:[#allocation5 + $0x38] sm:$0xff] %vm4557_vm10, %v4554_v21 }
 0x5da   : > { %4574 = vst.msk [vmem:[#allocation5 + $0x38] sm:$0xff] %vm4570_vm12, %v4567_v22  ;;  %4917 = vrot.lane.b32.xlu0 %v10230_v30, %s7840_s9  ;;  %4995 = vrot.lane.b32.xlu1 %v10230_v30, %s7841_s10 }
 0x5de   : > { %v10267_v51 = vld [vmem:[#allocation5 + $0x40] sm:$0xff] }
 0x5e1   : > { %v10269_v32 = vld [vmem:[#allocation5 + $0x38] sm:$0xff] }
 0x5e2   : > { %4853 = vrot.lane.b32.xlu0 %v10269_v32, %s7839_s8  ;;  %4785 = vrot.lane.b32.xlu1 %v10269_v32, %s7838_s30 }
 0x5e6   : > { %5005 = vrot.lane.b32.xlu0 %v10269_v32, %s7841_s10  ;;  %4927 = vrot.lane.b32.xlu1 %v10269_v32, %s7840_s9 }
 0x5ea   : > { %5633 = vrot.lane.b32.xlu0 %v10235_v6, %s7848_s16  ;;  %5160 = vrot.lane.b32.xlu1 %v10235_v6, %s7846_s15 }
 0x5ee   : > { %4787 = vrot.lane.b32.xlu0 %v10267_v51, %s7838_s30  ;;  %4855 = vrot.lane.b32.xlu1 %v10267_v51, %s7839_s8  ;;  %s7864_s30 = smov 68   ;;  %s7866_s8 = smov 60  }
 0x5f0   : > { %v10305_v12 = vpop.permute.xlu1 %5186 }
 0x5f1   : > { %11568 = vst [vmem:[#allocation14_spill] sm:$0xff] %v10305_v12 }
 0x5f2   : > { %5677 = vrot.lane.b32.xlu0 %v10084_v44, %s7848_s16  ;;  %5007 = vrot.lane.b32.xlu1 %v10267_v51, %s7841_s10  ;;  %s7868_s10 = smov 52  }
 0x5f4   : > { %v10309_v62 = vpop.permute.xlu1 %5206 }
 0x5f5   : > { %v10307_v9 = vpop.permute.xlu0 %5184  ;;  %11570 = vst [vmem:[#allocation13_spill] sm:$0xff] %v10309_v62 }
 0x5f6   : > { %4929 = vrot.lane.b32.xlu0 %v10267_v51, %s7840_s9  ;;  %5635 = vrot.lane.b32.xlu1 %v10230_v30, %s7848_s16  ;;  %11569 = vst [vmem:[#allocation12_spill] sm:$0xff] %v10307_v9  ;;  %s7867_s9 = smov 108  }
 0x5f8   : > { %v10313_v40 = vpop.permute.xlu1 %5659 }
 0x5f9   : > { %v10311_v43 = vpop.permute.xlu0 %5204  ;;  %11572 = vst [vmem:[#allocation16_spill] sm:$0xff] %v10313_v40 }
 0x5fa   : > { %5162 = vrot.lane.b32.xlu0 %v10230_v30, %s7846_s15  ;;  %5643 = vrot.lane.b32.xlu1 %v10269_v32, %s7848_s16  ;;  %11571 = vst [vmem:[#allocation15_spill] sm:$0xff] %v10311_v43 }
 0x5fc   : > { %v10317_v17 = vpop.permute.xlu1 %5226 }
 0x5fd   : > { %v10315_v46 = vpop.permute.xlu0 %5224  ;;  %11574 = vst [vmem:[#allocation19_spill] sm:$0xff] %v10317_v17 }
 0x5fe   : > { %5172 = vrot.lane.b32.xlu1 %v10267_v51, %s7846_s15  ;;  %5170 = vrot.lane.b32.xlu0 %v10269_v32, %s7846_s15  ;;  %11573 = vst [vmem:[#allocation17_spill] sm:$0xff] %v10315_v46 }
 0x600   : > { %v10321_v38 = vpop.permute.xlu1 %5246 }
 0x601   : > { %v10319_v15 = vpop.permute.xlu0 %5244  ;;  %11576 = vst [vmem:[#allocation18_spill] sm:$0xff] %v10321_v38 }
 0x602   : > { %5645 = vrot.lane.b32.xlu0 %v10267_v51, %s7848_s16  ;;  %11575 = vst [vmem:[#allocation21_spill] sm:$0xff] %v10319_v15 }
 0x605   : > { %v10323_v7 = vpop.permute.xlu0 %5657 }
 0x606   : > { %11577 = vst [vmem:[#allocation20_spill] sm:$0xff] %v10323_v7  ;;  %v7742_v7 = vunpack.i.l.bf16 %v9934_v10 }
 0x611   : > { %v10325_v22 = vpop.permute.xlu1 %5196  ;;  %v10327_v60 = vpop.permute.xlu0 %5669 }
 0x612   : > { %11578 = vst [vmem:[#allocation22_spill] sm:$0xff] %v10325_v22  ;;  %11579 = vst [vmem:[#allocation23_spill] sm:$0xff] %v10327_v60  ;;  %v7737_v60 = vunpack.i.l.bf16 %v9936_v5 }
 0x615   : > { %v10329_v61 = vpop.permute.xlu1 %5216  ;;  %v10331_v63 = vpop.permute.xlu0 %5194 }
 0x616   : > { %11580 = vst [vmem:[#allocation24_spill] sm:$0xff] %v10329_v61  ;;  %11581 = vst [vmem:[#allocation25_spill] sm:$0xff] %v10331_v63 }
 0x619   : > { %v10333_v8 = vpop.permute.xlu1 %5236 }
 0x61a   : > { %11582 = vst [vmem:[#allocation26_spill] sm:$0xff] %v10333_v8  ;;  %v10335_v2 = vpop.permute.xlu0 %5214 }
 0x61b   : > { %11583 = vst [vmem:[#allocation27_spill] sm:$0xff] %v10335_v2 }
 0x61d   : > { %v10337_v54 = vpop.permute.xlu1 %5256 }
 0x61e   : > { %11584 = vst [vmem:[#allocation28_spill] sm:$0xff] %v10337_v54  ;;  %v10339_v21 = vpop.permute.xlu0 %5234 }
 0x61f   : > { %11585 = vst [vmem:[#allocation29_spill] sm:$0xff] %v10339_v21 }
 0x621   : > { %v10341_v40 = vpop.permute.xlu1 %5667 }
 0x622   : > { %11586 = vst [vmem:[#allocation30_spill] sm:$0xff] %v10341_v40  ;;  %v10343_v59 = vpop.permute.xlu0 %5254  ;;  %v7752_v40 = vunpack.i.l.bf16 %v9938_v35 }
 0x623   : > { %11587 = vst [vmem:[#allocation31_spill] sm:$0xff] %v10343_v59  ;;  %v7747_v59 = vunpack.i.l.bf16 %v9940_v3 }
 0x640   : > { %v4776_v14 = vpop.permute.xlu1 %4775  ;;  %v4844_v55 = vpop.permute.xlu0 %4843 }
 0x641   : > { %v10348_v31 = vsel %vm304_vm2, %v7737_v60, %v4776_v14  ;;  %v10351_v15 = vsel %vm330_vm3, %v7742_v7, %v4844_v55 }
 0x642   : > { %5651 = vrot.lane.b32.xlu1 %v10348_v31, %s7848_s16  ;;  %5178 = vrot.lane.b32.xlu0 %v10348_v31, %s7846_s15 }
 0x644   : > { %v4916_v54 = vpop.permute.xlu1 %4915  ;;  %v4994_v38 = vpop.permute.xlu0 %4993 }
 0x645   : > { %v10360_v21 = vsel %vm356_vm4, %v7747_v59, %v4916_v54  ;;  %v10363_v60 = vsel %vm383_vm5, %v7752_v40, %v4994_v38 }
 0x646   : > { %4957 = vst [vmem:[#allocation6 + $0xf0] sm:$0xff] %v10360_v21  ;;  %5035 = vst [vmem:[#allocation6 + $0x140] sm:$0xff] %v10363_v60  ;;  %5671 = vrot.lane.b32.xlu1 %v10351_v15, %s7848_s16  ;;  %5198 = vrot.lane.b32.xlu0 %v10351_v15, %s7846_s15 }
 0x648   : > { %v4846_v7 = vpop.permute.xlu1 %4845  ;;  %v4778_v8 = vpop.permute.xlu0 %4777 }
 0x649   : > { %v10372_v46 = vsel %vm330_vm3, %v4844_v55, %v4846_v7  ;;  %v10376_v59 = vsel %vm330_vm3, %v4846_v7, %v10079_v49  ;;  %v10379_v40 = vsel %vm304_vm2, %v4776_v14, %v4778_v8  ;;  %v10383_v17 = vsel %vm304_vm2, %v4778_v8, %v10087_v1 }
 0x64a   : > { %5182 = vrot.lane.b32.xlu1 %v10383_v17, %s7846_s15  ;;  %5218 = vrot.lane.b32.xlu0 %v10360_v21, %s7846_s15  ;;  %v7753_v7 = vunpack.i.h.bf16 %v9938_v35 }
 0x64c   : > { %v4996_v2 = vpop.permute.xlu1 %4995  ;;  %v4918_v55 = vpop.permute.xlu0 %4917 }
 0x64d   : > { %v10390_v61 = vsel %vm383_vm5, %v4994_v38, %v4996_v2  ;;  %v10394_v49 = vsel %vm383_vm5, %v4996_v2, %v10097_v56  ;;  %v10397_v14 = vsel %vm356_vm4, %v4916_v54, %v4918_v55  ;;  %v10401_v1 = vsel %vm356_vm4, %v4918_v55, %v10107_v19 }
 0x64e   : > { %5036 = vst [vmem:[#allocation6 + $0x148] sm:$0xff] %v10390_v61  ;;  %5037 = vst [vmem:[#allocation6 + $0x150] sm:$0xff] %v10394_v49  ;;  %5202 = vrot.lane.b32.xlu1 %v10376_v59, %s7846_s15  ;;  %5238 = vrot.lane.b32.xlu0 %v10363_v60, %s7846_s15  ;;  %v7743_v56 = vunpack.i.h.bf16 %v9934_v10  ;;  %v7738_v19 = vunpack.i.h.bf16 %v9936_v5  ;;  %v7748_v10 = vunpack.i.h.bf16 %v9940_v3 }
 0x652   : > { %5222 = vrot.lane.b32.xlu1 %v10401_v1, %s7846_s15  ;;  %5180 = vrot.lane.b32.xlu0 %v10379_v40, %s7846_s15 }
 0x654   : > { %v4786_v38 = vpop.permute.xlu1 %4785  ;;  %v4854_v8 = vpop.permute.xlu0 %4853 }
 0x655   : > { %v10416_v2 = vsel %vm304_vm2, %v7738_v19, %v4786_v38  ;;  %v10419_v54 = vsel %vm330_vm3, %v7743_v56, %v4854_v8 }
 0x656   : > { %5242 = vrot.lane.b32.xlu1 %v10394_v49, %s7846_s15  ;;  %5200 = vrot.lane.b32.xlu0 %v10372_v46, %s7846_s15 }
 0x658   : > { %v4928_v55 = vpop.permute.xlu1 %4927  ;;  %v5006_v5 = vpop.permute.xlu0 %5005 }
 0x659   : > { %v10428_v43 = vsel %vm356_vm4, %v7748_v10, %v4928_v55  ;;  %v10431_v19 = vsel %vm383_vm5, %v7753_v7, %v5006_v5 }
 0x65a   : > { %5040 = vst [vmem:[#allocation6 + $0x168] sm:$0xff] %v10431_v19  ;;  %5653 = vrot.lane.b32.xlu1 %v10379_v40, %s7848_s16  ;;  %5220 = vrot.lane.b32.xlu0 %v10397_v14, %s7846_s15 }
 0x65c   : > { %v5161_v56 = vpop.permute.xlu1 %5160  ;;  %v5634_v35 = vpop.permute.xlu0 %5633 }
 0x65e   : > { %5673 = vrot.lane.b32.xlu1 %v10372_v46, %s7848_s16  ;;  %5240 = vrot.lane.b32.xlu0 %v10390_v61, %s7846_s15 }
 0x660   : > { %v4856_v3 = vpop.permute.xlu1 %4855  ;;  %v4788_v10 = vpop.permute.xlu0 %4787 }
 0x661   : > { %v10443_v7 = vsel %vm330_vm3, %v4854_v8, %v4856_v3  ;;  %v10447_v62 = vsel %vm330_vm3, %v4856_v3, %v10172_v36  ;;  %v10450_v63 = vsel %vm304_vm2, %v4786_v38, %v4788_v10  ;;  %v10454_v22 = vsel %vm304_vm2, %v4788_v10, %v10139_v57 }
 0x662   : > { %4885 = vst [vmem:[#allocation6 + $0xd0] sm:$0xff] %v10443_v7  ;;  %4886 = vst [vmem:[#allocation6 + $0xd8] sm:$0xff] %v10447_v62  ;;  %5188 = vrot.lane.b32.xlu1 %v10416_v2, %s7846_s15  ;;  %5655 = vrot.lane.b32.xlu0 %v10383_v17, %s7848_s16  ;;  %v7762_v3 = vunpack.i.l.bf16 %v9952_v18  ;;  %vm11590_vm2 = vcmask 1031168  }
 0x663   : > { %vm11591_vm3 = vmmov %vm11590_vm2 }
 0x664   : > { %v5008_v8 = vpop.permute.xlu1 %5007  ;;  %v10462_v36 = vpop.permute.xlu0 %5677  ;;  %v5731_v9 = vsel %vm11591_vm3, %v7762_v3, %v5634_v35  ;;  %vm11597_vm14 = vmmov %vm11590_vm2 }
 0x665   : > { %11588 = vst [vmem:[#allocation32_spill] sm:$0xff] %v10462_v36  ;;  %v10465_v38 = vsel %vm383_vm5, %v5006_v5, %v5008_v8  ;;  %v10469_v57 = vsel %vm383_vm5, %v5008_v8, %v10187_v25  ;;  %vm11598_vm8 = vmmov %vm11590_vm2 }
 0x666   : > { %5041 = vst [vmem:[#allocation6 + $0x170] sm:$0xff] %v10465_v38  ;;  %5042 = vst [vmem:[#allocation6 + $0x178] sm:$0xff] %v10469_v57  ;;  %5208 = vrot.lane.b32.xlu1 %v10419_v54, %s7846_s15  ;;  %5675 = vrot.lane.b32.xlu0 %v10376_v59, %s7848_s16 }
 0x667   : > { %vm11605_vm15 = vmmov %vm11590_vm2 }
 0x668   : > { %v10478_v10 = vpop.permute.xlu1 %5635  ;;  %v4930_v5 = vpop.permute.xlu0 %4929  ;;  %vm11606_vm0 = vmmov %vm11590_vm2 }
 0x669   : > { %11589 = vst [vmem:[#allocation33_spill] sm:$0xff] %v10478_v10  ;;  %v10481_v36 = vsel %vm356_vm4, %v4928_v55, %v4930_v5  ;;  %v10485_v25 = vsel %vm356_vm4, %v4930_v5, %v10155_v50  ;;  %v5732_v8 = vsel %vm11590_vm2, %v5634_v35, %v10478_v10  ;;  %v7757_v55 = vunpack.i.l.bf16 %v9942_v27 }
 0x66a   : > { %5814 = vmatprep.subr.bf16.mxu0 %v5732_v8  ;;  %5228 = vrot.lane.b32.xlu1 %v10428_v43, %s7846_s15  ;;  %vm11592_vm4 = vcmask 1039360   ;;  %v7758_v35 = vunpack.i.h.bf16 %v9942_v27  ;;  %v7763_v27 = vunpack.i.h.bf16 %v9952_v18  ;;  %v10535_v18 = vld.sshfl [vmem:[%s11476_s5 + $0x4] sm:$0x33 pattern:$0x76325410] }
 0x66b   : > { %5815 = vmatpush1.bf16.msra.mxu0 %v5731_v9  ;;  %5661 = vrot.lane.b32.xlu0 %v10416_v2, %s7848_s16  ;;  %vm11593_vm10 = vmmov %vm11592_vm4 }
 0x66c   : > { %v5644_v12 = vpop.permute.xlu1 %5643  ;;  %v10495_v11 = vpop.permute.xlu0 %5162  ;;  %v5258_v5 = vsel %vm11593_vm10, %v7757_v55, %v5161_v56  ;;  %vm11594_vm12 = vmmov %vm11592_vm4 }
 0x66d   : > { %v5259_v50 = vsel %vm11592_vm4, %v5161_v56, %v10495_v11  ;;  %vm11595_vm13 = vmmov %vm11592_vm4 }
 0x66e   : > { %5342 = vmatprep.subr.bf16.mxu1 %v5259_v50  ;;  %5248 = vrot.lane.b32.xlu1 %v10431_v19, %s7846_s15  ;;  %v5735_v50 = vsel %vm11598_vm8, %v7763_v27, %v5644_v12  ;;  %vm11601_vm9 = vmmov %vm11592_vm4 }
 0x66f   : > { %5343 = vmatpush1.bf16.msra.mxu1 %v5258_v5  ;;  %5192 = vrot.lane.b32.xlu0 %v10454_v22, %s7846_s15  ;;  %vm11602_vm11 = vmmov %vm11592_vm4 }
 0x670   : > { %v10505_v9 = vpop.permute.xlu1 %5172  ;;  %v5171_v3 = vpop.permute.xlu0 %5170  ;;  %vm11608_vm6 = vmmov %vm11592_vm4 }
 0x671   : > { %v5263_v8 = vsel %vm11594_vm12, %v5171_v3, %v10505_v9  ;;  %v5262_v10 = vsel %vm11595_vm13, %v7758_v35, %v5171_v3  ;;  %vm11609_vm7 = vmmov %vm11592_vm4 }
 0x672   : > { %5344 = vmatprep.subr.bf16.mxu1 %v5263_v8  ;;  %5190 = vrot.lane.b32.xlu1 %v10450_v63, %s7846_s15  ;;  %vm11610_vm1 = vmmov %vm11592_vm4 }
 0x673   : > { %5345 = vmatpush1.bf16.msra.mxu1 %v5262_v10  ;;  %5681 = vrot.lane.b32.xlu0 %v10419_v54, %s7848_s16  ;;  %vm11611_vm2 = vmmov %vm11610_vm1 }
 0x674   : > { %v10515_v56 = vpop.permute.xlu0 %5645  ;;  %vm11612_vm3 = vmmov %vm11610_vm1 }
 0x675   : > { %11596 = vst [vmem:[#allocation34_spill] sm:$0xff] %v10515_v56  ;;  %v5736_v55 = vsel %vm11597_vm14, %v5644_v12, %v10515_v56  ;;  %v10541_v12 = vcombine.high %v10535_v18, %v10535_v18  ;;  %vm11613_vm4 = vmmov %vm11610_vm1 }
 0x676   : > { %5816 = vmatprep.subr.bf16.mxu0 %v5736_v55  ;;  %5679 = vrot.lane.b32.xlu1 %v10089_v47, %s7848_s16  ;;  %vm11614_vm10 = vmmov %vm11610_vm1 }
 0x677   : > { %5817 = vmatpush1.bf16.msra.mxu0 %v5735_v50  ;;  %5212 = vrot.lane.b32.xlu0 %v10447_v62, %s7846_s15  ;;  %vm11615_vm12 = vmmov %vm11610_vm1 }
 0x678   : > { %7080 = vmatprep.mubr.msk.bf16.mxu1 %vm383_vm5, %v10541_v12  ;;  %vm11616_vm13 = vmmov %vm11610_vm1 }
 0x679   : > { %vm11617_vm14 = vmmov %vm11610_vm1 }
 0x67a   : > { %5210 = vrot.lane.b32.xlu1 %v10443_v7, %s7846_s15  ;;  %vm11618_vm8 = vmmov %vm11610_vm1 }
 0x67b   : > { %5695 = vrot.lane.b32.xlu0 %v10401_v1, %s7848_s16 }
 0x67e   : > { %5693 = vrot.lane.b32.xlu1 %v10397_v14, %s7848_s16 }
 0x67f   : > { %5232 = vrot.lane.b32.xlu0 %v10485_v25, %s7846_s15 }
 0x682   : > { %5230 = vrot.lane.b32.xlu1 %v10481_v36, %s7846_s15 }
 0x683   : > { %5689 = vrot.lane.b32.xlu0 %v10159_v41, %s7848_s16 }
 0x686   : > { %5687 = vrot.lane.b32.xlu1 %v10178_v52, %s7848_s16 }
 0x687   : > { %5252 = vrot.lane.b32.xlu0 %v10469_v57, %s7846_s15 }
 0x68a   : > { %5250 = vrot.lane.b32.xlu1 %v10465_v38, %s7846_s15  ;;  %s7869_s15 = smov 36  }
 0x68b   : > { %5697 = vrot.lane.b32.xlu0 %v10111_v34, %s7848_s16 }
 0x68e   : > { %5691 = vrot.lane.b32.xlu1 %v10360_v21, %s7848_s16 }
 0x68f   : > { %5701 = vrot.lane.b32.xlu0 %v10428_v43, %s7848_s16 }
 0x692   : > { %5699 = vrot.lane.b32.xlu1 %v10118_v16, %s7848_s16 }
 0x693   : > { %5715 = vrot.lane.b32.xlu0 %v10394_v49, %s7848_s16 }
 0x696   : > { %5713 = vrot.lane.b32.xlu1 %v10390_v61, %s7848_s16 }
 0x697   : > { %5709 = vrot.lane.b32.xlu0 %v10174_v23, %s7848_s16 }
 0x69a   : > { %5707 = vrot.lane.b32.xlu1 %v10163_v58, %s7848_s16 }
 0x69b   : > { %5717 = vrot.lane.b32.xlu0 %v10102_v29, %s7848_s16  ;;  %v10585_v29 = vld [vmem:[#allocation5] sm:$0xff] }
 0x69c   : > { %11599 = vst [vmem:[#allocation35_spill] sm:$0xff] %v10585_v29  ;;  %v10589_v10 = vpack.i.bf16 %v10585_v29, %v10585_v29 }
 0x69e   : > { %5711 = vrot.lane.b32.xlu1 %v10363_v60, %s7848_s16 }
 0x69f   : > { %5721 = vrot.lane.b32.xlu0 %v10431_v19, %s7848_s16 }
 0x6a2   : > { %5719 = vrot.lane.b32.xlu1 %v10124_v45, %s7848_s16 }
 0x6a3   : > { %6016 = vrot.lane.b32.xlu0 %v10230_v30, %s7849_s17 }
 0x6a6   : > { %6014 = vrot.lane.b32.xlu1 %v10235_v6, %s7849_s17 }
 0x6a7   : > { %5729 = vrot.lane.b32.xlu0 %v10189_v48, %s7848_s16 }
 0x6aa   : > { %5727 = vrot.lane.b32.xlu1 %v10193_v24, %s7848_s16 }
 0x6ab   : > { %6024 = vrot.lane.b32.xlu0 %v10269_v32, %s7849_s17 }
 0x6ae   : > { %7765 = vrot.lane.b32.xlu1 %v10589_v10, %s7849_s17 }
 0x6af   : > { %6018 = vrot.lane.b32.xlu0 %v9980_v39, %s7849_s17 }
 0x6b2   : > { %6026 = vrot.lane.b32.xlu1 %v10267_v51, %s7849_s17 }
 0x6b3   : > { %6034 = vrot.lane.b32.xlu0 %v10379_v40, %s7849_s17 }
 0x6b4   : > { %v5652_v5 = vpop.permute.xlu1 %5651  ;;  %v5179_v35 = vpop.permute.xlu0 %5178 }
 0x6b6   : > { %6020 = vrot.lane.b32.xlu1 %v10006_v33, %s7849_s17 }
 0x6b7   : > { %6028 = vrot.lane.b32.xlu0 %v10000_v26, %s7849_s17 }
 0x6b8   : > { %v10605_v3 = vpop.permute.xlu1 %5671  ;;  %v10607_v8 = vpop.permute.xlu0 %5198 }
 0x6b9   : > { %11600 = vst [vmem:[#allocation36_spill] sm:$0xff] %v10605_v3 }
 0x6ba   : > { %6036 = vrot.lane.b32.xlu1 %v10383_v17, %s7849_s17 }
 0x6bb   : > { %6032 = vrot.lane.b32.xlu0 %v10348_v31, %s7849_s17 }
 0x6bc   : > { %v10613_v39 = vpop.permute.xlu1 %5182  ;;  %v10615_v27 = vpop.permute.xlu0 %5218 }
 0x6be   : > { %6030 = vrot.lane.b32.xlu1 %v10022_v53, %s7849_s17 }
 0x6bf   : > { %6040 = vrot.lane.b32.xlu0 %v10073_v20, %s7849_s17 }
 0x6c0   : > { %v10621_v26 = vpop.permute.xlu1 %5202  ;;  %v10623_v33 = vpop.permute.xlu0 %5238 }
 0x6c2   : > { %6038 = vrot.lane.b32.xlu1 %v10093_v42, %s7849_s17 }
 0x6c3   : > { %6054 = vrot.lane.b32.xlu0 %v10372_v46, %s7849_s17 }
 0x6c4   : > { %v10629_v55 = vpop.permute.xlu1 %5222  ;;  %v5181_v50 = vpop.permute.xlu0 %5180 }
 0x6c5   : > { %v5267_v3 = vsel %vm11601_vm9, %v5181_v50, %v10613_v39  ;;  %v5266_v53 = vsel %vm11602_vm11, %v5179_v35, %v5181_v50  ;;  %vm11619_vm9 = vmmov %vm11610_vm1 }
 0x6c6   : > { %6042 = vrot.lane.b32.xlu1 %v10416_v2, %s7849_s17  ;;  %5346 = vmatprep.subr.bf16.mxu1 %v5267_v3  ;;  %vm11620_vm11 = vmmov %vm11610_vm1 }
 0x6c7   : > { %6048 = vrot.lane.b32.xlu0 %v10145_v13, %s7849_s17  ;;  %5347 = vmatpush1.bf16.msra.mxu1 %v5266_v53 }
 0x6c8   : > { %v10638_v20 = vpop.permute.xlu1 %5242  ;;  %v5201_v42 = vpop.permute.xlu0 %5200 }
 0x6ca   : > { %6056 = vrot.lane.b32.xlu1 %v10376_v59, %s7849_s17 }
 0x6cb   : > { %6052 = vrot.lane.b32.xlu0 %v10351_v15, %s7849_s17 }
 0x6cc   : > { %v5654_v56 = vpop.permute.xlu1 %5653  ;;  %v5221_v29 = vpop.permute.xlu0 %5220 }
 0x6ce   : > { %6050 = vrot.lane.b32.xlu1 %v10141_v28, %s7849_s17 }
 0x6cf   : > { %6060 = vrot.lane.b32.xlu0 %v10089_v47, %s7849_s17  ;;  %v5739_v47 = vsel %vm11606_vm0, %v5652_v5, %v5654_v56  ;;  %vm11622_vm0 = vmmov %vm11610_vm1 }
 0x6d0   : > { %v10648_v35 = vpop.permute.xlu1 %5673  ;;  %v10650_v13 = vpop.permute.xlu0 %5240 }
 0x6d1   : > { %11603 = vst [vmem:[#allocation37_spill] sm:$0xff] %v10648_v35 }
 0x6d2   : > { %6058 = vrot.lane.b32.xlu1 %v10084_v44, %s7849_s17 }
 0x6d3   : > { %6074 = vrot.lane.b32.xlu0 %v10397_v14, %s7849_s17 }
 0x6d4   : > { %v5189_v3 = vpop.permute.xlu1 %5188  ;;  %v10656_v50 = vpop.permute.xlu0 %5655 }
 0x6d5   : > { %11604 = vst [vmem:[#allocation38_spill] sm:$0xff] %v10656_v50  ;;  %v5740_v53 = vsel %vm11605_vm15, %v5654_v56, %v10656_v50  ;;  %vm11621_vm15 = vmmov %vm11610_vm1 }
 0x6d6   : > { %6062 = vrot.lane.b32.xlu1 %v10419_v54, %s7849_s17  ;;  %5818 = vmatprep.subr.bf16.mxu0 %v5740_v53 }
 0x6d7   : > { %6068 = vrot.lane.b32.xlu0 %v10178_v52, %s7849_s17  ;;  %5819 = vmatpush1.bf16.msra.mxu0 %v5739_v47 }
 0x6d8   : > { %v5209_v44 = vpop.permute.xlu1 %5208  ;;  %v10665_v28 = vpop.permute.xlu0 %5675 }
 0x6da   : > { %6076 = vrot.lane.b32.xlu1 %v10401_v1, %s7849_s17 }
 0x6db   : > { %6072 = vrot.lane.b32.xlu0 %v10360_v21, %s7849_s17 }
 0x6dc   : > { %v5229_v50 = vpop.permute.xlu1 %5228 }
 0x6dd   : > { %v10671_v35 = vpop.permute.xlu0 %5661 }
 0x6de   : > { %6070 = vrot.lane.b32.xlu1 %v10159_v41, %s7849_s17 }
 0x6df   : > { %6080 = vrot.lane.b32.xlu0 %v10118_v16, %s7849_s17 }
 0x6e0   : > { %v5249_v52 = vpop.permute.xlu1 %5248 }
 0x6e1   : > { %v10677_v56 = vpop.permute.xlu0 %5192 }
 0x6e2   : > { %6078 = vrot.lane.b32.xlu1 %v10111_v34, %s7849_s17  ;;  %v5275_v34 = vsel %vm11610_vm1, %v5201_v42, %v10621_v26  ;;  %vm11626_vm1 = vmmov %vm11622_vm0 }
 0x6e3   : > { %6094 = vrot.lane.b32.xlu0 %v10390_v61, %s7849_s17 }
 0x6e4   : > { %v5191_v5 = vpop.permute.xlu1 %5190 }
 0x6e5   : > { %v10683_v53 = vpop.permute.xlu0 %5681  ;;  %v5271_v47 = vsel %vm11608_vm6, %v5191_v5, %v10677_v56  ;;  %v5270_v41 = vsel %vm11609_vm7, %v5189_v3, %v5191_v5  ;;  %v5274_v3 = vsel %vm11611_vm2, %v10607_v8, %v5201_v42  ;;  %v5283_v8 = vsel %vm11614_vm10, %v5221_v29, %v10629_v55  ;;  %vm11623_vm6 = vmmov %vm11622_vm0 }
 0x6e6   : > { %11607 = vst [vmem:[#allocation39_spill] sm:$0xff] %v10683_v53  ;;  %6082 = vrot.lane.b32.xlu1 %v10428_v43, %s7849_s17  ;;  %5348 = vmatprep.subr.bf16.mxu1 %v5271_v47  ;;  %vm11625_vm7 = vmmov %vm11622_vm0 }
 0x6e7   : > { %6088 = vrot.lane.b32.xlu0 %v10163_v58, %s7849_s17  ;;  %5349 = vmatpush1.bf16.msra.mxu1 %v5270_v41  ;;  %vm11629_vm2 = vmmov %vm11622_vm0 }
 0x6e8   : > { %v10694_v16 = vpop.permute.xlu1 %5679  ;;  %5350 = vmatprep.subr.bf16.mxu1 %v5275_v34  ;;  %vm11634_vm10 = vmmov %vm11622_vm0 }
 0x6e9   : > { %v10696_v53 = vpop.permute.xlu0 %5212 }
 0x6ea   : > { %6096 = vrot.lane.b32.xlu1 %v10394_v49, %s7849_s17 }
 0x6eb   : > { %6092 = vrot.lane.b32.xlu0 %v10363_v60, %s7849_s17  ;;  %5351 = vmatpush1.bf16.msra.mxu1 %v5274_v3  ;;  %v10719_v3 = vld [vmem:[#allocation6 + $0x158] sm:$0xff] }
 0x6ec   : > { %v5211_v58 = vpop.permute.xlu1 %5210 }
 0x6ed   : > { %v10704_v5 = vpop.permute.xlu0 %5695  ;;  %v5279_v47 = vsel %vm11612_vm3, %v5211_v58, %v10696_v53  ;;  %v5278_v41 = vsel %vm11613_vm4, %v5209_v44, %v5211_v58  ;;  %vm11630_vm3 = vmmov %vm11622_vm0 }
 0x6ee   : > { %6090 = vrot.lane.b32.xlu1 %v10174_v23, %s7849_s17  ;;  %5352 = vmatprep.subr.bf16.mxu1 %v5279_v47  ;;  %v5282_v23 = vsel %vm11615_vm12, %v10615_v27, %v5221_v29  ;;  %v5291_v29 = vsel %vm11618_vm8, %v10650_v13, %v10638_v20  ;;  %vm11633_vm4 = vmmov %vm11622_vm0 }
 0x6ef   : > { %6100 = vrot.lane.b32.xlu0 %v10124_v45, %s7849_s17  ;;  %5353 = vmatpush1.bf16.msra.mxu1 %v5278_v41  ;;  %vm11637_vm12 = vmmov %vm11622_vm0 }
 0x6f0   : > { %v10715_v42 = vpop.permute.xlu1 %5693  ;;  %5354 = vmatprep.subr.bf16.mxu1 %v5283_v8  ;;  %vm11642_vm8 = vmmov %vm11622_vm0 }
 0x6f1   : > { %v10717_v34 = vpop.permute.xlu0 %5232 }
 0x6f2   : > { %6098 = vrot.lane.b32.xlu1 %v10719_v3, %s7849_s17 }
 0x6f3   : > { %6395 = vrot.lane.b32.xlu0 %v10235_v6, %s7850_s18  ;;  %5355 = vmatpush1.bf16.msra.mxu1 %v5282_v23 }
 0x6f4   : > { %v5231_v45 = vpop.permute.xlu1 %5230 }
 0x6f5   : > { %v10727_v44 = vpop.permute.xlu0 %5689  ;;  %v5287_v58 = vsel %vm11616_vm13, %v5231_v45, %v10717_v34  ;;  %v5286_v47 = vsel %vm11617_vm14, %v5229_v50, %v5231_v45  ;;  %v5290_v50 = vsel %vm11619_vm9, %v10623_v33, %v10650_v13  ;;  %v6287_v13 = vld [vmem:[#allocation6 + $0x20] sm:$0xff]  ;;  %vm11638_vm13 = vmmov %vm11622_vm0 }
 0x6f6   : > { %6102 = vrot.lane.b32.xlu1 %v10431_v19, %s7849_s17  ;;  %5356 = vmatprep.subr.bf16.mxu1 %v5287_v58  ;;  %vm11641_vm14 = vmmov %vm11622_vm0 }
 0x6f7   : > { %6108 = vrot.lane.b32.xlu0 %v10193_v24, %s7849_s17  ;;  %5357 = vmatpush1.bf16.msra.mxu1 %v5286_v47  ;;  %vm11645_vm9 = vmmov %vm11622_vm0 }
 0x6f8   : > { %v10739_v27 = vpop.permute.xlu1 %5687  ;;  %5358 = vmatprep.subr.bf16.mxu1 %v5291_v29  ;;  %v6286_v29 = vld [vmem:[#allocation6 + $0x18] sm:$0xff] }
 0x6f9   : > { %v10741_v41 = vpop.permute.xlu0 %5252 }
 0x6fa   : > { %6397 = vrot.lane.b32.xlu1 %v10230_v30, %s7850_s18  ;;  %v5261_v30 = vsel %vm11622_vm0, %v10202_v0, %v10136_v4  ;;  %v11624_v4 = vld [vmem:[#allocation11_spill] sm:$0xff] }
 0x6fb   : > { %7770 = vrot.lane.b32.xlu0 %v10589_v10, %s7850_s18  ;;  %5359 = vmatpush1.bf16.msra.mxu1 %v5290_v50 }
 0x6fc   : > { %v5251_v24 = vpop.permute.xlu1 %5250 }
 0x6fd   : > { %v10750_v8 = vpop.permute.xlu0 %5697  ;;  %v5295_v23 = vsel %vm11620_vm11, %v5251_v24, %v10741_v41  ;;  %v5294_v45 = vsel %vm11621_vm15, %v5249_v52, %v5251_v24  ;;  %v5265_v52 = vsel %vm11625_vm7, %v11624_v4, %v10185_v37  ;;  %v11627_v37 = vld [vmem:[#allocation14_spill] sm:$0xff]  ;;  %vm11647_vm11 = vmmov %vm11622_vm0 }
 0x6fe   : > { %6110 = vrot.lane.b32.xlu1 %v10189_v48, %s7849_s17  ;;  %5360 = vmatprep.subr.bf16.mxu1 %v5295_v23  ;;  %v5260_v48 = vsel %vm11623_vm6, %v10495_v11, %v10202_v0  ;;  %v5264_v0 = vsel %vm11626_vm1, %v10505_v9, %v11624_v4  ;;  %v11628_v11 = vld [vmem:[#allocation12_spill] sm:$0xff]  ;;  %v11631_v23 = vld [vmem:[#allocation22_spill] sm:$0xff]  ;;  %v11635_v4 = vld [vmem:[#allocation13_spill] sm:$0xff] }
 0x6ff   : > { %6407 = vrot.lane.b32.xlu0 %v10267_v51, %s7850_s18  ;;  %5361 = vmatpush1.bf16.msra.mxu1 %v5294_v45  ;;  %v5269_v50 = vsel %vm11629_vm2, %v11628_v11, %v11627_v37  ;;  %v5268_v9 = vsel %vm11630_vm3, %v10613_v39, %v11628_v11  ;;  %v11632_v45 = vld [vmem:[#allocation25_spill] sm:$0xff]  ;;  %v6292_v11 = vld [vmem:[#allocation6 + $0x48] sm:$0xff]  ;;  %vm11650_vm15 = vmmov %vm11622_vm0  ;;  %vm11670_vm3 = vcmask 1022976  }
 0x700   : > { %v10762_v10 = vpop.permute.xlu1 %5691  ;;  %5383 = vmatprep.subr.bf16.mxu1 %v5261_v30  ;;  %v5273_v30 = vsel %vm11633_vm4, %v11632_v45, %v11631_v23  ;;  %v5272_v39 = vsel %vm11634_vm10, %v10677_v56, %v11632_v45  ;;  %vm11655_vm6 = vmmov %vm11622_vm0 }
 0x701   : > { %v10764_v33 = vpop.permute.xlu0 %5701  ;;  %vm11657_vm7 = vmmov %vm11622_vm0 }
 0x702   : > { %6405 = vrot.lane.b32.xlu1 %v10269_v32, %s7850_s18  ;;  %5375 = vmatmul.mubr.bf16.vlgmr.msra.gmra.mrb[28].mxu1 %v10535_v18  ;;  %vm11660_vm1 = vmmov %vm11622_vm0 }
 0x703   : > { %6401 = vrot.lane.b32.xlu0 %v6287_v13, %s7850_s18  ;;  %5384 = vmatpush1.bf16.msra.mxu1 %v5260_v48  ;;  %vm11661_vm2 = vmmov %vm11622_vm0 }
 0x704   : > { %v10776_v58 = vpop.permute.xlu1 %5699  ;;  %5385 = vmatprep.subr.bf16.mxu1 %v5265_v52  ;;  %7081 = vmatprep.mubr.msk.bf16.mxu1 %vm383_vm5, %v10541_v12  ;;  %v11636_v52 = vld [vmem:[#allocation15_spill] sm:$0xff]  ;;  %vm11673_vm4 = vmmov %vm11670_vm3 }
 0x705   : > { %v10780_v47 = vpop.permute.xlu0 %5715  ;;  %v5276_v56 = vsel %vm11638_vm13, %v10621_v26, %v11636_v52  ;;  %v11643_v26 = vld [vmem:[#allocation19_spill] sm:$0xff]  ;;  %vm11674_vm10 = vmmov %vm11670_vm3 }
 0x706   : > { %6399 = vrot.lane.b32.xlu1 %v6286_v29, %s7850_s18  ;;  %v5277_v29 = vsel %vm11637_vm12, %v11636_v52, %v11635_v4  ;;  %v11644_v52 = vld [vmem:[#allocation17_spill] sm:$0xff]  ;;  %vm11676_vm12 = vmmov %vm11670_vm3 }
 0x707   : > { %5663 = vrot.lane.b32.xlu0 %v10450_v63, %s7848_s16  ;;  %5386 = vmatpush1.bf16.msra.mxu1 %v5264_v0  ;;  %vm11678_vm13 = vmmov %vm11670_vm3 }
 0x708   : > { %v10791_v24 = vpop.permute.xlu1 %5713  ;;  %5387 = vmatprep.subr.bf16.mxu1 %v5269_v50  ;;  %v11639_v50 = vld [vmem:[#allocation24_spill] sm:$0xff] }
 0x709   : > { %v10793_v12 = vpop.permute.xlu0 %5709 }
 0x70a   : > { %5665 = vrot.lane.b32.xlu1 %v10454_v22, %s7848_s16 }
 0x70b   : > { %6417 = vrot.lane.b32.xlu0 %v10383_v17, %s7850_s18  ;;  %5388 = vmatpush1.bf16.msra.mxu1 %v5268_v9  ;;  %v11640_v9 = vld [vmem:[#allocation27_spill] sm:$0xff] }
 0x70c   : > { %v10805_v13 = vpop.permute.xlu1 %5707  ;;  %5389 = vmatprep.subr.bf16.mxu1 %v5273_v30  ;;  %v5281_v23 = vsel %vm11641_vm14, %v11640_v9, %v11639_v50  ;;  %v5280_v4 = vsel %vm11642_vm8, %v10696_v53, %v11640_v9  ;;  %v10852_v50 = vld.sshfl [vmem:[%s11476_s5 + $0x8] sm:$0x33 pattern:$0x76325410]  ;;  %v6296_v53 = vld [vmem:[#allocation6 + $0x68] sm:$0xff]  ;;  %v5284_v9 = vsel %vm11647_vm11, %v10629_v55, %v11644_v52  ;;  %vm11680_vm14 = vcmask 1014784  }
 0x70d   : > { %v10807_v48 = vpop.permute.xlu0 %5717  ;;  %vm11682_vm8 = vmmov %vm11680_vm14 }
 0x70e   : > { %6415 = vrot.lane.b32.xlu1 %v10379_v40, %s7850_s18  ;;  %vm11685_vm11 = vmmov %vm11682_vm8 }
 0x70f   : > { %5683 = vrot.lane.b32.xlu0 %v10443_v7, %s7848_s16  ;;  %5390 = vmatpush1.bf16.msra.mxu1 %v5272_v39  ;;  %v6291_v39 = vld [vmem:[#allocation6 + $0x40] sm:$0xff] }
 0x710   : > { %v10819_v0 = vpop.permute.xlu1 %5711  ;;  %5391 = vmatprep.subr.bf16.mxu1 %v5277_v29  ;;  %v5285_v29 = vsel %vm11645_vm9, %v11644_v52, %v11643_v26  ;;  %v11653_v52 = vld [vmem:[#allocation18_spill] sm:$0xff]  ;;  %vm11683_vm9 = vmmov %vm11682_vm8 }
 0x711   : > { %v10821_v37 = vpop.permute.xlu0 %5721 }
 0x712   : > { %5685 = vrot.lane.b32.xlu1 %v10447_v62, %s7848_s16 }
 0x713   : > { %6411 = vrot.lane.b32.xlu0 %v6292_v11, %s7850_s18  ;;  %5392 = vmatpush1.bf16.msra.mxu1 %v5276_v56 }
 0x714   : > { %v10832_v45 = vpop.permute.xlu1 %5719  ;;  %5393 = vmatprep.subr.bf16.mxu1 %v5281_v23  ;;  %v10861_v23 = vcombine.high %v10852_v50, %v10852_v50 }
 0x715   : > { %v10834_v30 = vpop.permute.xlu0 %6016 }
 0x716   : > { %6409 = vrot.lane.b32.xlu1 %v6291_v39, %s7850_s18  ;;  %v11648_v39 = vld [vmem:[#allocation26_spill] sm:$0xff]  ;;  %7087 = vmatprep.mubr.msk.bf16.mxu0 %vm383_vm5, %v10861_v23 }
 0x717   : > { %5703 = vrot.lane.b32.xlu0 %v10481_v36, %s7848_s16  ;;  %5394 = vmatpush1.bf16.msra.mxu1 %v5280_v4  ;;  %v11649_v4 = vld [vmem:[#allocation29_spill] sm:$0xff] }
 0x718   : > { %v10845_v11 = vpop.permute.xlu1 %6014  ;;  %5395 = vmatprep.subr.bf16.mxu1 %v5285_v29  ;;  %v5289_v26 = vsel %vm11650_vm15, %v11649_v4, %v11648_v39  ;;  %v5288_v55 = vsel %vm11622_vm0, %v10717_v34, %v11649_v4  ;;  %v11658_v4 = vld [vmem:[#allocation28_spill] sm:$0xff]  ;;  %vm11689_vm15 = vcmask 1031168   ;;  %vm11690_vm0 = vmmov %vm11682_vm8 }
 0x719   : > { %v10847_v56 = vpop.permute.xlu0 %5729 }
 0x71a   : > { %11646 = vst [vmem:[#allocation11_spill] sm:$0xff] %v10847_v56  ;;  %5705 = vrot.lane.b32.xlu1 %v10485_v25, %s7848_s16 }
 0x71b   : > { %6419 = vrot.lane.b32.xlu0 %v6296_v53, %s7850_s18  ;;  %5396 = vmatpush1.bf16.msra.mxu1 %v5284_v9  ;;  %v11654_v53 = vld [vmem:[#allocation21_spill] sm:$0xff] }
 0x71c   : > { %v10867_v29 = vpop.permute.xlu1 %5727  ;;  %5397 = vmatprep.subr.bf16.mxu1 %v5289_v26  ;;  %v5293_v9 = vsel %vm11655_vm6, %v11654_v53, %v11653_v52  ;;  %v5292_v34 = vsel %vm11657_vm7, %v10638_v20, %v11654_v53  ;;  %vm11692_vm6 = vmmov %vm11690_vm0 }
 0x71d   : > { %11651 = vst [vmem:[#allocation14_spill] sm:$0xff] %v10867_v29  ;;  %v10871_v56 = vpop.permute.xlu0 %6024  ;;  %v10904_v29 = vld.sshfl [vmem:[%s11476_s5] sm:$0x33 pattern:$0x76325410]  ;;  %vm11695_vm7 = vmmov %vm11689_vm15 }
 0x71e   : > { %11652 = vst [vmem:[#allocation12_spill] sm:$0xff] %v10871_v56  ;;  %6413 = vrot.lane.b32.xlu1 %v10348_v31, %s7850_s18 }
 0x71f   : > { %5723 = vrot.lane.b32.xlu0 %v10465_v38, %s7848_s16  ;;  %5398 = vmatpush1.bf16.msra.mxu1 %v5288_v55  ;;  %v11659_v55 = vld [vmem:[#allocation31_spill] sm:$0xff] }
 0x720   : > { %v10883_v39 = vpop.permute.xlu1 %7765  ;;  %5399 = vmatprep.subr.bf16.mxu1 %v5293_v9  ;;  %v5297_v52 = vsel %vm11660_vm1, %v11659_v55, %v11658_v4  ;;  %v5296_v20 = vsel %vm11661_vm2, %v10741_v41, %v11659_v55  ;;  %v11662_v41 = vld [vmem:[#allocation35_spill] sm:$0xff]  ;;  %vm11698_vm1 = vmmov %vm11695_vm7 }
 0x721   : > { %v10885_v26 = vpop.permute.xlu0 %6018  ;;  %vm11699_vm2 = vmmov %vm11698_vm1 }
 0x722   : > { %11656 = vst [vmem:[#allocation22_spill] sm:$0xff] %v10885_v26  ;;  %5725 = vrot.lane.b32.xlu1 %v10469_v57, %s7848_s16  ;;  %v6297_v26 = vld [vmem:[#allocation6 + $0x70] sm:$0xff]  ;;  %s7870_s16 = smov 100  }
 0x723   : > { %6423 = vrot.lane.b32.xlu0 %v10416_v2, %s7850_s18  ;;  %5400 = vmatpush1.bf16.msra.mxu1 %v5292_v34  ;;  %v10917_v34 = vcombine.high %v10904_v29, %v10904_v29 }
 0x724   : > { %v10897_v56 = vpop.permute.xlu1 %6026  ;;  %5401 = vmatprep.subr.bf16.mxu1 %v5297_v52  ;;  %v6301_v52 = vld [vmem:[#allocation6 + $0x90] sm:$0xff] }
 0x725   : > { %v10899_v9 = vpop.permute.xlu0 %6034 }
 0x726   : > { %6421 = vrot.lane.b32.xlu1 %v6297_v26, %s7850_s18  ;;  %v6302_v26 = vld [vmem:[#allocation6 + $0x98] sm:$0xff] }
 0x727   : > { %6437 = vrot.lane.b32.xlu0 %v10376_v59, %s7850_s18  ;;  %5402 = vmatpush1.bf16.msra.mxu1 %v5296_v20 }
 0x728   : > { %v10912_v53 = vpop.permute.xlu1 %6020  ;;  %5437 = vmatprep.subr.bf16.mxu1 %v10235_v6 }
 0x729   : > { %v10919_v4 = vpop.permute.xlu0 %6028 }
 0x72a   : > { %6435 = vrot.lane.b32.xlu1 %v10372_v46, %s7850_s18  ;;  %5416 = vmatmul.mubr.bf16.vlgmr.msra.gmra.mrb[32].mxu1 %v10535_v18 }
 0x72b   : > { %6431 = vrot.lane.b32.xlu0 %v6302_v26, %s7850_s18  ;;  %5438 = vmatpush1.bf16.msra.mxu1 %v11662_v41 }
 0x72c   : > { %v10926_v55 = vpop.permute.xlu1 %6036  ;;  %5439 = vmatprep.subr.bf16.mxu1 %v10269_v32  ;;  %7083 = vmatprep.mubr.msk.bf16.mxu1 %vm383_vm5, %v10917_v34  ;;  %v6306_v32 = vld [vmem:[#allocation6 + $0xb8] sm:$0xff] }
 0x72d   : > { %v10931_v6 = vpop.permute.xlu0 %6032 }
 0x72e   : > { %6429 = vrot.lane.b32.xlu1 %v6301_v52, %s7850_s18 }
 0x72f   : > { %6046 = vrot.lane.b32.xlu0 %v10454_v22, %s7849_s17  ;;  %5440 = vmatpush1.bf16.msra.mxu1 %v11662_v41 }
 0x730   : > { %v10937_v18 = vpop.permute.xlu1 %6030  ;;  %5441 = vmatprep.subr.bf16.mxu1 %v10379_v40 }
 0x731   : > { %v10940_v20 = vpop.permute.xlu0 %6040 }
 0x732   : > { %6044 = vrot.lane.b32.xlu1 %v10450_v63, %s7849_s17 }
 0x733   : > { %6439 = vrot.lane.b32.xlu0 %v6306_v32, %s7850_s18  ;;  %5442 = vmatpush1.bf16.msra.mxu1 %v10348_v31 }
 0x734   : > { %v10946_v26 = vpop.permute.xlu1 %6038  ;;  %5443 = vmatprep.subr.bf16.mxu1 %v10450_v63 }
 0x735   : > { %v10949_v52 = vpop.permute.xlu0 %6054 }
 0x736   : > { %6433 = vrot.lane.b32.xlu1 %v10351_v15, %s7850_s18 }
 0x737   : > { %6066 = vrot.lane.b32.xlu0 %v10447_v62, %s7849_s17  ;;  %5444 = vmatpush1.bf16.msra.mxu1 %v10416_v2  ;;  %v6307_v2 = vld [vmem:[#allocation6 + $0xc0] sm:$0xff] }
 0x738   : > { %v10956_v40 = vpop.permute.xlu1 %6042  ;;  %5445 = vmatprep.subr.bf16.mxu1 %v10372_v46 }
 0x739   : > { %v10959_v41 = vpop.permute.xlu0 %6048 }
 0x73a   : > { %11663 = vst [vmem:[#allocation25_spill] sm:$0xff] %v10959_v41  ;;  %6064 = vrot.lane.b32.xlu1 %v10443_v7, %s7849_s17 }
 0x73b   : > { %6443 = vrot.lane.b32.xlu0 %v10419_v54, %s7850_s18  ;;  %5446 = vmatpush1.bf16.msra.mxu1 %v10351_v15 }
 0x73c   : > { %v10966_v31 = vpop.permute.xlu1 %6056  ;;  %5447 = vmatprep.subr.bf16.mxu1 %v10443_v7 }
 0x73d   : > { %v10969_v32 = vpop.permute.xlu0 %6052 }
 0x73e   : > { %6441 = vrot.lane.b32.xlu1 %v6307_v2, %s7850_s18 }
 0x73f   : > { %6086 = vrot.lane.b32.xlu0 %v10485_v25, %s7849_s17  ;;  %5448 = vmatpush1.bf16.msra.mxu1 %v10419_v54 }
 0x740   : > { %v10975_v46 = vpop.permute.xlu1 %6050  ;;  %5449 = vmatprep.subr.bf16.mxu1 %v10397_v14 }
 0x741   : > { %v10978_v41 = vpop.permute.xlu0 %6060 }
 0x742   : > { %11664 = vst [vmem:[#allocation13_spill] sm:$0xff] %v10978_v41  ;;  %6084 = vrot.lane.b32.xlu1 %v10481_v36, %s7849_s17  ;;  %v6311_v41 = vld [vmem:[#allocation6 + $0xe0] sm:$0xff] }
 0x743   : > { %6457 = vrot.lane.b32.xlu0 %v10401_v1, %s7850_s18  ;;  %5450 = vmatpush1.bf16.msra.mxu1 %v10360_v21  ;;  %v6312_v21 = vld [vmem:[#allocation6 + $0xe8] sm:$0xff] }
 0x744   : > { %v10985_v15 = vpop.permute.xlu1 %6058  ;;  %5451 = vmatprep.subr.bf16.mxu1 %v10481_v36 }
 0x745   : > { %11665 = vst [vmem:[#allocation15_spill] sm:$0xff] %v10985_v15  ;;  %v10988_v7 = vpop.permute.xlu0 %6074 }
 0x746   : > { %11666 = vst [vmem:[#allocation24_spill] sm:$0xff] %v10988_v7  ;;  %6455 = vrot.lane.b32.xlu1 %v10397_v14, %s7850_s18  ;;  %v7819_v7 = vld [vmem:[#allocation6 + $0x18] sm:$0xff] }
 0x747   : > { %6106 = vrot.lane.b32.xlu0 %v10469_v57, %s7849_s17  ;;  %5452 = vmatpush1.bf16.msra.mxu1 %v10428_v43 }
 0x748   : > { %v10995_v54 = vpop.permute.xlu1 %6062  ;;  %5453 = vmatprep.subr.bf16.mxu1 %v10390_v61  ;;  %v6316_v61 = vld [vmem:[#allocation6 + $0x108] sm:$0xff] }
 0x749   : > { %v10998_v2 = vpop.permute.xlu0 %6068 }
 0x74a   : > { %11667 = vst [vmem:[#allocation27_spill] sm:$0xff] %v10998_v2  ;;  %6104 = vrot.lane.b32.xlu1 %v10465_v38, %s7849_s17  ;;  %s7099_s17 = sshll.u32 %s11832_s25, 3 }
 0x74b   : > { %6451 = vrot.lane.b32.xlu0 %v6312_v21, %s7850_s18  ;;  %5454 = vmatpush1.bf16.msra.mxu1 %v10363_v60  ;;  %v6313_v60 = vld [vmem:[#allocation6 + $0xf0] sm:$0xff]  ;;  %s11446_s22 = scalar_lea.vmem %s11478_s7, %s7099_s17 }
 0x74c   : > { %v11004_v14 = vpop.permute.xlu1 %6076  ;;  %5455 = vmatprep.subr.bf16.mxu1 %v10465_v38  ;;  %v7820_v38 = vld [vmem:[#allocation6 + $0x10] sm:$0xff] }
 0x74d   : > { %v11007_v15 = vpop.permute.xlu0 %6072 }
 0x74e   : > { %6449 = vrot.lane.b32.xlu1 %v6311_v41, %s7850_s18 }
 0x74f   : > { %6459 = vrot.lane.b32.xlu0 %v6316_v61, %s7850_s18  ;;  %5456 = vmatpush1.bf16.msra.mxu1 %v10431_v19  ;;  %v7821_v61 = vld [vmem:[#allocation6 + $0x40] sm:$0xff] }
 0x750   : > { %v11012_v2 = vpop.permute.xlu1 %6070  ;;  %5478 = vmatprep.subr.bf16.mxu1 %v7819_v7  ;;  %v6317_v7 = vld [vmem:[#allocation6 + $0x110] sm:$0xff] }
 0x751   : > { %11668 = vst [vmem:[#allocation19_spill] sm:$0xff] %v11012_v2  ;;  %v6081_v21 = vpop.permute.xlu0 %6080 }
 0x752   : > { %6453 = vrot.lane.b32.xlu1 %v6313_v60, %s7850_s18  ;;  %5470 = vmatmul.mubr.bf16.vlgmr.msra.gmra.mrb[36].mxu1 %v10904_v29  ;;  %v7822_v60 = vld [vmem:[#allocation6 + $0x68] sm:$0xff] }
 0x753   : > { %6463 = vrot.lane.b32.xlu0 %v10428_v43, %s7850_s18  ;;  %5479 = vmatpush1.bf16.msra.mxu1 %v7820_v38 }
 0x754   : > { %v11018_v41 = vpop.permute.xlu1 %6078  ;;  %5480 = vmatprep.subr.bf16.mxu1 %v7821_v61  ;;  %7084 = vmatprep.mubr.msk.bf16.mxu1 %vm383_vm5, %v10917_v34  ;;  %v6325_v34 = vld [vmem:[#allocation6 + $0x150] sm:$0xff] }
 0x755   : > { %11669 = vst [vmem:[#allocation17_spill] sm:$0xff] %v11018_v41  ;;  %v6095_v19 = vpop.permute.xlu0 %6094  ;;  %v11024_v2 = vsel %vm11670_vm3, %v11018_v41, %v6081_v21  ;;  %v7823_v61 = vld [vmem:[#allocation6 + $0x90] sm:$0xff]  ;;  %v6310_v41 = vld [vmem:[#allocation6 + $0xd8] sm:$0xff]  ;;  %vm11700_vm3 = vmmov %vm11698_vm1 }
 0x756   : > { %11671 = vst [vmem:[#allocation26_spill] sm:$0xff] %v11024_v2  ;;  %6461 = vrot.lane.b32.xlu1 %v6317_v7, %s7850_s18  ;;  %v6324_v7 = vld [vmem:[#allocation6 + $0x148] sm:$0xff]  ;;  %v6322_v2 = vld [vmem:[#allocation6 + $0x138] sm:$0xff] }
 0x757   : > { %6425 = vrot.lane.b32.xlu0 %v10450_v63, %s7850_s18  ;;  %5481 = vmatpush1.bf16.msra.mxu1 %v10267_v51 }
 0x758   : > { %v11030_v43 = vpop.permute.xlu1 %6082  ;;  %5482 = vmatprep.subr.bf16.mxu1 %v7822_v60 }
 0x759   : > { %v11032_v38 = vpop.permute.xlu0 %6088 }
 0x75a   : > { %11672 = vst [vmem:[#allocation29_spill] sm:$0xff] %v11032_v38  ;;  %6427 = vrot.lane.b32.xlu1 %v10454_v22, %s7850_s18  ;;  %v6309_v38 = vld [vmem:[#allocation6 + $0xd0] sm:$0xff] }
 0x75b   : > { %6477 = vrot.lane.b32.xlu0 %v6325_v34, %s7850_s18  ;;  %5483 = vmatpush1.bf16.msra.mxu1 %v10383_v17  ;;  %v7824_v17 = vld [vmem:[#allocation6 + $0xb8] sm:$0xff] }
 0x75c   : > { %v6097_v21 = vpop.permute.xlu1 %6096  ;;  %5484 = vmatprep.subr.bf16.mxu1 %v7823_v61 }
 0x75d   : > { %v6093_v63 = vpop.permute.xlu0 %6092  ;;  %v11039_v51 = vsel %vm11673_vm4, %v6095_v19, %v6097_v21  ;;  %vm11702_vm4 = vmmov %vm11698_vm1 }
 0x75e   : > { %v11042_v60 = vsel %vm11674_vm10, %v6093_v63, %v6095_v19  ;;  %6475 = vrot.lane.b32.xlu1 %v6324_v7, %s7850_s18  ;;  %v7825_v63 = vld [vmem:[#allocation6 + $0xe0] sm:$0xff]  ;;  %v6321_v7 = vld [vmem:[#allocation6 + $0x130] sm:$0xff]  ;;  %vm11704_vm10 = vmmov %vm11698_vm1 }
 0x75f   : > { %6445 = vrot.lane.b32.xlu0 %v6309_v38, %s7850_s18  ;;  %5485 = vmatpush1.bf16.msra.mxu1 %v10454_v22 }
 0x760   : > { %v11047_v34 = vpop.permute.xlu1 %6090  ;;  %5486 = vmatprep.subr.bf16.mxu1 %v7824_v17  ;;  %v7827_v17 = vld [vmem:[#allocation6 + $0x130] sm:$0xff] }
 0x761   : > { %11675 = vst [vmem:[#allocation18_spill] sm:$0xff] %v11047_v34  ;;  %v6101_v61 = vpop.permute.xlu0 %6100 }
 0x762   : > { %6447 = vrot.lane.b32.xlu1 %v6310_v41, %s7850_s18 }
 0x763   : > { %6471 = vrot.lane.b32.xlu0 %v6322_v2, %s7850_s18  ;;  %5487 = vmatpush1.bf16.msra.mxu1 %v10376_v59  ;;  %v7826_v59 = vld [vmem:[#allocation6 + $0x108] sm:$0xff] }
 0x764   : > { %v6099_v19 = vpop.permute.xlu1 %6098  ;;  %5488 = vmatprep.subr.bf16.mxu1 %v7825_v63  ;;  %v6329_v63 = vld [vmem:[#allocation6 + $0x170] sm:$0xff] }
 0x765   : > { %v11053_v38 = vsel %vm11676_vm12, %v6097_v21, %v6099_v19  ;;  %v6396_v22 = vpop.permute.xlu0 %6395  ;;  %v11056_v34 = vsel %vm11678_vm13, %v6099_v19, %v6101_v61  ;;  %v6323_v61 = vld [vmem:[#allocation6 + $0x140] sm:$0xff]  ;;  %vm11707_vm12 = vmmov %vm11698_vm1 }
 0x766   : > { %11677 = vst [vmem:[#allocation21_spill] sm:$0xff] %v11053_v38  ;;  %6469 = vrot.lane.b32.xlu1 %v6321_v7, %s7850_s18  ;;  %vm11709_vm13 = vmmov %vm11690_vm0 }
 0x767   : > { %6465 = vrot.lane.b32.xlu0 %v10481_v36, %s7850_s18  ;;  %5489 = vmatpush1.bf16.msra.mxu1 %v10447_v62 }
 0x768   : > { %v11062_v2 = vpop.permute.xlu1 %6102  ;;  %5490 = vmatprep.subr.bf16.mxu1 %v7826_v59 }
 0x769   : > { %v11064_v41 = vpop.permute.xlu0 %6108 }
 0x76a   : > { %11679 = vst [vmem:[#allocation28_spill] sm:$0xff] %v11064_v41  ;;  %6467 = vrot.lane.b32.xlu1 %v10485_v25, %s7850_s18  ;;  %v6328_v41 = vld [vmem:[#allocation6 + $0x168] sm:$0xff] }
 0x76b   : > { %6479 = vrot.lane.b32.xlu0 %v10719_v3, %s7850_s18  ;;  %5491 = vmatpush1.bf16.msra.mxu1 %v10401_v1  ;;  %v7828_v3 = vld [vmem:[#allocation6 + $0x158] sm:$0xff] }
 0x76c   : > { %v6398_v21 = vpop.permute.xlu1 %6397  ;;  %5492 = vmatprep.subr.bf16.mxu1 %v7827_v17  ;;  %v6330_v17 = vld [vmem:[#allocation6 + $0x178] sm:$0xff] }
 0x76d   : > { %v7771_v36 = vpop.permute.xlu0 %7770  ;;  %v11072_v62 = vsel %vm11680_vm14, %v6396_v22, %v6398_v21  ;;  %vm11712_vm14 = vmmov %vm11698_vm1 }
 0x76e   : > { %v7772_v19 = vunpack.i.l.bf16 %v7771_v36  ;;  %6473 = vrot.lane.b32.xlu1 %v6323_v61, %s7850_s18  ;;  %v7773_v38 = vunpack.i.h.bf16 %v7771_v36 }
 0x76f   : > { %6485 = vrot.lane.b32.xlu0 %v6329_v63, %s7850_s18  ;;  %5493 = vmatpush1.bf16.msra.mxu1 %v10485_v25  ;;  %v7829_v25 = vld [vmem:[#allocation6 + $0x180] sm:$0xff] }
 0x770   : > { %v11077_v7 = vpop.permute.xlu1 %6110  ;;  %5494 = vmatprep.subr.bf16.mxu1 %v7828_v3  ;;  %v11080_v1 = vsel %vm11682_vm8, %v7772_v19, %v6396_v22  ;;  %v6327_v22 = vld [vmem:[#allocation6 + $0x160] sm:$0xff]  ;;  %vm11714_vm8 = vmmov %vm11698_vm1 }
 0x771   : > { %11681 = vst [vmem:[#allocation31_spill] sm:$0xff] %v11077_v7  ;;  %v11082_v59 = vpop.permute.xlu0 %6407  ;;  %v6331_v7 = vld [vmem:[#allocation6 + $0x180] sm:$0xff] }
 0x772   : > { %6487 = vrot.lane.b32.xlu1 %v6330_v17, %s7850_s18  ;;  %v6332_v17 = vld [vmem:[#allocation6 + $0x188] sm:$0xff] }
 0x773   : > { %6483 = vrot.lane.b32.xlu0 %v6328_v41, %s7850_s18  ;;  %5495 = vmatpush1.bf16.msra.mxu1 %v10394_v49  ;;  %v11687_v49 = vld [vmem:[#allocation7_spill] sm:$0xff]  ;;  %v11688_v41 = vld [vmem:[#allocation8_spill] sm:$0xff] }
 0x774   : > { %v6406_v61 = vpop.permute.xlu1 %6405  ;;  %5496 = vmatprep.subr.bf16.mxu1 %v7829_v25  ;;  %v5734_v36 = vsel %vm11689_vm15, %v11688_v41, %v11687_v49  ;;  %v11697_v49 = vld [vmem:[#allocation9_spill] sm:$0xff]  ;;  %vm11719_vm15 = vmmov %vm11698_vm1 }
 0x775   : > { %v11088_v63 = vsel %vm11683_vm9, %v7773_v38, %v6406_v61  ;;  %v6402_v3 = vpop.permute.xlu0 %6401  ;;  %v11092_v19 = vsel %vm11685_vm11, %v6406_v61, %v11082_v59  ;;  %vm11717_vm9 = vmmov %vm11698_vm1 }
 0x776   : > { %11684 = vst [vmem:[#allocation35_spill] sm:$0xff] %v11088_v63  ;;  %11686 = vst [vmem:[#allocation40_spill] sm:$0xff] %v11092_v19  ;;  %6481 = vrot.lane.b32.xlu1 %v6327_v22, %s7850_s18  ;;  %v11720_v19 = vld [vmem:[#allocation39_spill] sm:$0xff] }
 0x777   : > { %6491 = vrot.lane.b32.xlu0 %v6332_v17, %s7850_s18  ;;  %5497 = vmatpush1.bf16.msra.mxu1 %v10469_v57  ;;  %v11694_v57 = vld [vmem:[#allocation33_spill] sm:$0xff]  ;;  %v11696_v17 = vld [vmem:[#allocation10_spill] sm:$0xff]  ;;  %vm11718_vm11 = vmmov %vm11698_vm1 }
 0x778   : > { %v6400_v25 = vpop.permute.xlu1 %6399  ;;  %5855 = vmatprep.subr.bf16.mxu1 %v5734_v36  ;;  %v5733_v22 = vsel %vm11695_vm7, %v11694_v57, %v11688_v41  ;;  %v5738_v36 = vsel %vm11698_vm1, %v11697_v49, %v11696_v17  ;;  %v11705_v17 = vld [vmem:[#allocation16_spill] sm:$0xff] }
 0x779   : > { %v11101_v38 = vsel %vm11690_vm0, %v6398_v21, %v6400_v25  ;;  %v5664_v63 = vpop.permute.xlu0 %5663  ;;  %v11104_v61 = vsel %vm11692_vm6, %v6400_v25, %v6402_v3  ;;  %v6662_v21 = vld [vmem:[%s11477_s6] sm:$0xf]  ;;  %vm11721_vm0 = vmmov %vm11698_vm1 }
 0x77a   : > { %11691 = vst [vmem:[#allocation7_spill] sm:$0xff] %v11101_v38  ;;  %11693 = vst [vmem:[#allocation8_spill] sm:$0xff] %v11104_v61  ;;  %6489 = vrot.lane.b32.xlu1 %v6331_v7, %s7850_s18  ;;  %5511 = vmatmul.mubr.bf16.vlgmr.msra.gmra.mrb[40].mxu1 %v10904_v29  ;;  %v5743_v41 = vsel %vm11700_vm3, %v10671_v35, %v5664_v63  ;;  %v11701_v25 = vld [vmem:[#allocation34_spill] sm:$0xff] }
 0x77b   : > { %5856 = vmatpush1.bf16.msra.mxu1 %v5733_v22  ;;  %7088 = vmatprep.mubr.msk.bf16.mxu1 %vm383_vm5, %v10861_v23  ;;  %v5737_v57 = vsel %vm11702_vm4, %v11701_v25, %v11697_v49  ;;  %v11703_v22 = vld [vmem:[#allocation37_spill] sm:$0xff]  ;;  %v11711_v49 = vld [vmem:[#allocation36_spill] sm:$0xff]  ;;  %v11715_v25 = vld [vmem:[#allocation23_spill] sm:$0xff] }
 0x77c   : > { %v5666_v3 = vpop.permute.xlu1 %5665  ;;  %5857 = vmatprep.subr.bf16.mxu1 %v5738_v36  ;;  %v5748_v23 = vsel %vm11704_vm10, %v11703_v22, %v10665_v28  ;;  %v11706_v36 = vld [vmem:[#allocation20_spill] sm:$0xff]  ;;  %vm11722_vm6 = vmmov %vm11721_vm0 }
 0x77d   : > { %v6418_v7 = vpop.permute.xlu0 %6417  ;;  %v5744_v29 = vsel %vm11699_vm2, %v5664_v63, %v5666_v3  ;;  %v5742_v38 = vsel %vm11707_vm12, %v11706_v36, %v11705_v17  ;;  %vm11724_vm7 = vmmov %vm11721_vm0 }
 0x77e   : > { %6665 = vperm.xlu1 %7733, %v6662_v21   ;;  %5820 = vmatprep.subr.bf16.mxu0 %v5744_v29  ;;  %v5747_v21 = vsel %vm11712_vm14, %v11711_v49, %v11703_v22  ;;  %v11713_v29 = vld [vmem:[#allocation38_spill] sm:$0xff]  ;;  %v11723_v49 = vld [vmem:[#allocation32_spill] sm:$0xff]  ;;  %vm11725_vm1 = vmmov %vm11709_vm13 }
 0x77f   : > { %5821 = vmatpush1.bf16.msra.mxu0 %v5743_v41  ;;  %5858 = vmatpush1.bf16.msra.mxu1 %v5737_v57  ;;  %v5741_v41 = vsel %vm11714_vm8, %v11713_v29, %v11706_v36  ;;  %v11716_v57 = vld [vmem:[#allocation30_spill] sm:$0xff]  ;;  %v5756_v36 = vsel %vm11722_vm6, %v10715_v42, %v10704_v5  ;;  %vm11726_vm2 = vmmov %vm11725_vm1 }
 0x780   : > { %v11131_v61 = vpop.permute.xlu1 %6415  ;;  %5822 = vmatprep.subr.bf16.mxu0 %v5748_v23  ;;  %5859 = vmatprep.subr.bf16.mxu1 %v5742_v38  ;;  %v5746_v23 = vsel %vm11717_vm9, %v11716_v57, %v11715_v25  ;;  %vm11727_vm3 = vmmov %vm11721_vm0 }
 0x781   : > { %11708 = vst [vmem:[#allocation33_spill] sm:$0xff] %v11131_v61  ;;  %v5684_v35 = vpop.permute.xlu0 %5683  ;;  %v11135_v63 = vsel %vm11709_vm13, %v11131_v61, %v6418_v7  ;;  %vm11728_vm4 = vmmov %vm11721_vm0 }
 0x782   : > { %11710 = vst [vmem:[#allocation10_spill] sm:$0xff] %v11135_v63  ;;  %v5745_v63 = vsel %vm11719_vm15, %v5666_v3, %v11716_v57  ;;  %v5751_v22 = vsel %vm11721_vm0, %v11720_v19, %v5684_v35  ;;  %vm11729_vm10 = vmmov %vm11721_vm0 }
 0x783   : > { %5823 = vmatpush1.bf16.msra.mxu0 %v5747_v21  ;;  %5860 = vmatpush1.bf16.msra.mxu1 %v5741_v41  ;;  %v5750_v21 = vsel %vm11724_vm7, %v11723_v49, %v10694_v16  ;;  %v5754_v16 = vsel %vm11729_vm10, %v10739_v27, %v10727_v44  ;;  %vm11730_vm12 = vmmov %vm11721_vm0 }
 0x784   : > { %v5686_v38 = vpop.permute.xlu1 %5685  ;;  %5861 = vmatprep.subr.bf16.mxu1 %v5746_v23  ;;  %vm11731_vm13 = vmmov %vm11721_vm0 }
 0x785   : > { %v6412_v17 = vpop.permute.xlu0 %6411  ;;  %v5752_v61 = vsel %vm11718_vm11, %v5684_v35, %v5686_v38  ;;  %v5749_v35 = vsel %vm11728_vm4, %v10665_v28, %v11723_v49  ;;  %v5753_v57 = vsel %vm11731_vm13, %v5686_v38, %v10739_v27  ;;  %vm11732_vm14 = vmmov %vm11721_vm0  ;;  %vm11742_vm4 = vcmask 1022976  }
 0x786   : > { %5824 = vmatprep.subr.bf16.mxu0 %v5752_v61  ;;  %v5755_v61 = vsel %vm11727_vm3, %v10762_v10, %v10715_v42  ;;  %vm11733_vm8 = vmmov %vm11725_vm1 }
 0x787   : > { %5825 = vmatpush1.bf16.msra.mxu0 %v5751_v22  ;;  %5862 = vmatpush1.bf16.msra.mxu1 %v5745_v63  ;;  %vm11734_vm9 = vmmov %vm11721_vm0 }
 0x788   : > { %v6410_v29 = vpop.permute.xlu1 %6409  ;;  %5826 = vmatprep.subr.bf16.mxu0 %v5756_v36  ;;  %5863 = vmatprep.subr.bf16.mxu1 %v5750_v21  ;;  %v5764_v44 = vsel %vm11734_vm9, %v10791_v24, %v10780_v47  ;;  %vm11735_vm11 = vmmov %vm11721_vm0  ;;  %v7767_v36 = vunpack.i.l.bf16 %v10883_v39  ;;  %v7768_v21 = vunpack.i.h.bf16 %v10883_v39 }
 0x789   : > { %v11159_v3 = vsel %vm11725_vm1, %v11082_v59, %v6410_v29  ;;  %v5704_v41 = vpop.permute.xlu0 %5703  ;;  %v11162_v19 = vsel %vm11726_vm2, %v6410_v29, %v6412_v17  ;;  %v5758_v10 = vsel %vm11735_vm11, %v10750_v8, %v10776_v58  ;;  %vm11736_vm15 = vmmov %vm11721_vm0 }
 0x78a   : > { %v5759_v42 = vsel %vm11732_vm14, %v10764_v33, %v5704_v41  ;;  %v5763_v33 = vsel %vm11736_vm15, %v10819_v0, %v10791_v24  ;;  %vm11737_vm6 = vmmov %vm11721_vm0  ;;  %v6113_v0 = vsel %vm11742_vm4, %v10845_v11, %v10834_v30 }
 0x78b   : > { %5827 = vmatpush1.bf16.msra.mxu0 %v5755_v61  ;;  %5864 = vmatpush1.bf16.msra.mxu1 %v5749_v35  ;;  %v5762_v38 = vsel %vm11737_vm6, %v10805_v13, %v10793_v12  ;;  %vm11738_vm7 = vmmov %vm11721_vm0  ;;  %v11746_v61 = vld [vmem:[#allocation14_spill] sm:$0xff] }
 0x78c   : > { %v5706_v59 = vpop.permute.xlu1 %5705  ;;  %5865 = vmatprep.subr.bf16.mxu1 %v5754_v16  ;;  %vm11739_vm1 = vmmov %vm11721_vm0  ;;  %v11748_v16 = vld [vmem:[#allocation12_spill] sm:$0xff] }
 0x78d   : > { %v11173_v63 = vpop.permute.xlu0 %6419  ;;  %v5760_v25 = vsel %vm11730_vm12, %v5704_v41, %v5706_v59  ;;  %v5761_v24 = vsel %vm11739_vm1, %v5706_v59, %v10805_v13  ;;  %vm11740_vm2 = vmmov %vm11721_vm0  ;;  %v11745_v41 = vld [vmem:[#allocation11_spill] sm:$0xff] }
 0x78e   : > { %v11182_v28 = vsel %vm11733_vm8, %v6418_v7, %v11173_v63  ;;  %5828 = vmatprep.subr.bf16.mxu0 %v5760_v25  ;;  %v5757_v7 = vsel %vm11721_vm0, %v10704_v5, %v10750_v8  ;;  %v11212_v8 = vld.sshfl [vmem:[%s11476_s5 + $0xc] sm:$0x33 pattern:$0x76325410]  ;;  %vm11741_vm3 = vmmov %vm11721_vm0 }
 0x78f   : > { %5829 = vmatpush1.bf16.msra.mxu0 %v5759_v42  ;;  %5866 = vmatpush1.bf16.msra.mxu1 %v5753_v57  ;;  %v5766_v12 = vsel %vm11741_vm3, %v10807_v48, %v10832_v45  ;;  %v5960_v49 = vcombine.high %v11212_v8, %v11212_v8  ;;  %vm11743_vm10 = vmmov %vm11721_vm0  ;;  %v11753_v57 = vld [vmem:[#allocation22_spill] sm:$0xff] }
 0x790   : > { %v11190_v23 = vpop.permute.xlu1 %6413  ;;  %5830 = vmatprep.subr.bf16.mxu0 %v5764_v44  ;;  %5867 = vmatprep.subr.bf16.mxu1 %v5758_v10  ;;  %v5765_v45 = vsel %vm11743_vm10, %v10780_v47, %v10807_v48  ;;  %vm11744_vm12 = vmmov %vm11742_vm4 }
 0x791   : > { %v5724_v27 = vpop.permute.xlu0 %5723  ;;  %v6112_v29 = vsel %vm11744_vm12, %v7767_v36, %v10845_v11  ;;  %vm11747_vm13 = vmmov %vm11721_vm0 }
 0x792   : > { %v5767_v5 = vsel %vm11740_vm2, %v10821_v37, %v5724_v27  ;;  %v5770_v35 = vsel %vm11747_vm13, %v11746_v61, %v11745_v41  ;;  %vm11749_vm14 = vmmov %vm11742_vm4  ;;  %v11777_v41 = vld [vmem:[#allocation27_spill] sm:$0xff] }
 0x793   : > { %5831 = vmatpush1.bf16.msra.mxu0 %v5763_v33  ;;  %5868 = vmatpush1.bf16.msra.mxu1 %v5757_v7  ;;  %v6117_v59 = vsel %vm11749_vm14, %v11748_v16, %v10897_v56  ;;  %vm11750_vm8 = vmmov %vm11721_vm0 }
 0x794   : > { %v5726_v58 = vpop.permute.xlu1 %5725  ;;  %5869 = vmatprep.subr.bf16.mxu1 %v5762_v38  ;;  %vm11751_vm9 = vmmov %vm11742_vm4 }
 0x795   : > { %v11201_v17 = vpop.permute.xlu0 %6423  ;;  %v5768_v22 = vsel %vm11738_vm7, %v5724_v27, %v5726_v58  ;;  %v5769_v47 = vsel %vm11750_vm8, %v5726_v58, %v11746_v61  ;;  %v6116_v48 = vsel %vm11751_vm9, %v7768_v21, %v11748_v16  ;;  %vm11752_vm11 = vmmov %vm11742_vm4 }
 0x796   : > { %5832 = vmatprep.subr.bf16.mxu0 %v5768_v22  ;;  %v6121_v11 = vsel %vm11752_vm11, %v10899_v9, %v10926_v55  ;;  %vm11754_vm15 = vmmov %vm11742_vm4 }
 0x797   : > { %5833 = vmatpush1.bf16.msra.mxu0 %v5767_v5  ;;  %5870 = vmatpush1.bf16.msra.mxu1 %v5761_v24  ;;  %v6115_v42 = vsel %vm11754_vm15, %v11753_v57, %v10912_v53  ;;  %vm11755_vm0 = vmmov %vm11742_vm4 }
 0x798   : > { %v11220_v13 = vpop.permute.xlu1 %6421  ;;  %5871 = vmatprep.subr.bf16.mxu1 %v5766_v12  ;;  %6195 = vmatprep.subr.bf16.mxu0 %v6113_v0  ;;  %v6120_v27 = vsel %vm11755_vm0, %v10931_v6, %v10899_v9  ;;  %vm11756_vm6 = vmmov %vm11755_vm0 }
 0x799   : > { %v11222_v37 = vpop.permute.xlu0 %6437  ;;  %v6114_v33 = vsel %vm11756_vm6, %v10834_v30, %v11753_v57  ;;  %vm11757_vm7 = vmmov %vm11755_vm0  ;;  %v11783_v57 = vld [vmem:[#allocation17_spill] sm:$0xff] }
 0x79a   : > { %5847 = vmatmul.mubr.bf16.vlgmr.msra.gmra.mrb[32].mxu0 %v10852_v50  ;;  %v6119_v53 = vsel %vm11757_vm7, %v10919_v4, %v10937_v18  ;;  %vm11758_vm1 = vmmov %vm11755_vm0 }
 0x79b   : > { %5872 = vmatpush1.bf16.msra.mxu1 %v5765_v45  ;;  %6196 = vmatpush1.bf16.msra.mxu0 %v6112_v29  ;;  %vm11759_vm2 = vmmov %vm11755_vm0  ;;  %v11776_v29 = vld [vmem:[#allocation19_spill] sm:$0xff] }
 0x79c   : > { %v11239_v39 = vpop.permute.xlu1 %6435  ;;  %5873 = vmatprep.subr.bf16.mxu1 %v5770_v35  ;;  %6197 = vmatprep.subr.bf16.mxu0 %v6117_v59  ;;  %vm11760_vm3 = vmmov %vm11755_vm0 }
 0x79d   : > { %v11241_v25 = vpop.permute.xlu0 %6431  ;;  %7091 = vmatprep.mubr.msk.bf16.mxu0 %vm383_vm5, %v5960_v49  ;;  %v6118_v30 = vsel %vm11760_vm3, %v10897_v56, %v10919_v4  ;;  %vm11761_vm4 = vmmov %vm11755_vm0  ;;  %v11765_v4 = vld [vmem:[#allocation25_spill] sm:$0xff] }
 0x79e   : > { %v6129_v6 = vsel %vm11761_vm4, %v10949_v52, %v10966_v31  ;;  %vm11762_vm10 = vmmov %vm11755_vm0 }
 0x79f   : > { %5874 = vmatpush1.bf16.msra.mxu1 %v5769_v47  ;;  %6198 = vmatpush1.bf16.msra.mxu0 %v6116_v48  ;;  %v6123_v18 = vsel %vm11762_vm10, %v10946_v26, %v10940_v20  ;;  %vm11763_vm12 = vmmov %vm11755_vm0  ;;  %v11782_v48 = vld [vmem:[#allocation26_spill] sm:$0xff] }
 0x7a0   : > { %v11254_v44 = vpop.permute.xlu1 %6429  ;;  %6199 = vmatprep.subr.bf16.mxu0 %v6121_v11  ;;  %6236 = vmatprep.subr.bf16.mxu1 %v6115_v42  ;;  %v6128_v22 = vsel %vm11763_vm12, %v10969_v32, %v10949_v52  ;;  %vm11764_vm13 = vmmov %vm11755_vm0  ;;  %v11772_v32 = vld [vmem:[#allocation13_spill] sm:$0xff]  ;;  %v11785_v42 = vld [vmem:[#allocation18_spill] sm:$0xff] }
 0x7a1   : > { %v6047_v10 = vpop.permute.xlu0 %6046  ;;  %v6122_v56 = vsel %vm11764_vm13, %v10926_v55, %v10946_v26  ;;  %vm11766_vm14 = vmmov %vm11755_vm0  ;;  %v11770_v55 = vld [vmem:[#allocation24_spill] sm:$0xff] }
 0x7a2   : > { %5888 = vmatmul.mubr.bf16.vlgmr.msra.gmra.mrb[44].mxu1 %v10852_v50  ;;  %v6127_v36 = vsel %vm11766_vm14, %v11765_v4, %v10975_v46  ;;  %vm11767_vm8 = vmmov %vm11755_vm0  ;;  %v11773_v46 = vld [vmem:[#allocation15_spill] sm:$0xff] }
 0x7a3   : > { %6200 = vmatpush1.bf16.msra.mxu0 %v6120_v27  ;;  %6237 = vmatpush1.bf16.msra.mxu1 %v6114_v33  ;;  %vm11768_vm9 = vmmov %vm11755_vm0  ;;  %v6131_v0 = vsel %vm11755_vm0, %v11773_v46, %v11772_v32 }
 0x7a4   : > { %v6045_v7 = vpop.permute.xlu1 %6044  ;;  %6238 = vmatprep.subr.bf16.mxu1 %v6119_v53  ;;  %7092 = vmatprep.mubr.msk.bf16.mxu1 %vm383_vm5, %v5960_v49  ;;  %vm11769_vm11 = vmmov %vm11755_vm0 }
 0x7a5   : > { %v6124_v38 = vsel %vm11758_vm1, %v10956_v40, %v6045_v7  ;;  %v11269_v9 = vpop.permute.xlu0 %6439  ;;  %v6125_v50 = vsel %vm11759_vm2, %v6045_v7, %v6047_v10  ;;  %v6126_v52 = vsel %vm11769_vm11, %v6047_v10, %v11765_v4  ;;  %vm11771_vm15 = vmmov %vm11755_vm0  ;;  %v11786_v10 = vld [vmem:[#allocation29_spill] sm:$0xff]  ;;  %v11797_v4 = vld [vmem:[#allocation35_spill] sm:$0xff] }
 0x7a6   : > { %6201 = vmatprep.subr.bf16.mxu0 %v6125_v50  ;;  %v6137_v26 = vsel %vm11771_vm15, %v11770_v55, %v11004_v14  ;;  %vm11774_vm6 = vmmov %vm11755_vm0  ;;  %vm11801_vm15 = vcmask 1014784  }
 0x7a7   : > { %6202 = vmatpush1.bf16.msra.mxu0 %v6124_v38  ;;  %6239 = vmatpush1.bf16.msra.mxu1 %v6118_v30  ;;  %v6136_v21 = vsel %vm11774_vm6, %v11007_v15, %v11770_v55  ;;  %vm11775_vm7 = vmmov %vm11755_vm0  ;;  %v11791_v30 = vld [vmem:[#allocation21_spill] sm:$0xff]  ;;  %v11802_v55 = vld [vmem:[#allocation7_spill] sm:$0xff] }
 0x7a8   : > { %v11281_v40 = vpop.permute.xlu1 %6433  ;;  %6203 = vmatprep.subr.bf16.mxu0 %v6129_v6  ;;  %6240 = vmatprep.subr.bf16.mxu1 %v6123_v18  ;;  %v6130_v45 = vsel %vm11775_vm7, %v10966_v31, %v11773_v46  ;;  %vm11778_vm1 = vmmov %vm11755_vm0  ;;  %v11792_v6 = vld [vmem:[#allocation31_spill] sm:$0xff]  ;;  %v11793_v18 = vld [vmem:[#allocation28_spill] sm:$0xff] }
 0x7a9   : > { %v6067_v58 = vpop.permute.xlu0 %6066  ;;  %v6135_v61 = vsel %vm11778_vm1, %v11777_v41, %v11776_v29  ;;  %vm11779_vm2 = vmmov %vm11755_vm0 }
 0x7aa   : > { %vm11780_vm3 = vmmov %vm11755_vm0 }
 0x7ab   : > { %6204 = vmatpush1.bf16.msra.mxu0 %v6128_v22  ;;  %6241 = vmatpush1.bf16.msra.mxu1 %v6122_v56  ;;  %vm11781_vm4 = vmmov %vm11755_vm0 }
 0x7ac   : > { %v6065_v20 = vpop.permute.xlu1 %6064  ;;  %6242 = vmatprep.subr.bf16.mxu1 %v6127_v36  ;;  %v6134_v15 = vsel %vm11781_vm4, %v6067_v58, %v11777_v41  ;;  %vm11784_vm10 = vmmov %vm11755_vm0 }
 0x7ad   : > { %v6132_v24 = vsel %vm11767_vm8, %v10995_v54, %v6065_v20  ;;  %v11294_v5 = vpop.permute.xlu0 %6443  ;;  %v6133_v12 = vsel %vm11768_vm9, %v6065_v20, %v6067_v58  ;;  %vm11787_vm12 = vmmov %vm11755_vm0  ;;  %v11798_v20 = vld [vmem:[#allocation8_spill] sm:$0xff] }
 0x7ae   : > { %6205 = vmatprep.subr.bf16.mxu0 %v6133_v12  ;;  %v6143_v27 = vsel %vm11787_vm12, %v11786_v10, %v11785_v42  ;;  %vm11788_vm13 = vmmov %vm11755_vm0  ;;  %v11800_v12 = vld [vmem:[#allocation33_spill] sm:$0xff] }
 0x7af   : > { %6206 = vmatpush1.bf16.msra.mxu0 %v6132_v24  ;;  %6243 = vmatpush1.bf16.msra.mxu1 %v6126_v52  ;;  %vm11789_vm14 = vmmov %vm11755_vm0  ;;  %v6501_v52 = vsel %vm11801_vm15, %v11190_v23, %v11800_v12 }
 0x7b0   : > { %v11305_v49 = vpop.permute.xlu1 %6441  ;;  %6207 = vmatprep.subr.bf16.mxu0 %v6137_v26  ;;  %6244 = vmatprep.subr.bf16.mxu1 %v6131_v0  ;;  %vm11790_vm8 = vmmov %vm11755_vm0 }
 0x7b1   : > { %v6087_v54 = vpop.permute.xlu0 %6086  ;;  %vm11794_vm9 = vmmov %vm11755_vm0 }
 0x7b2   : > { %v6142_v38 = vsel %vm11790_vm8, %v6087_v54, %v11786_v10  ;;  %v6151_v58 = vsel %vm11794_vm9, %v11793_v18, %v11792_v6  ;;  %vm11796_vm11 = vmmov %vm11755_vm0 }
 0x7b3   : > { %6208 = vmatpush1.bf16.msra.mxu0 %v6136_v21  ;;  %6245 = vmatpush1.bf16.msra.mxu1 %v6130_v45  ;;  %vm11803_vm0 = vmmov %vm11801_vm15 }
 0x7b4   : > { %v6085_v35 = vpop.permute.xlu1 %6084  ;;  %6246 = vmatprep.subr.bf16.mxu1 %v6135_v61  ;;  %vm11804_vm6 = vmmov %vm11803_vm0 }
 0x7b5   : > { %v6140_v16 = vsel %vm11779_vm2, %v11030_v43, %v6085_v35  ;;  %v11318_v59 = vpop.permute.xlu0 %6457  ;;  %v6141_v47 = vsel %vm11780_vm3, %v6085_v35, %v6087_v54  ;;  %v6138_v43 = vsel %vm11784_vm10, %v11004_v14, %v11783_v57  ;;  %v11344_v14 = vld.sshfl [vmem:[%s11476_s5 + $0x10] sm:$0x33 pattern:$0x76325410]  ;;  %vm11805_vm7 = vmmov %vm11803_vm0 }
 0x7b6   : > { %6209 = vmatprep.subr.bf16.mxu0 %v6141_v47  ;;  %v6341_v50 = vcombine.high %v11344_v14, %v11344_v14  ;;  %v6504_v23 = vsel %vm11805_vm7, %v11173_v63, %v11220_v13  ;;  %vm11806_vm1 = vmmov %vm11803_vm0 }
 0x7b7   : > { %6210 = vmatpush1.bf16.msra.mxu0 %v6140_v16  ;;  %6247 = vmatpush1.bf16.msra.mxu1 %v6134_v15  ;;  %vm11808_vm2 = vmmov %vm11803_vm0 }
 0x7b8   : > { %v11323_v31 = vpop.permute.xlu1 %6455  ;;  %6211 = vmatprep.subr.bf16.mxu0 %v11039_v51  ;;  %6248 = vmatprep.subr.bf16.mxu1 %v11782_v48  ;;  %vm11809_vm3 = vmmov %vm11803_vm0 }
 0x7b9   : > { %v6107_v11 = vpop.permute.xlu0 %6106  ;;  %vm11810_vm4 = vmmov %vm11803_vm0 }
 0x7ba   : > { %v6150_v56 = vsel %vm11796_vm11, %v6107_v11, %v11793_v18  ;;  %vm11811_vm10 = vmmov %vm11803_vm0 }
 0x7bb   : > { %6212 = vmatpush1.bf16.msra.mxu0 %v11042_v60  ;;  %6249 = vmatpush1.bf16.msra.mxu1 %v6138_v43  ;;  %vm11812_vm12 = vmmov %vm11803_vm0 }
 0x7bc   : > { %v6105_v33 = vpop.permute.xlu1 %6104  ;;  %6250 = vmatprep.subr.bf16.mxu1 %v6143_v27  ;;  %vm11815_vm8 = vmmov %vm11803_vm0 }
 0x7bd   : > { %v6148_v53 = vsel %vm11788_vm13, %v11062_v2, %v6105_v33  ;;  %v11336_v51 = vpop.permute.xlu0 %6451  ;;  %v6149_v7 = vsel %vm11789_vm14, %v6105_v33, %v6107_v11  ;;  %vm11813_vm13 = vmmov %vm11803_vm0 }
 0x7be   : > { %6213 = vmatprep.subr.bf16.mxu0 %v6149_v7  ;;  %vm11814_vm14 = vmmov %vm11803_vm0 }
 0x7bf   : > { %6214 = vmatpush1.bf16.msra.mxu0 %v6148_v53  ;;  %6251 = vmatpush1.bf16.msra.mxu1 %v6142_v38  ;;  %vm11816_vm9 = vmmov %vm11803_vm0 }
 0x7c0   : > { %v11346_v60 = vpop.permute.xlu1 %6449  ;;  %6252 = vmatprep.subr.bf16.mxu1 %v11056_v34  ;;  %6576 = vmatprep.subr.bf16.mxu0 %v11072_v62  ;;  %v11795_v34 = vld [vmem:[#allocation40_spill] sm:$0xff]  ;;  %vm11817_vm11 = vmmov %vm11803_vm0 }
 0x7c1   : > { %v11350_v2 = vpop.permute.xlu0 %6459  ;;  %vm11818_vm15 = vmmov %vm11803_vm0 }
 0x7c2   : > { %6228 = vmatmul.mubr.bf16.vlgmr.msra.gmra.mrb[36].mxu0 %v11212_v8  ;;  %vm11820_vm7 = vmmov %vm11803_vm0 }
 0x7c3   : > { %6253 = vmatpush1.bf16.msra.mxu1 %v11791_v30  ;;  %6577 = vmatpush1.bf16.msra.mxu0 %v11080_v1  ;;  %v11799_v1 = vld [vmem:[#allocation10_spill] sm:$0xff] }
 0x7c4   : > { %v6454_v22 = vpop.permute.xlu1 %6453  ;;  %6254 = vmatprep.subr.bf16.mxu1 %v6151_v58  ;;  %6578 = vmatprep.subr.bf16.mxu0 %v11795_v34 }
 0x7c5   : > { %v6464_v62 = vpop.permute.xlu0 %6463  ;;  %7095 = vmatprep.mubr.msk.bf16.mxu0 %vm383_vm5, %v6341_v50  ;;  %v6517_v16 = vsel %vm11815_vm8, %v6454_v22, %v11323_v31  ;;  %vm11830_vm8 = vmmov %vm11803_vm0 }
 0x7c7   : > { %6255 = vmatpush1.bf16.msra.mxu1 %v6150_v56  ;;  %6579 = vmatpush1.bf16.msra.mxu0 %v11797_v4 }
 0x7c8   : > { %v6462_v36 = vpop.permute.xlu1 %6461  ;;  %6617 = vmatprep.subr.bf16.mxu1 %v11798_v20  ;;  %6580 = vmatprep.subr.bf16.mxu0 %v11799_v1 }
 0x7c9   : > { %v6426_v24 = vpop.permute.xlu0 %6425 }
 0x7ca   : > { %6269 = vmatmul.mubr.bf16.vlgmr.msra.gmra.mrb[48].mxu1 %v11212_v8  ;;  %v6505_v0 = vsel %vm11804_vm6, %v11201_v17, %v6426_v24  ;;  %vm11819_vm6 = vmmov %vm11803_vm0 }
 0x7cb   : > { %6581 = vmatpush1.bf16.msra.mxu0 %v6501_v52  ;;  %6618 = vmatpush1.bf16.msra.mxu1 %v11802_v55 }
 0x7cc   : > { %v6428_v26 = vpop.permute.xlu1 %6427  ;;  %6619 = vmatprep.subr.bf16.mxu1 %v11162_v19  ;;  %7096 = vmatprep.mubr.msk.bf16.mxu1 %vm383_vm5, %v6341_v50  ;;  %v6510_v19 = vsel %vm11806_vm1, %v11239_v39, %v11222_v37  ;;  %vm11807_vm5 = vmmov %vm11803_vm0 }
 0x7cd   : > { %v11374_v32 = vpop.permute.xlu0 %6477  ;;  %v6506_v46 = vsel %vm11803_vm0, %v6426_v24, %v6428_v26  ;;  %v6509_v17 = vsel %vm11807_vm5, %v11281_v40, %v11239_v39  ;;  %v6507_v29 = vsel %vm11810_vm4, %v6428_v26, %v11254_v44  ;;  %vm11821_vm1 = vmmov %vm11803_vm0 }
 0x7ce   : > { %6582 = vmatprep.subr.bf16.mxu0 %v6506_v46  ;;  %vm11822_vm5 = vmmov %vm11803_vm0 }
 0x7cf   : > { %6583 = vmatpush1.bf16.msra.mxu0 %v6505_v0  ;;  %6620 = vmatpush1.bf16.msra.mxu1 %v11159_v3  ;;  %v6508_v3 = vsel %vm11808_vm2, %v11254_v44, %v11241_v25  ;;  %v6518_v25 = vsel %vm11813_vm13, %v11323_v31, %v11318_v59  ;;  %v6519_v10 = vsel %vm11822_vm5, %v11318_v59, %v11350_v2  ;;  %vm11823_vm2 = vmmov %vm11803_vm0  ;;  %vm6713_vm5 = vcmask 883712  }
 0x7d0   : > { %v6476_v8 = vpop.permute.xlu1 %6475  ;;  %6621 = vmatprep.subr.bf16.mxu1 %v6504_v23  ;;  %6584 = vmatprep.subr.bf16.mxu0 %v6510_v19  ;;  %vm11825_vm4 = vmmov %vm11803_vm0 }
 0x7d1   : > { %v6446_v54 = vpop.permute.xlu0 %6445  ;;  %vm11828_vm13 = vmmov %vm11803_vm0 }
 0x7d2   : > { %v6513_v39 = vsel %vm11811_vm10, %v11294_v5, %v6446_v54  ;;  %v6511_v5 = vsel %vm11814_vm14, %v11222_v37, %v11269_v9  ;;  %v6520_v37 = vsel %vm11819_vm6, %v11350_v2, %v6462_v36  ;;  %vm11826_vm10 = vmmov %vm11803_vm0  ;;  %vm6696_vm6 = vcmask 519552  }
 0x7d3   : > { %6585 = vmatpush1.bf16.msra.mxu0 %v6509_v17  ;;  %6622 = vmatpush1.bf16.msra.mxu1 %v11182_v28  ;;  %v6512_v28 = vsel %vm11812_vm12, %v11269_v9, %v11305_v49  ;;  %v6516_v49 = vsel %vm11816_vm9, %v11346_v60, %v11336_v51  ;;  %v6526_v9 = vsel %vm11820_vm7, %v6476_v8, %v11374_v32  ;;  %vm11827_vm12 = vmmov %vm11803_vm0  ;;  %vm6676_vm9 = vcmask 125952  }
 0x7d4   : > { %v6448_v63 = vpop.permute.xlu1 %6447  ;;  %6623 = vmatprep.subr.bf16.mxu1 %v6508_v3  ;;  %vm11829_vm14 = vmmov %vm11803_vm0  ;;  %vm6701_vm7 = vcmask 650752  }
 0x7d5   : > { %v6472_v13 = vpop.permute.xlu0 %6471  ;;  %v6514_v21 = vsel %vm11809_vm3, %v6446_v54, %v6448_v63  ;;  %v11394_v45 = vpop.f32.mrb[28].mxu1  ;;  %v6515_v11 = vsel %vm11818_vm15, %v6448_v63, %v11346_v60  ;;  %vm11824_vm3 = vmmov %vm11803_vm0  ;;  %vm6686_vm15 = vcmask 257152  }
 0x7d6   : > { %6586 = vmatprep.subr.bf16.mxu0 %v6514_v21  ;;  %v11400_v40 = vpop.f32.mrb[29].mxu1 }
 0x7d7   : > { %6587 = vmatpush1.bf16.msra.mxu0 %v6513_v39  ;;  %6624 = vmatpush1.bf16.msra.mxu1 %v6507_v29  ;;  %v5380_v41 = vpop.f32.mrb[30].mxu1 }
 0x7d8   : > { %v6470_v61 = vpop.permute.xlu1 %6469  ;;  %6625 = vmatprep.subr.bf16.mxu1 %v6512_v28  ;;  %6588 = vmatprep.subr.bf16.mxu0 %v6518_v25  ;;  %v5381_v44 = vpop.f32.mrb[31].mxu1 }
 0x7d9   : > { %v6466_v35 = vpop.permute.xlu0 %6465  ;;  %v6524_v27 = vsel %vm11823_vm2, %v6470_v61, %v6472_v13  ;;  %vm6716_vm2 = vcmask 913152  }
 0x7da   : > { %v6521_v57 = vsel %vm11803_vm0, %v6464_v62, %v6466_v35  ;;  %vm6691_vm0 = vcmask 388352  }
 0x7db   : > { %6589 = vmatpush1.bf16.msra.mxu0 %v6517_v16  ;;  %6626 = vmatpush1.bf16.msra.mxu1 %v6511_v5 }
 0x7dc   : > { %v6468_v47 = vpop.permute.xlu1 %6467  ;;  %6627 = vmatprep.subr.bf16.mxu1 %v6516_v49 }
 0x7dd   : > { %v6480_v15 = vpop.permute.xlu0 %6479  ;;  %v6522_v48 = vsel %vm11817_vm11, %v6466_v35, %v6468_v47  ;;  %v6523_v7 = vsel %vm11825_vm4, %v6468_v47, %v6470_v61  ;;  %vm6683_vm11 = vcmask 162816  }
 0x7de   : > { %6590 = vmatprep.subr.bf16.mxu0 %v6522_v48  ;;  %v6527_v59 = vsel %vm11828_vm13, %v11374_v32, %v6480_v15 }
 0x7df   : > { %6591 = vmatpush1.bf16.msra.mxu0 %v6521_v57  ;;  %6628 = vmatpush1.bf16.msra.mxu1 %v6515_v11 }
 0x7e0   : > { %v6474_v31 = vpop.permute.xlu1 %6473  ;;  %6629 = vmatprep.subr.bf16.mxu1 %v6520_v37  ;;  %6592 = vmatprep.subr.bf16.mxu0 %v6526_v9 }
 0x7e1   : > { %v6525_v43 = vsel %vm11821_vm1, %v6474_v31, %v6476_v8  ;;  %v6486_v42 = vpop.permute.xlu0 %6485  ;;  %vm6706_vm1 = vcmask 781952  }
 0x7e3   : > { %6593 = vmatpush1.bf16.msra.mxu0 %v6525_v43  ;;  %6630 = vmatpush1.bf16.msra.mxu1 %v6519_v10 }
 0x7e4   : > { %v6488_v33 = vpop.permute.xlu1 %6487  ;;  %6631 = vmatprep.subr.bf16.mxu1 %v6524_v27 }
 0x7e5   : > { %v6484_v53 = vpop.permute.xlu0 %6483  ;;  %v6530_v51 = vsel %vm11824_vm3, %v6486_v42, %v6488_v33  ;;  %vm6721_vm3 = vcmask 1044352  }
 0x7e6   : > { %v6529_v38 = vsel %vm11826_vm10, %v6484_v53, %v6486_v42  ;;  %6594 = vmatprep.subr.bf16.mxu0 %v6530_v51 }
 0x7e7   : > { %6595 = vmatpush1.bf16.msra.mxu0 %v6529_v38  ;;  %6632 = vmatpush1.bf16.msra.mxu1 %v6523_v7 }
 0x7e8   : > { %v6482_v60 = vpop.permute.xlu1 %6481 }
 0x7e9   : > { %v6528_v50 = vsel %vm11827_vm12, %v6480_v15, %v6482_v60  ;;  %v6492_v2 = vpop.permute.xlu0 %6491 }
 0x7ea   : > { %6609 = vmatmul.mubr.bf16.vlgmr.msra.gmra.mrb[40].mxu0 %v11344_v14  ;;  %6633 = vmatprep.subr.bf16.mxu1 %v6528_v50 }
 0x7eb   : > { %6634 = vmatpush1.bf16.msra.mxu1 %v6527_v59 }
 0x7ec   : > { %v6490_v30 = vpop.permute.xlu1 %6489 }
 0x7ed   : > { %v6531_v6 = vsel %vm11829_vm14, %v6488_v33, %v6490_v30  ;;  %v6532_v18 = vsel %vm11830_vm8, %v6490_v30, %v6492_v2 }
 0x7ee   : > { %6635 = vmatprep.subr.bf16.mxu1 %v6532_v18 }
 0x7ef   : > { %6636 = vmatpush1.bf16.msra.mxu1 %v6531_v6 }
 0x7f2   : > { %6650 = vmatmul.mubr.bf16.vlgmr.msra.gmra.mrb[52].mxu1 %v11344_v14 }
 0x7fd   : > { %v5417_v58 = vpop.f32.mrb[32].mxu1  ;;  %v6666_v11 = vpop.permute.xlu1 %6665 }
 0x7fe   : > { %v5419_v22 = vpop.f32.mrb[33].mxu1 }
 0x7ff   : > { %v5421_v34 = vpop.f32.mrb[34].mxu1 }
 0x800   : > { %v5422_v62 = vpop.f32.mrb[35].mxu1 }
 0x825   : > { %v5471_v56 = vpop.f32.mrb[36].mxu1 }
 0x826   : > { %v5472_v4 = vadd.f32 %v5471_v56, %v11394_v45  ;;  %v5473_v36 = vpop.f32.mrb[37].mxu1 }
 0x827   : > { %v5474_v20 = vadd.f32 %v5473_v36, %v11400_v40  ;;  %v5475_v1 = vpop.f32.mrb[38].mxu1 }
 0x828   : > { %v5476_v24 = vpop.f32.mrb[39].mxu1 }
 0x84d   : > { %v5512_v12 = vpop.f32.mrb[40].mxu1 }
 0x84e   : > { %v5513_v52 = vadd.f32 %v5512_v12, %v5417_v58  ;;  %v5514_v55 = vpop.f32.mrb[41].mxu1 }
 0x84f   : > { %v5515_v26 = vadd.f32 %v5514_v55, %v5419_v22  ;;  %v5516_v32 = vpop.f32.mrb[42].mxu1 }
 0x850   : > { %v5517_v46 = vpop.f32.mrb[43].mxu1 }
 0x86d   : > { %v5848_v0 = vpop.f32.mrb[32].mxu0 }
 0x86e   : > { %v5896_v14 = vadd.f32 %v5848_v0, %v5472_v4  ;;  %v5850_v23 = vpop.f32.mrb[33].mxu0 }
 0x86f   : > { %v5897_v19 = vadd.f32 %v5850_v23, %v5474_v20  ;;  %v5852_v8 = vpop.f32.mrb[34].mxu0 }
 0x870   : > { %v5853_v54 = vpop.f32.mrb[35].mxu0 }
 0x875   : > { %v5889_v17 = vpop.f32.mrb[44].mxu1 }
 0x876   : > { %v5898_v3 = vadd.f32 %v5889_v17, %v5513_v52  ;;  %v5891_v63 = vpop.f32.mrb[45].mxu1 }
 0x877   : > { %v5899_v13 = vadd.f32 %v5891_v63, %v5515_v26  ;;  %v5893_v21 = vpop.f32.mrb[46].mxu1 }
 0x878   : > { %v5894_v45 = vpop.f32.mrb[47].mxu1 }
 0x895   : > { %v6229_v29 = vpop.f32.mrb[36].mxu0 }
 0x896   : > { %v6277_v39 = vadd.f32 %v6229_v29, %v5896_v14  ;;  %v6231_v40 = vpop.f32.mrb[37].mxu0 }
 0x897   : > { %v6278_v28 = vadd.f32 %v6231_v40, %v5897_v19  ;;  %v6233_v25 = vpop.f32.mrb[38].mxu0 }
 0x898   : > { %v6234_v41 = vpop.f32.mrb[39].mxu0 }
 0x89d   : > { %v6270_v61 = vpop.f32.mrb[48].mxu1 }
 0x89e   : > { %v6279_v44 = vadd.f32 %v6270_v61, %v5898_v3  ;;  %v6272_v35 = vpop.f32.mrb[49].mxu1 }
 0x89f   : > { %v6280_v5 = vadd.f32 %v6272_v35, %v5899_v13  ;;  %v6274_v16 = vpop.f32.mrb[50].mxu1 }
 0x8a0   : > { %v6275_v49 = vpop.f32.mrb[51].mxu1 }
 0x8bd   : > { %v6610_v47 = vpop.f32.mrb[40].mxu0 }
 0x8be   : > { %v6658_v15 = vadd.f32 %v6610_v47, %v6277_v39  ;;  %v6612_v48 = vpop.f32.mrb[41].mxu0 }
 0x8bf   : > { %v6659_v57 = vadd.f32 %v6612_v48, %v6278_v28  ;;  %v6614_v37 = vpop.f32.mrb[42].mxu0 }
 0x8c0   : > { %v6668_v9 = vadd.f32 %v6666_v11, %v6658_v15  ;;  %v6615_v31 = vpop.f32.mrb[43].mxu0 }
 0x8c1   : > { %v6669_v43 = vadd.f32 %v6666_v11, %v6659_v57 }
 0x8c2   : > { %6673 = vrot.lane.b32.xlu1 %v6668_v9, %s7856_s27 }
 0x8c3   : > { %6688 = vrot.lane.b32.xlu0 %v6669_v43, %s7857_s28  ;;  %v6679_v42 = vcombine.low %v6668_v9, %v6669_v43 }
 0x8c5   : > { %v6651_v10 = vpop.f32.mrb[52].mxu1 }
 0x8c6   : > { %v6660_v27 = vadd.f32 %v6651_v10, %v6279_v44  ;;  %v6653_v33 = vpop.f32.mrb[53].mxu1  ;;  %6698 = vrot.lane.b32.xlu1 %v6669_v43, %s7850_s18  ;;  %s7865_s18 = smov 44  }
 0x8c7   : > { %v6661_v53 = vadd.f32 %v6653_v33, %v6280_v5  ;;  %6693 = vrot.lane.b32.xlu0 %v6669_v43, %s7858_s11  ;;  %v6655_v51 = vpop.f32.mrb[54].mxu1 }
 0x8c8   : > { %v6670_v7 = vadd.f32 %v6666_v11, %v6660_v27  ;;  %v6656_v38 = vpop.f32.mrb[55].mxu1 }
 0x8c9   : > { %v6671_v50 = vadd.f32 %v6666_v11, %v6661_v53 }
 0x8ca   : > { %6703 = vrot.lane.b32.xlu1 %v6669_v43, %s7859_s12  ;;  %v6709_v60 = vcombine.low %v6669_v43, %v6670_v7 }
 0x8cb   : > { %6680 = vrot.lane.b32.xlu0 %v6679_v42, %s7860_s13 }
 0x8ce   : > { %6727 = vrot.lane.b32.xlu1 %v6670_v7, %s7861_s14 }
 0x8cf   : > { %6723 = vrot.lane.b32.xlu0 %v6670_v7, %s7862_s19 }
 0x8d2   : > { %6731 = vrot.lane.b32.xlu1 %v6670_v7, %s7863_s29 }
 0x8d3   : > { %6735 = vrot.lane.b32.xlu0 %v6670_v7, %s7864_s30 }
 0x8d6   : > { %6748 = vrot.lane.b32.xlu1 %v6671_v50, %s7865_s18 }
 0x8d7   : > { %6740 = vrot.lane.b32.xlu0 %v6671_v50, %s7866_s8 }
 0x8da   : > { %6710 = vrot.lane.b32.xlu1 %v6709_v60, %s7867_s9 }
 0x8db   : > { %6744 = vrot.lane.b32.xlu0 %v6671_v50, %s7868_s10 }
 0x8de   : > { %6752 = vrot.lane.b32.xlu1 %v6671_v50, %s7869_s15 }
 0x8df   : > { %6718 = vrot.lane.b32.xlu0 %v6670_v7, %s7870_s16 }
 0x934   : > { %v6674_v59 = vpop.permute.xlu1 %6673 }
 0x935   : > { %6677 = vst.msk [vmem:[%s11446_s22] sm:$0xf] %vm6676_vm9, %v6674_v59  ;;  %v6689_v2 = vpop.permute.xlu0 %6688 }
 0x938   : > { %v6699_v30 = vpop.permute.xlu1 %6698 }
 0x939   : > { %v6694_v6 = vpop.permute.xlu0 %6693 }
 0x93c   : > { %v6704_v18 = vpop.permute.xlu1 %6703 }
 0x93d   : > { %v6681_v58 = vpop.permute.xlu0 %6680 }
 0x93e   : > { %v6682_v22 = vrot.slane %v6681_v58, 4 }
 0x940   : > { %v6684_v34 = vsel %vm6683_vm11, %v6681_v58, %v6682_v22  ;;  %v6728_v62 = vpop.permute.xlu1 %6727 }
 0x941   : > { %6687 = vst.msk [vmem:[%s11446_s22] sm:$0xf] %vm6686_vm15, %v6684_v34  ;;  %v6724_v56 = vpop.permute.xlu0 %6723 }
 0x942   : > { %6726 = vst.msk [vmem:[%s11446_s22 + $0x4] sm:$0xf] %vm6676_vm9, %v6724_v56 }
 0x943   : > { %6692 = vst.msk [vmem:[%s11446_s22] sm:$0xf] %vm6691_vm0, %v6689_v2 }
 0x944   : > { %6730 = vst.msk [vmem:[%s11446_s22 + $0x4] sm:$0xf] %vm6686_vm15, %v6728_v62  ;;  %v6732_v4 = vpop.permute.xlu1 %6731 }
 0x945   : > { %6697 = vst.msk [vmem:[%s11446_s22] sm:$0xf] %vm6696_vm6, %v6694_v6  ;;  %v6736_v36 = vpop.permute.xlu0 %6735 }
 0x946   : > { %6702 = vst.msk [vmem:[%s11446_s22] sm:$0xf] %vm6701_vm7, %v6699_v30 }
 0x947   : > { %6734 = vst.msk [vmem:[%s11446_s22 + $0x4] sm:$0xf] %vm6691_vm0, %v6732_v4 }
 0x948   : > { %6707 = vst.msk [vmem:[%s11446_s22] sm:$0xf] %vm6706_vm1, %v6704_v18  ;;  %v6749_v20 = vpop.permute.xlu1 %6748 }
 0x949   : > { %6738 = vst.msk [vmem:[%s11446_s22 + $0x4] sm:$0xf] %vm6696_vm6, %v6736_v36  ;;  %v6741_v1 = vpop.permute.xlu0 %6740 }
 0x94a   : > { %6743 = vst.msk [vmem:[%s11446_s22 + $0x4] sm:$0xf] %vm6701_vm7, %v6741_v1 }
 0x94c   : > { %v6711_v24 = vpop.permute.xlu1 %6710 }
 0x94d   : > { %v6712_v12 = vrot.slane %v6711_v24, 4  ;;  %v6745_v52 = vpop.permute.xlu0 %6744 }
 0x94e   : > { %6747 = vst.msk [vmem:[%s11446_s22 + $0x4] sm:$0xf] %vm6706_vm1, %v6745_v52 }
 0x94f   : > { %v6714_v55 = vsel %vm6713_vm5, %v6711_v24, %v6712_v12  ;;  %6751 = vst.msk [vmem:[%s11446_s22 + $0x4] sm:$0xf] %vm6716_vm2, %v6749_v20 }
 0x950   : > { %6717 = vst.msk [vmem:[%s11446_s22] sm:$0xf] %vm6716_vm2, %v6714_v55  ;;  %v6753_v26 = vpop.permute.xlu1 %6752 }
 0x951   : > { %6755 = vst.msk [vmem:[%s11446_s22 + $0x4] sm:$0xf] %vm6721_vm3, %v6753_v26  ;;  %v6719_v32 = vpop.permute.xlu0 %6718 }
 0x952   : > { %6722 = vst.msk [vmem:[%s11446_s22] sm:$0xf] %vm6721_vm3, %v6719_v32 }
 0x953 PF: > { %s17_s24 = sadd.s32 1, %s7836_s24  }
 0x954   : > { %p14_p4 = scmp.ge.s32.totalorder %s17_s24, 4  }
 0x956   :  { %16 = sbr.rel (!%p14_p4) target bundleno = 1 (0x1), region = 90 }

</bundles_post_ra>
